<compile_context>
chip_gen: v5e
topology: v5e:2x2
jax: 0.10.0
libtpu: 0.0.40
codegen_flags: <defaults>
</compile_context>

<pallas_src>
import functools
import math

import jax
import jax.numpy as jnp
from jax.experimental import pallas as pl
from jax.experimental.pallas import tpu as pltpu

LN_EPS = 1e-5
NEG_INF = -1e30


def _round_up(a, b):
    return ((a + b - 1) // b) * b


# ---------------------------------------------------------------------------
# Fused kernel: LayerNorm + QKV projection + dilated attention per row tile
# ---------------------------------------------------------------------------
def fused_block_kernel(x_ref, gamma_ref, beta_ref, w_ref, b_ref, o_ref, *,
                       d, heads, head_dim, seg_len, rates):
    rows = x_ref.shape[0]
    n_seg = rows // seg_len

    # --- LayerNorm (f32) ---------------------------------------------------
    x = x_ref[...].astype(jnp.float32)                       # (rows, D)
    mean = jnp.mean(x, axis=-1, keepdims=True)
    var = jnp.mean(jnp.square(x - mean), axis=-1, keepdims=True)
    xn = (x - mean) * jax.lax.rsqrt(var + LN_EPS)
    xn = xn * gamma_ref[...] + beta_ref[...]

    # --- fused QKV projection: bf16 MXU operands, f32 accumulation ----------
    # 1/sqrt(head_dim) is folded into the Q columns of w/b and 1/len(rates)
    # into the V columns (see prepare_params), so no extra VPU passes here.
    qkv = jnp.dot(xn.astype(jnp.bfloat16), w_ref[...],
                  preferred_element_type=jnp.float32) + b_ref[...]   # (rows, 3D)

    q = qkv[:, :d].reshape(n_seg, seg_len, d)
    k = qkv[:, d:2 * d].reshape(n_seg, seg_len, d)
    v = qkv[:, 2 * d:].reshape(n_seg, seg_len, d)

    # Static per-rate position masks (offset 0); mask-based selection is
    # mathematically identical to gather -> attend -> scatter-add but needs no
    # gathers/scatters.
    # TODO(synk): for larger segment_length, use static strided slices per rate
    #   (or pack segments into the lane axis) instead of full-w masking to
    #   avoid redundant exp/softmax work on masked positions.
    key_masks, query_masks = [], []
    for r in rates:
        key_masks.append(
            (jax.lax.broadcasted_iota(jnp.int32, (1, seg_len), 1) % r) == 0)
        query_masks.append(
            (jax.lax.broadcasted_iota(jnp.int32, (seg_len, 1), 0) % r) == 0)

    for h in range(heads):
        sl = slice(h * head_dim, (h + 1) * head_dim)
        qh = q[:, :, sl].astype(jnp.bfloat16)                 # (n_seg, w, Dh)
        kh = k[:, :, sl].astype(jnp.bfloat16)
        vh = v[:, :, sl].astype(jnp.bfloat16)

        # Scores computed once per head (f32 accumulation), reused per rate.
        s = jnp.einsum("gqd,gkd->gqk", qh, kh,
                       preferred_element_type=jnp.float32)    # (n_seg, w, w)

        acc = jnp.zeros((n_seg, seg_len, head_dim), jnp.float32)
        for km, qm in zip(key_masks, query_masks):
            sr = jnp.where(km, s, NEG_INF)                    # f32 masking
            sr = sr - jnp.max(sr, axis=-1, keepdims=True)
            e = jnp.exp(sr)
            p = e * pl.reciprocal(jnp.sum(e, axis=-1, keepdims=True),
                                  approx=True)
            oh = jnp.einsum("gqk,gkd->gqd", p.astype(jnp.bfloat16), vh,
                            preferred_element_type=jnp.float32)
            acc = acc + jnp.where(qm, oh, 0.0)

        # Store this head's slice immediately: only one head's temporaries
        # stay live; the HBM writeback of the block is still one dense DMA.
        o_ref[:, sl] = acc.reshape(rows, head_dim).astype(o_ref.dtype)


# ---------------------------------------------------------------------------
# Parameter preprocessing (ONE TIME, outside jit)
# ---------------------------------------------------------------------------
def prepare_params(params, *, heads, dilation_rates):
    """Fuse the three projections into a single bf16 (D, 3D) weight + f32 bias,
    folding the attention scale into Q and 1/len(rates) into V."""
    D = params["wq"].shape[0]
    scale = (D // heads) ** -0.5
    inv_n = 1.0 / float(len(dilation_rates))
    w_qkv = jnp.concatenate(
        [params["wq"] * scale, params["wk"], params["wv"] * inv_n],
        axis=1).astype(jnp.bfloat16)
    b_qkv = jnp.concatenate(
        [params["bq"] * scale, params["bk"], params["bv"] * inv_n]
    ).reshape(1, 3 * D).astype(jnp.float32)
    return dict(
        w_qkv=w_qkv,
        b_qkv=b_qkv,
        gamma=params["gamma"].reshape(1, D).astype(jnp.float32),
        beta=params["beta"].reshape(1, D).astype(jnp.float32),
    )


# ---------------------------------------------------------------------------
# Forward wrapper
# ---------------------------------------------------------------------------
def parallel_transformer_block_forward(x, fused_params, *, heads,
                                       dilation_rates, segment_length,
                                       row_tile_target=256):
    """x: (B, N, D) -> (B, N, D).  One fused pallas_call."""
    B, N, D = x.shape
    w = segment_length
    assert N % w == 0, "sequence length must be a multiple of segment_length"
    assert D % heads == 0
    head_dim = D // heads

    M = B * N
    x2 = x.reshape(M, D)

    # Row tiles hold whole segments and are sublane-aligned.
    # row_tile_target=256 suits v6e/v7x; prefer 128 on v5e (4x128 MXU, 1 vst).
    base = (8 * w) // math.gcd(8, w)
    row_tile = max(base, (row_tile_target // base) * base)
    row_tile = min(row_tile, _round_up(M, base))
    M_pad = _round_up(M, row_tile)
    if M_pad != M:
        # Padded rows form whole padded segments (M is a multiple of w),
        # never mixing with real data; they are sliced off below.
        x2 = jnp.pad(x2, ((0, M_pad - M), (0, 0)))

    row_spec = pl.BlockSpec((row_tile, D), lambda i: (i, 0))
    const2 = lambda i: (0, 0)

    nr = len(dilation_rates)
    G_pad = M_pad // w
    cost = pl.CostEstimate(
        flops=(2 * M_pad * D * 3 * D + 8 * M_pad * D
               + G_pad * heads * (2 * w * w * head_dim
                                  + nr * (2 * w * w * head_dim + 6 * w * w))),
        transcendentals=M_pad + G_pad * heads * nr * w * w,
        bytes_accessed=2 * M_pad * D * 4 + 2 * D * 3 * D + 4 * 3 * D,
    )

    out = pl.pallas_call(
        functools.partial(fused_block_kernel, d=D, heads=heads,
                          head_dim=head_dim, seg_len=w,
                          rates=tuple(dilation_rates)),
        out_shape=jax.ShapeDtypeStruct((M_pad, D), x.dtype),
        grid=(M_pad // row_tile,),
        in_specs=[row_spec,
                  pl.BlockSpec((1, D), const2),
                  pl.BlockSpec((1, D), const2),
                  # TODO(synk): for D >= ~1.5K add a second grid axis that
                  #   column-tiles this (D, 3D) weight (v7x has only 64 MiB
                  #   VMEM per TensorCore); not needed at these shapes.
                  pl.BlockSpec((D, 3 * D), const2),
                  pl.BlockSpec((1, 3 * D), const2)],
        out_specs=row_spec,
        compiler_params=pltpu.CompilerParams(
            dimension_semantics=("parallel",),
            vmem_limit_bytes=64 * 1024 * 1024),
        cost_estimate=cost,
    )(x2, fused_params["gamma"], fused_params["beta"],
      fused_params["w_qkv"], fused_params["b_qkv"])

    if M_pad != M:
        out = out[:M]
    return out.reshape(B, N, D)


# ---------------------------------------------------------------------------
# Parameter init (matches the PyTorch module: gamma=1, beta=0, Linear w/ bias)
# ---------------------------------------------------------------------------
def init_params(key, dim):
    ks = jax.random.split(key, 6)

    def w(k):
        return 0.02 * jax.random.normal(k, (dim, dim), jnp.float32)

    def b(k):
        return 0.02 * jax.random.normal(k, (dim,), jnp.float32)

    return dict(
        gamma=jnp.ones((dim,), jnp.float32),
        beta=jnp.zeros((dim,), jnp.float32),
        wq=w(ks[0]), bq=b(ks[1]),
        wk=w(ks[2]), bk=b(ks[3]),
        wv=w(ks[4]), bv=b(ks[5]),
    )


# ---------------------------------------------------------------------------
# Pure-JAX reference (f32 end to end) for a correctness check
# ---------------------------------------------------------------------------
def reference_forward(x, params, *, heads, dilation_rates, segment_length):
    mean = jnp.mean(x, -1, keepdims=True)
    var = jnp.mean((x - mean) ** 2, -1, keepdims=True)
    xn = (x - mean) / jnp.sqrt(var + LN_EPS) * params["gamma"] + params["beta"]
    q = xn @ params["wq"] + params["bq"]
    k = xn @ params["wk"] + params["bk"]
    v = xn @ params["wv"] + params["bv"]

    B, N, D = x.shape
    H, Dh, w = heads, D // heads, segment_length
    nseg = N // w
    scale = Dh ** -0.5

    def sh(t):
        return t.reshape(B, nseg, w, H, Dh)

    qh, kh, vh = sh(q), sh(k), sh(v)
    out = jnp.zeros_like(qh)
    for r in dilation_rates:
        qs, ks, vs = qh[:, :, ::r], kh[:, :, ::r], vh[:, :, ::r]
        s = jnp.einsum("bnihd,bnjhd->bnhij", qs, ks) * scale
        p = jax.nn.softmax(s, axis=-1)
        o = jnp.einsum("bnhij,bnjhd->bnihd", p, vs)
        out = out.at[:, :, ::r].add(o)
    return (out / len(dilation_rates)).reshape(B, N, D)


if __name__ == "__main__":
    B, N, DIM, HEADS = 2, 16, 32, 4
    DILATION_RATES = (1, 2, 4)
    SEGMENT_LENGTH = 4

    key = jax.random.PRNGKey(0)
    xk, pk = jax.random.split(key)
    x = jax.random.normal(xk, (B, N, DIM), jnp.float32)
    params = init_params(pk, DIM)

    # One-time parameter fusion (outside jit): bf16 (D, 3D) QKV weight with
    # scale / 1/len(rates) folded in.
    fused_params = prepare_params(params, heads=HEADS,
                                  dilation_rates=DILATION_RATES)

    fwd = jax.jit(functools.partial(
        parallel_transformer_block_forward, heads=HEADS,
        dilation_rates=DILATION_RATES, segment_length=SEGMENT_LENGTH))

    out = jax.block_until_ready(fwd(x, fused_params))

    ref = reference_forward(
        x, params, heads=HEADS, dilation_rates=DILATION_RATES,
        segment_length=SEGMENT_LENGTH)

    assert out.shape == (B, N, DIM)
    # bf16 MXU operands + approx reciprocal in the kernel -> modest tolerance.
    assert jnp.allclose(out, ref, atol=1e-2, rtol=1e-2), "mismatch vs reference"
    print("KERNEL_OK")
</pallas_src>

<mosaic_0001>
module attributes {stable_mosaic.version = 11 : i64} {
  func.func @fused_block_kernel(%arg0: i32, %arg1: memref<32x32xf32, #tpu.memory_space<vmem>>, %arg2: memref<1x32xf32, #tpu.memory_space<vmem>>, %arg3: memref<1x32xf32, #tpu.memory_space<vmem>>, %arg4: memref<32x96xbf16, #tpu.memory_space<vmem>>, %arg5: memref<1x96xf32, #tpu.memory_space<vmem>>, %arg6: memref<32x32xf32, #tpu.memory_space<vmem>>) attributes {dimension_semantics = [#tpu.dimension_semantics<parallel>], iteration_bounds = array<i64: 1>, scalar_prefetch = 0 : i64, scratch_operands = 0 : i64, tpu.core_type = #tpu.core_type<tc>, window_params = [{transform_indices = @transform_0, window_bounds = array<i64: 32, 32>}, {pipeline_mode = #tpu.pipeline_mode<synchronous>, transform_indices = @transform_1, window_bounds = array<i64: 1, 32>}, {pipeline_mode = #tpu.pipeline_mode<synchronous>, transform_indices = @transform_2, window_bounds = array<i64: 1, 32>}, {pipeline_mode = #tpu.pipeline_mode<synchronous>, transform_indices = @transform_3, window_bounds = array<i64: 32, 96>}, {pipeline_mode = #tpu.pipeline_mode<synchronous>, transform_indices = @transform_4, window_bounds = array<i64: 1, 96>}, {transform_indices = @transform_5, window_bounds = array<i64: 32, 32>}]} {
    %c0 = arith.constant 0 : index
    %c0_0 = arith.constant 0 : index
    %0 = vector.load %arg1[%c0, %c0_0] : memref<32x32xf32, #tpu.memory_space<vmem>>, vector<32x32xf32>
    %cst = arith.constant dense<0.000000e+00> : vector<32xf32>
    %1 = vector.multi_reduction <add>, %0, %cst [1] : vector<32x32xf32> to vector<32xf32>
    %2 = vector.shape_cast %1 : vector<32xf32> to vector<32x1xf32>
    %cst_1 = arith.constant 3.200000e+01 : f32
    %3 = vector.broadcast %cst_1 : f32 to vector<32x1xf32>
    %4 = arith.divf %2, %3 : vector<32x1xf32>
    %5 = vector.broadcast %4 : vector<32x1xf32> to vector<32x32xf32>
    %6 = arith.subf %0, %5 : vector<32x32xf32>
    %7 = arith.mulf %6, %6 : vector<32x32xf32>
    %cst_2 = arith.constant dense<0.000000e+00> : vector<32xf32>
    %8 = vector.multi_reduction <add>, %7, %cst_2 [1] : vector<32x32xf32> to vector<32xf32>
    %9 = vector.shape_cast %8 : vector<32xf32> to vector<32x1xf32>
    %cst_3 = arith.constant 3.200000e+01 : f32
    %10 = vector.broadcast %cst_3 : f32 to vector<32x1xf32>
    %11 = arith.divf %9, %10 : vector<32x1xf32>
    %12 = vector.broadcast %4 : vector<32x1xf32> to vector<32x32xf32>
    %13 = arith.subf %0, %12 : vector<32x32xf32>
    %cst_4 = arith.constant 9.99999974E-6 : f32
    %14 = vector.broadcast %cst_4 : f32 to vector<32x1xf32>
    %15 = arith.addf %11, %14 : vector<32x1xf32>
    %16 = math.rsqrt %15 : vector<32x1xf32>
    %17 = vector.broadcast %16 : vector<32x1xf32> to vector<32x32xf32>
    %18 = arith.mulf %13, %17 : vector<32x32xf32>
    %c0_5 = arith.constant 0 : index
    %c0_6 = arith.constant 0 : index
    %19 = vector.load %arg2[%c0_5, %c0_6] : memref<1x32xf32, #tpu.memory_space<vmem>>, vector<1x32xf32>
    %20 = vector.broadcast %19 : vector<1x32xf32> to vector<32x32xf32>
    %21 = arith.mulf %18, %20 : vector<32x32xf32>
    %c0_7 = arith.constant 0 : index
    %c0_8 = arith.constant 0 : index
    %22 = vector.load %arg3[%c0_7, %c0_8] : memref<1x32xf32, #tpu.memory_space<vmem>>, vector<1x32xf32>
    %23 = vector.broadcast %22 : vector<1x32xf32> to vector<32x32xf32>
    %24 = arith.addf %21, %23 : vector<32x32xf32>
    %25 = arith.truncf %24 : vector<32x32xf32> to vector<32x32xbf16>
    %c0_9 = arith.constant 0 : index
    %c0_10 = arith.constant 0 : index
    %26 = vector.load %arg4[%c0_9, %c0_10] : memref<32x96xbf16, #tpu.memory_space<vmem>>, vector<32x96xbf16>
    %cst_11 = arith.constant dense<0.000000e+00> : vector<32x96xf32>
    %27 = tpu.matmul %25, %26, %cst_11 {dimension_numbers = #tpu.dot_dimension_numbers<[1], [0], [0], [1], [0, 0, 1, 1], [], []>} : vector<32x32xbf16>, vector<32x96xbf16>, vector<32x96xf32> -> vector<32x96xf32>
    %c0_12 = arith.constant 0 : index
    %c0_13 = arith.constant 0 : index
    %28 = vector.load %arg5[%c0_12, %c0_13] : memref<1x96xf32, #tpu.memory_space<vmem>>, vector<1x96xf32>
    %29 = vector.broadcast %28 : vector<1x96xf32> to vector<32x96xf32>
    %30 = arith.addf %27, %29 : vector<32x96xf32>
    %31 = vector.extract_strided_slice %30 {offsets = [0, 0], sizes = [32, 32], strides = [1, 1]} : vector<32x96xf32> to vector<32x32xf32>
    %32 = vector.shape_cast %31 : vector<32x32xf32> to vector<8x4x32xf32>
    %33 = vector.extract_strided_slice %30 {offsets = [0, 32], sizes = [32, 32], strides = [1, 1]} : vector<32x96xf32> to vector<32x32xf32>
    %34 = vector.shape_cast %33 : vector<32x32xf32> to vector<8x4x32xf32>
    %35 = vector.extract_strided_slice %30 {offsets = [0, 64], sizes = [32, 32], strides = [1, 1]} : vector<32x96xf32> to vector<32x32xf32>
    %36 = vector.shape_cast %35 : vector<32x32xf32> to vector<8x4x32xf32>
    %37 = tpu.iota {dimensions = array<i32: 1>} : vector<1x4xi32>
    %c1_i32 = arith.constant 1 : i32
    %c0_i32 = arith.constant 0 : i32
    %38 = arith.cmpi eq, %c1_i32, %c0_i32 : i32
    %c1_i32_14 = arith.constant 1 : i32
    %39 = arith.select %38, %c1_i32_14, %c1_i32 : i32
    %40 = vector.broadcast %39 : i32 to vector<1x4xi32>
    %41 = arith.remsi %37, %40 : vector<1x4xi32>
    %c0_i32_15 = arith.constant 0 : i32
    %42 = vector.broadcast %c0_i32_15 : i32 to vector<1x4xi32>
    %43 = arith.cmpi ne, %41, %42 : vector<1x4xi32>
    %c0_i32_16 = arith.constant 0 : i32
    %44 = vector.broadcast %c0_i32_16 : i32 to vector<1x4xi32>
    %45 = arith.cmpi slt, %41, %44 : vector<1x4xi32>
    %c0_i32_17 = arith.constant 0 : i32
    %46 = arith.cmpi slt, %39, %c0_i32_17 : i32
    %47 = vector.broadcast %46 : i1 to vector<1x4xi1>
    %48 = vector.broadcast %47 : vector<1x4xi1> to vector<1x4xi1>
    %49 = arith.xori %45, %48 : vector<1x4xi1>
    %50 = arith.andi %49, %43 : vector<1x4xi1>
    %51 = vector.broadcast %39 : i32 to vector<1x4xi32>
    %52 = arith.addi %41, %51 : vector<1x4xi32>
    %53 = arith.select %50, %52, %41 : vector<1x4xi1>, vector<1x4xi32>
    %c0_i32_18 = arith.constant 0 : i32
    %54 = vector.broadcast %c0_i32_18 : i32 to vector<1x4xi32>
    %55 = arith.cmpi eq, %53, %54 : vector<1x4xi32>
    %56 = tpu.iota {dimensions = array<i32: 0>} : vector<4x1xi32>
    %c1_i32_19 = arith.constant 1 : i32
    %c0_i32_20 = arith.constant 0 : i32
    %57 = arith.cmpi eq, %c1_i32_19, %c0_i32_20 : i32
    %c1_i32_21 = arith.constant 1 : i32
    %58 = arith.select %57, %c1_i32_21, %c1_i32_19 : i32
    %59 = vector.broadcast %58 : i32 to vector<4x1xi32>
    %60 = arith.remsi %56, %59 : vector<4x1xi32>
    %c0_i32_22 = arith.constant 0 : i32
    %61 = vector.broadcast %c0_i32_22 : i32 to vector<4x1xi32>
    %62 = arith.cmpi ne, %60, %61 : vector<4x1xi32>
    %c0_i32_23 = arith.constant 0 : i32
    %63 = vector.broadcast %c0_i32_23 : i32 to vector<4x1xi32>
    %64 = arith.cmpi slt, %60, %63 : vector<4x1xi32>
    %c0_i32_24 = arith.constant 0 : i32
    %65 = arith.cmpi slt, %58, %c0_i32_24 : i32
    %66 = vector.broadcast %65 : i1 to vector<4x1xi1>
    %67 = vector.broadcast %66 : vector<4x1xi1> to vector<4x1xi1>
    %68 = arith.xori %64, %67 : vector<4x1xi1>
    %69 = arith.andi %68, %62 : vector<4x1xi1>
    %70 = vector.broadcast %58 : i32 to vector<4x1xi32>
    %71 = arith.addi %60, %70 : vector<4x1xi32>
    %72 = arith.select %69, %71, %60 : vector<4x1xi1>, vector<4x1xi32>
    %c0_i32_25 = arith.constant 0 : i32
    %73 = vector.broadcast %c0_i32_25 : i32 to vector<4x1xi32>
    %74 = arith.cmpi eq, %72, %73 : vector<4x1xi32>
    %75 = tpu.iota {dimensions = array<i32: 1>} : vector<1x4xi32>
    %c2_i32 = arith.constant 2 : i32
    %c0_i32_26 = arith.constant 0 : i32
    %76 = arith.cmpi eq, %c2_i32, %c0_i32_26 : i32
    %c1_i32_27 = arith.constant 1 : i32
    %77 = arith.select %76, %c1_i32_27, %c2_i32 : i32
    %78 = vector.broadcast %77 : i32 to vector<1x4xi32>
    %79 = arith.remsi %75, %78 : vector<1x4xi32>
    %c0_i32_28 = arith.constant 0 : i32
    %80 = vector.broadcast %c0_i32_28 : i32 to vector<1x4xi32>
    %81 = arith.cmpi ne, %79, %80 : vector<1x4xi32>
    %c0_i32_29 = arith.constant 0 : i32
    %82 = vector.broadcast %c0_i32_29 : i32 to vector<1x4xi32>
    %83 = arith.cmpi slt, %79, %82 : vector<1x4xi32>
    %c0_i32_30 = arith.constant 0 : i32
    %84 = arith.cmpi slt, %77, %c0_i32_30 : i32
    %85 = vector.broadcast %84 : i1 to vector<1x4xi1>
    %86 = vector.broadcast %85 : vector<1x4xi1> to vector<1x4xi1>
    %87 = arith.xori %83, %86 : vector<1x4xi1>
    %88 = arith.andi %87, %81 : vector<1x4xi1>
    %89 = vector.broadcast %77 : i32 to vector<1x4xi32>
    %90 = arith.addi %79, %89 : vector<1x4xi32>
    %91 = arith.select %88, %90, %79 : vector<1x4xi1>, vector<1x4xi32>
    %c0_i32_31 = arith.constant 0 : i32
    %92 = vector.broadcast %c0_i32_31 : i32 to vector<1x4xi32>
    %93 = arith.cmpi eq, %91, %92 : vector<1x4xi32>
    %94 = tpu.iota {dimensions = array<i32: 0>} : vector<4x1xi32>
    %c2_i32_32 = arith.constant 2 : i32
    %c0_i32_33 = arith.constant 0 : i32
    %95 = arith.cmpi eq, %c2_i32_32, %c0_i32_33 : i32
    %c1_i32_34 = arith.constant 1 : i32
    %96 = arith.select %95, %c1_i32_34, %c2_i32_32 : i32
    %97 = vector.broadcast %96 : i32 to vector<4x1xi32>
    %98 = arith.remsi %94, %97 : vector<4x1xi32>
    %c0_i32_35 = arith.constant 0 : i32
    %99 = vector.broadcast %c0_i32_35 : i32 to vector<4x1xi32>
    %100 = arith.cmpi ne, %98, %99 : vector<4x1xi32>
    %c0_i32_36 = arith.constant 0 : i32
    %101 = vector.broadcast %c0_i32_36 : i32 to vector<4x1xi32>
    %102 = arith.cmpi slt, %98, %101 : vector<4x1xi32>
    %c0_i32_37 = arith.constant 0 : i32
    %103 = arith.cmpi slt, %96, %c0_i32_37 : i32
    %104 = vector.broadcast %103 : i1 to vector<4x1xi1>
    %105 = vector.broadcast %104 : vector<4x1xi1> to vector<4x1xi1>
    %106 = arith.xori %102, %105 : vector<4x1xi1>
    %107 = arith.andi %106, %100 : vector<4x1xi1>
    %108 = vector.broadcast %96 : i32 to vector<4x1xi32>
    %109 = arith.addi %98, %108 : vector<4x1xi32>
    %110 = arith.select %107, %109, %98 : vector<4x1xi1>, vector<4x1xi32>
    %c0_i32_38 = arith.constant 0 : i32
    %111 = vector.broadcast %c0_i32_38 : i32 to vector<4x1xi32>
    %112 = arith.cmpi eq, %110, %111 : vector<4x1xi32>
    %113 = tpu.iota {dimensions = array<i32: 1>} : vector<1x4xi32>
    %c4_i32 = arith.constant 4 : i32
    %c0_i32_39 = arith.constant 0 : i32
    %114 = arith.cmpi eq, %c4_i32, %c0_i32_39 : i32
    %c1_i32_40 = arith.constant 1 : i32
    %115 = arith.select %114, %c1_i32_40, %c4_i32 : i32
    %116 = vector.broadcast %115 : i32 to vector<1x4xi32>
    %117 = arith.remsi %113, %116 : vector<1x4xi32>
    %c0_i32_41 = arith.constant 0 : i32
    %118 = vector.broadcast %c0_i32_41 : i32 to vector<1x4xi32>
    %119 = arith.cmpi ne, %117, %118 : vector<1x4xi32>
    %c0_i32_42 = arith.constant 0 : i32
    %120 = vector.broadcast %c0_i32_42 : i32 to vector<1x4xi32>
    %121 = arith.cmpi slt, %117, %120 : vector<1x4xi32>
    %c0_i32_43 = arith.constant 0 : i32
    %122 = arith.cmpi slt, %115, %c0_i32_43 : i32
    %123 = vector.broadcast %122 : i1 to vector<1x4xi1>
    %124 = vector.broadcast %123 : vector<1x4xi1> to vector<1x4xi1>
    %125 = arith.xori %121, %124 : vector<1x4xi1>
    %126 = arith.andi %125, %119 : vector<1x4xi1>
    %127 = vector.broadcast %115 : i32 to vector<1x4xi32>
    %128 = arith.addi %117, %127 : vector<1x4xi32>
    %129 = arith.select %126, %128, %117 : vector<1x4xi1>, vector<1x4xi32>
    %c0_i32_44 = arith.constant 0 : i32
    %130 = vector.broadcast %c0_i32_44 : i32 to vector<1x4xi32>
    %131 = arith.cmpi eq, %129, %130 : vector<1x4xi32>
    %132 = tpu.iota {dimensions = array<i32: 0>} : vector<4x1xi32>
    %c4_i32_45 = arith.constant 4 : i32
    %c0_i32_46 = arith.constant 0 : i32
    %133 = arith.cmpi eq, %c4_i32_45, %c0_i32_46 : i32
    %c1_i32_47 = arith.constant 1 : i32
    %134 = arith.select %133, %c1_i32_47, %c4_i32_45 : i32
    %135 = vector.broadcast %134 : i32 to vector<4x1xi32>
    %136 = arith.remsi %132, %135 : vector<4x1xi32>
    %c0_i32_48 = arith.constant 0 : i32
    %137 = vector.broadcast %c0_i32_48 : i32 to vector<4x1xi32>
    %138 = arith.cmpi ne, %136, %137 : vector<4x1xi32>
    %c0_i32_49 = arith.constant 0 : i32
    %139 = vector.broadcast %c0_i32_49 : i32 to vector<4x1xi32>
    %140 = arith.cmpi slt, %136, %139 : vector<4x1xi32>
    %c0_i32_50 = arith.constant 0 : i32
    %141 = arith.cmpi slt, %134, %c0_i32_50 : i32
    %142 = vector.broadcast %141 : i1 to vector<4x1xi1>
    %143 = vector.broadcast %142 : vector<4x1xi1> to vector<4x1xi1>
    %144 = arith.xori %140, %143 : vector<4x1xi1>
    %145 = arith.andi %144, %138 : vector<4x1xi1>
    %146 = vector.broadcast %134 : i32 to vector<4x1xi32>
    %147 = arith.addi %136, %146 : vector<4x1xi32>
    %148 = arith.select %145, %147, %136 : vector<4x1xi1>, vector<4x1xi32>
    %c0_i32_51 = arith.constant 0 : i32
    %149 = vector.broadcast %c0_i32_51 : i32 to vector<4x1xi32>
    %150 = arith.cmpi eq, %148, %149 : vector<4x1xi32>
    %151 = vector.extract_strided_slice %32 {offsets = [0, 0, 0], sizes = [8, 4, 8], strides = [1, 1, 1]} : vector<8x4x32xf32> to vector<8x4x8xf32>
    %152 = arith.truncf %151 : vector<8x4x8xf32> to vector<8x4x8xbf16>
    %153 = vector.extract_strided_slice %34 {offsets = [0, 0, 0], sizes = [8, 4, 8], strides = [1, 1, 1]} : vector<8x4x32xf32> to vector<8x4x8xf32>
    %154 = arith.truncf %153 : vector<8x4x8xf32> to vector<8x4x8xbf16>
    %155 = vector.extract_strided_slice %36 {offsets = [0, 0, 0], sizes = [8, 4, 8], strides = [1, 1, 1]} : vector<8x4x32xf32> to vector<8x4x8xf32>
    %156 = arith.truncf %155 : vector<8x4x8xf32> to vector<8x4x8xbf16>
    "tpu.trace_start"() <{level = 10 : i32, message = "gqd,gkd->gqk"}> : () -> ()
    %cst_52 = arith.constant dense<0.000000e+00> : vector<8x4x4xf32>
    %157 = tpu.matmul %152, %154, %cst_52 {dimension_numbers = #tpu.dot_dimension_numbers<[2], [2], [1], [1], [0, 0, 0, 1, 1, 1], [0], [0]>} : vector<8x4x8xbf16>, vector<8x4x8xbf16>, vector<8x4x4xf32> -> vector<8x4x4xf32>
    %cst_53 = arith.constant 0.000000e+00 : f32
    "tpu.trace_stop"() : () -> ()
    %158 = vector.broadcast %cst_53 : f32 to vector<8x4x8xf32>
    %cst_54 = arith.constant -1.000000e+30 : f32
    %159 = vector.shape_cast %55 : vector<1x4xi1> to vector<1x1x4xi1>
    %160 = vector.broadcast %159 : vector<1x1x4xi1> to vector<8x4x4xi1>
    %161 = vector.broadcast %cst_54 : f32 to vector<8x4x4xf32>
    %162 = arith.select %160, %157, %161 : vector<8x4x4xi1>, vector<8x4x4xf32>
    %cst_55 = arith.constant dense<0xFF800000> : vector<8x4xf32>
    %163 = vector.multi_reduction <maximumf>, %162, %cst_55 [2] : vector<8x4x4xf32> to vector<8x4xf32>
    %164 = vector.shape_cast %163 : vector<8x4xf32> to vector<8x4x1xf32>
    %165 = vector.broadcast %164 : vector<8x4x1xf32> to vector<8x4x4xf32>
    %166 = arith.subf %162, %165 : vector<8x4x4xf32>
    %167 = math.exp %166 : vector<8x4x4xf32>
    %cst_56 = arith.constant dense<0.000000e+00> : vector<8x4xf32>
    %168 = vector.multi_reduction <add>, %167, %cst_56 [2] : vector<8x4x4xf32> to vector<8x4xf32>
    %169 = vector.shape_cast %168 : vector<8x4xf32> to vector<8x4x1xf32>
    %170 = tpu.reciprocal %169 {approx = true} : vector<8x4x1xf32> -> vector<8x4x1xf32>
    %171 = vector.broadcast %170 : vector<8x4x1xf32> to vector<8x4x4xf32>
    %172 = arith.mulf %167, %171 : vector<8x4x4xf32>
    %173 = arith.truncf %172 : vector<8x4x4xf32> to vector<8x4x4xbf16>
    "tpu.trace_start"() <{level = 10 : i32, message = "gqk,gkd->gqd"}> : () -> ()
    %cst_57 = arith.constant dense<0.000000e+00> : vector<8x4x8xf32>
    %174 = tpu.matmul %173, %156, %cst_57 {dimension_numbers = #tpu.dot_dimension_numbers<[2], [1], [1], [2], [0, 0, 0, 1, 1, 2], [0], [0]>} : vector<8x4x4xbf16>, vector<8x4x8xbf16>, vector<8x4x8xf32> -> vector<8x4x8xf32>
    %cst_58 = arith.constant 0.000000e+00 : f32
    "tpu.trace_stop"() : () -> ()
    %175 = vector.shape_cast %74 : vector<4x1xi1> to vector<1x4x1xi1>
    %176 = vector.broadcast %175 : vector<1x4x1xi1> to vector<8x4x8xi1>
    %177 = vector.broadcast %cst_58 : f32 to vector<8x4x8xf32>
    %178 = arith.select %176, %174, %177 : vector<8x4x8xi1>, vector<8x4x8xf32>
    %179 = arith.addf %158, %178 : vector<8x4x8xf32>
    %cst_59 = arith.constant -1.000000e+30 : f32
    %180 = vector.shape_cast %93 : vector<1x4xi1> to vector<1x1x4xi1>
    %181 = vector.broadcast %180 : vector<1x1x4xi1> to vector<8x4x4xi1>
    %182 = vector.broadcast %cst_59 : f32 to vector<8x4x4xf32>
    %183 = arith.select %181, %157, %182 : vector<8x4x4xi1>, vector<8x4x4xf32>
    %cst_60 = arith.constant dense<0xFF800000> : vector<8x4xf32>
    %184 = vector.multi_reduction <maximumf>, %183, %cst_60 [2] : vector<8x4x4xf32> to vector<8x4xf32>
    %185 = vector.shape_cast %184 : vector<8x4xf32> to vector<8x4x1xf32>
    %186 = vector.broadcast %185 : vector<8x4x1xf32> to vector<8x4x4xf32>
    %187 = arith.subf %183, %186 : vector<8x4x4xf32>
    %188 = math.exp %187 : vector<8x4x4xf32>
    %cst_61 = arith.constant dense<0.000000e+00> : vector<8x4xf32>
    %189 = vector.multi_reduction <add>, %188, %cst_61 [2] : vector<8x4x4xf32> to vector<8x4xf32>
    %190 = vector.shape_cast %189 : vector<8x4xf32> to vector<8x4x1xf32>
    %191 = tpu.reciprocal %190 {approx = true} : vector<8x4x1xf32> -> vector<8x4x1xf32>
    %192 = vector.broadcast %191 : vector<8x4x1xf32> to vector<8x4x4xf32>
    %193 = arith.mulf %188, %192 : vector<8x4x4xf32>
    %194 = arith.truncf %193 : vector<8x4x4xf32> to vector<8x4x4xbf16>
    "tpu.trace_start"() <{level = 10 : i32, message = "gqk,gkd->gqd"}> : () -> ()
    %cst_62 = arith.constant dense<0.000000e+00> : vector<8x4x8xf32>
    %195 = tpu.matmul %194, %156, %cst_62 {dimension_numbers = #tpu.dot_dimension_numbers<[2], [1], [1], [2], [0, 0, 0, 1, 1, 2], [0], [0]>} : vector<8x4x4xbf16>, vector<8x4x8xbf16>, vector<8x4x8xf32> -> vector<8x4x8xf32>
    %cst_63 = arith.constant 0.000000e+00 : f32
    "tpu.trace_stop"() : () -> ()
    %196 = vector.shape_cast %112 : vector<4x1xi1> to vector<1x4x1xi1>
    %197 = vector.broadcast %196 : vector<1x4x1xi1> to vector<8x4x8xi1>
    %198 = vector.broadcast %cst_63 : f32 to vector<8x4x8xf32>
    %199 = arith.select %197, %195, %198 : vector<8x4x8xi1>, vector<8x4x8xf32>
    %200 = arith.addf %179, %199 : vector<8x4x8xf32>
    %cst_64 = arith.constant -1.000000e+30 : f32
    %201 = vector.shape_cast %131 : vector<1x4xi1> to vector<1x1x4xi1>
    %202 = vector.broadcast %201 : vector<1x1x4xi1> to vector<8x4x4xi1>
    %203 = vector.broadcast %cst_64 : f32 to vector<8x4x4xf32>
    %204 = arith.select %202, %157, %203 : vector<8x4x4xi1>, vector<8x4x4xf32>
    %cst_65 = arith.constant dense<0xFF800000> : vector<8x4xf32>
    %205 = vector.multi_reduction <maximumf>, %204, %cst_65 [2] : vector<8x4x4xf32> to vector<8x4xf32>
    %206 = vector.shape_cast %205 : vector<8x4xf32> to vector<8x4x1xf32>
    %207 = vector.broadcast %206 : vector<8x4x1xf32> to vector<8x4x4xf32>
    %208 = arith.subf %204, %207 : vector<8x4x4xf32>
    %209 = math.exp %208 : vector<8x4x4xf32>
    %cst_66 = arith.constant dense<0.000000e+00> : vector<8x4xf32>
    %210 = vector.multi_reduction <add>, %209, %cst_66 [2] : vector<8x4x4xf32> to vector<8x4xf32>
    %211 = vector.shape_cast %210 : vector<8x4xf32> to vector<8x4x1xf32>
    %212 = tpu.reciprocal %211 {approx = true} : vector<8x4x1xf32> -> vector<8x4x1xf32>
    %213 = vector.broadcast %212 : vector<8x4x1xf32> to vector<8x4x4xf32>
    %214 = arith.mulf %209, %213 : vector<8x4x4xf32>
    %215 = arith.truncf %214 : vector<8x4x4xf32> to vector<8x4x4xbf16>
    "tpu.trace_start"() <{level = 10 : i32, message = "gqk,gkd->gqd"}> : () -> ()
    %cst_67 = arith.constant dense<0.000000e+00> : vector<8x4x8xf32>
    %216 = tpu.matmul %215, %156, %cst_67 {dimension_numbers = #tpu.dot_dimension_numbers<[2], [1], [1], [2], [0, 0, 0, 1, 1, 2], [0], [0]>} : vector<8x4x4xbf16>, vector<8x4x8xbf16>, vector<8x4x8xf32> -> vector<8x4x8xf32>
    %cst_68 = arith.constant 0.000000e+00 : f32
    "tpu.trace_stop"() : () -> ()
    %217 = vector.shape_cast %150 : vector<4x1xi1> to vector<1x4x1xi1>
    %218 = vector.broadcast %217 : vector<1x4x1xi1> to vector<8x4x8xi1>
    %219 = vector.broadcast %cst_68 : f32 to vector<8x4x8xf32>
    %220 = arith.select %218, %216, %219 : vector<8x4x8xi1>, vector<8x4x8xf32>
    %221 = arith.addf %200, %220 : vector<8x4x8xf32>
    %222 = vector.shape_cast %221 : vector<8x4x8xf32> to vector<32x8xf32>
    %c0_69 = arith.constant 0 : index
    %c0_70 = arith.constant 0 : index
    %223 = vector.load %arg6[%c0_69, %c0_70] : memref<32x32xf32, #tpu.memory_space<vmem>>, vector<32x8xf32>
    tpu.vector_store %arg6[%c0_69, %c0_70], %222 {strides = array<i32>} : memref<32x32xf32, #tpu.memory_space<vmem>>, vector<32x8xf32>,
    %224 = vector.extract_strided_slice %32 {offsets = [0, 0, 8], sizes = [8, 4, 8], strides = [1, 1, 1]} : vector<8x4x32xf32> to vector<8x4x8xf32>
    %225 = arith.truncf %224 : vector<8x4x8xf32> to vector<8x4x8xbf16>
    %226 = vector.extract_strided_slice %34 {offsets = [0, 0, 8], sizes = [8, 4, 8], strides = [1, 1, 1]} : vector<8x4x32xf32> to vector<8x4x8xf32>
    %227 = arith.truncf %226 : vector<8x4x8xf32> to vector<8x4x8xbf16>
    %228 = vector.extract_strided_slice %36 {offsets = [0, 0, 8], sizes = [8, 4, 8], strides = [1, 1, 1]} : vector<8x4x32xf32> to vector<8x4x8xf32>
    %229 = arith.truncf %228 : vector<8x4x8xf32> to vector<8x4x8xbf16>
    "tpu.trace_start"() <{level = 10 : i32, message = "gqd,gkd->gqk"}> : () -> ()
    %cst_71 = arith.constant dense<0.000000e+00> : vector<8x4x4xf32>
    %230 = tpu.matmul %225, %227, %cst_71 {dimension_numbers = #tpu.dot_dimension_numbers<[2], [2], [1], [1], [0, 0, 0, 1, 1, 1], [0], [0]>} : vector<8x4x8xbf16>, vector<8x4x8xbf16>, vector<8x4x4xf32> -> vector<8x4x4xf32>
    %cst_72 = arith.constant 0.000000e+00 : f32
    "tpu.trace_stop"() : () -> ()
    %231 = vector.broadcast %cst_72 : f32 to vector<8x4x8xf32>
    %cst_73 = arith.constant -1.000000e+30 : f32
    %232 = vector.shape_cast %55 : vector<1x4xi1> to vector<1x1x4xi1>
    %233 = vector.broadcast %232 : vector<1x1x4xi1> to vector<8x4x4xi1>
    %234 = vector.broadcast %cst_73 : f32 to vector<8x4x4xf32>
    %235 = arith.select %233, %230, %234 : vector<8x4x4xi1>, vector<8x4x4xf32>
    %cst_74 = arith.constant dense<0xFF800000> : vector<8x4xf32>
    %236 = vector.multi_reduction <maximumf>, %235, %cst_74 [2] : vector<8x4x4xf32> to vector<8x4xf32>
    %237 = vector.shape_cast %236 : vector<8x4xf32> to vector<8x4x1xf32>
    %238 = vector.broadcast %237 : vector<8x4x1xf32> to vector<8x4x4xf32>
    %239 = arith.subf %235, %238 : vector<8x4x4xf32>
    %240 = math.exp %239 : vector<8x4x4xf32>
    %cst_75 = arith.constant dense<0.000000e+00> : vector<8x4xf32>
    %241 = vector.multi_reduction <add>, %240, %cst_75 [2] : vector<8x4x4xf32> to vector<8x4xf32>
    %242 = vector.shape_cast %241 : vector<8x4xf32> to vector<8x4x1xf32>
    %243 = tpu.reciprocal %242 {approx = true} : vector<8x4x1xf32> -> vector<8x4x1xf32>
    %244 = vector.broadcast %243 : vector<8x4x1xf32> to vector<8x4x4xf32>
    %245 = arith.mulf %240, %244 : vector<8x4x4xf32>
    %246 = arith.truncf %245 : vector<8x4x4xf32> to vector<8x4x4xbf16>
    "tpu.trace_start"() <{level = 10 : i32, message = "gqk,gkd->gqd"}> : () -> ()
    %cst_76 = arith.constant dense<0.000000e+00> : vector<8x4x8xf32>
    %247 = tpu.matmul %246, %229, %cst_76 {dimension_numbers = #tpu.dot_dimension_numbers<[2], [1], [1], [2], [0, 0, 0, 1, 1, 2], [0], [0]>} : vector<8x4x4xbf16>, vector<8x4x8xbf16>, vector<8x4x8xf32> -> vector<8x4x8xf32>
    %cst_77 = arith.constant 0.000000e+00 : f32
    "tpu.trace_stop"() : () -> ()
    %248 = vector.shape_cast %74 : vector<4x1xi1> to vector<1x4x1xi1>
    %249 = vector.broadcast %248 : vector<1x4x1xi1> to vector<8x4x8xi1>
    %250 = vector.broadcast %cst_77 : f32 to vector<8x4x8xf32>
    %251 = arith.select %249, %247, %250 : vector<8x4x8xi1>, vector<8x4x8xf32>
    %252 = arith.addf %231, %251 : vector<8x4x8xf32>
    %cst_78 = arith.constant -1.000000e+30 : f32
    %253 = vector.shape_cast %93 : vector<1x4xi1> to vector<1x1x4xi1>
    %254 = vector.broadcast %253 : vector<1x1x4xi1> to vector<8x4x4xi1>
    %255 = vector.broadcast %cst_78 : f32 to vector<8x4x4xf32>
    %256 = arith.select %254, %230, %255 : vector<8x4x4xi1>, vector<8x4x4xf32>
    %cst_79 = arith.constant dense<0xFF800000> : vector<8x4xf32>
    %257 = vector.multi_reduction <maximumf>, %256, %cst_79 [2] : vector<8x4x4xf32> to vector<8x4xf32>
    %258 = vector.shape_cast %257 : vector<8x4xf32> to vector<8x4x1xf32>
    %259 = vector.broadcast %258 : vector<8x4x1xf32> to vector<8x4x4xf32>
    %260 = arith.subf %256, %259 : vector<8x4x4xf32>
    %261 = math.exp %260 : vector<8x4x4xf32>
    %cst_80 = arith.constant dense<0.000000e+00> : vector<8x4xf32>
    %262 = vector.multi_reduction <add>, %261, %cst_80 [2] : vector<8x4x4xf32> to vector<8x4xf32>
    %263 = vector.shape_cast %262 : vector<8x4xf32> to vector<8x4x1xf32>
    %264 = tpu.reciprocal %263 {approx = true} : vector<8x4x1xf32> -> vector<8x4x1xf32>
    %265 = vector.broadcast %264 : vector<8x4x1xf32> to vector<8x4x4xf32>
    %266 = arith.mulf %261, %265 : vector<8x4x4xf32>
    %267 = arith.truncf %266 : vector<8x4x4xf32> to vector<8x4x4xbf16>
    "tpu.trace_start"() <{level = 10 : i32, message = "gqk,gkd->gqd"}> : () -> ()
    %cst_81 = arith.constant dense<0.000000e+00> : vector<8x4x8xf32>
    %268 = tpu.matmul %267, %229, %cst_81 {dimension_numbers = #tpu.dot_dimension_numbers<[2], [1], [1], [2], [0, 0, 0, 1, 1, 2], [0], [0]>} : vector<8x4x4xbf16>, vector<8x4x8xbf16>, vector<8x4x8xf32> -> vector<8x4x8xf32>
    %cst_82 = arith.constant 0.000000e+00 : f32
    "tpu.trace_stop"() : () -> ()
    %269 = vector.shape_cast %112 : vector<4x1xi1> to vector<1x4x1xi1>
    %270 = vector.broadcast %269 : vector<1x4x1xi1> to vector<8x4x8xi1>
    %271 = vector.broadcast %cst_82 : f32 to vector<8x4x8xf32>
    %272 = arith.select %270, %268, %271 : vector<8x4x8xi1>, vector<8x4x8xf32>
    %273 = arith.addf %252, %272 : vector<8x4x8xf32>
    %cst_83 = arith.constant -1.000000e+30 : f32
    %274 = vector.shape_cast %131 : vector<1x4xi1> to vector<1x1x4xi1>
    %275 = vector.broadcast %274 : vector<1x1x4xi1> to vector<8x4x4xi1>
    %276 = vector.broadcast %cst_83 : f32 to vector<8x4x4xf32>
    %277 = arith.select %275, %230, %276 : vector<8x4x4xi1>, vector<8x4x4xf32>
    %cst_84 = arith.constant dense<0xFF800000> : vector<8x4xf32>
    %278 = vector.multi_reduction <maximumf>, %277, %cst_84 [2] : vector<8x4x4xf32> to vector<8x4xf32>
    %279 = vector.shape_cast %278 : vector<8x4xf32> to vector<8x4x1xf32>
    %280 = vector.broadcast %279 : vector<8x4x1xf32> to vector<8x4x4xf32>
    %281 = arith.subf %277, %280 : vector<8x4x4xf32>
    %282 = math.exp %281 : vector<8x4x4xf32>
    %cst_85 = arith.constant dense<0.000000e+00> : vector<8x4xf32>
    %283 = vector.multi_reduction <add>, %282, %cst_85 [2] : vector<8x4x4xf32> to vector<8x4xf32>
    %284 = vector.shape_cast %283 : vector<8x4xf32> to vector<8x4x1xf32>
    %285 = tpu.reciprocal %284 {approx = true} : vector<8x4x1xf32> -> vector<8x4x1xf32>
    %286 = vector.broadcast %285 : vector<8x4x1xf32> to vector<8x4x4xf32>
    %287 = arith.mulf %282, %286 : vector<8x4x4xf32>
    %288 = arith.truncf %287 : vector<8x4x4xf32> to vector<8x4x4xbf16>
    "tpu.trace_start"() <{level = 10 : i32, message = "gqk,gkd->gqd"}> : () -> ()
    %cst_86 = arith.constant dense<0.000000e+00> : vector<8x4x8xf32>
    %289 = tpu.matmul %288, %229, %cst_86 {dimension_numbers = #tpu.dot_dimension_numbers<[2], [1], [1], [2], [0, 0, 0, 1, 1, 2], [0], [0]>} : vector<8x4x4xbf16>, vector<8x4x8xbf16>, vector<8x4x8xf32> -> vector<8x4x8xf32>
    %cst_87 = arith.constant 0.000000e+00 : f32
    "tpu.trace_stop"() : () -> ()
    %290 = vector.shape_cast %150 : vector<4x1xi1> to vector<1x4x1xi1>
    %291 = vector.broadcast %290 : vector<1x4x1xi1> to vector<8x4x8xi1>
    %292 = vector.broadcast %cst_87 : f32 to vector<8x4x8xf32>
    %293 = arith.select %291, %289, %292 : vector<8x4x8xi1>, vector<8x4x8xf32>
    %294 = arith.addf %273, %293 : vector<8x4x8xf32>
    %295 = vector.shape_cast %294 : vector<8x4x8xf32> to vector<32x8xf32>
    %c0_88 = arith.constant 0 : index
    %c8 = arith.constant 8 : index
    %296 = vector.load %arg6[%c0_88, %c8] : memref<32x32xf32, #tpu.memory_space<vmem>>, vector<32x8xf32>
    tpu.vector_store %arg6[%c0_88, %c8], %295 {strides = array<i32>} : memref<32x32xf32, #tpu.memory_space<vmem>>, vector<32x8xf32>,
    %297 = vector.extract_strided_slice %32 {offsets = [0, 0, 16], sizes = [8, 4, 8], strides = [1, 1, 1]} : vector<8x4x32xf32> to vector<8x4x8xf32>
    %298 = arith.truncf %297 : vector<8x4x8xf32> to vector<8x4x8xbf16>
    %299 = vector.extract_strided_slice %34 {offsets = [0, 0, 16], sizes = [8, 4, 8], strides = [1, 1, 1]} : vector<8x4x32xf32> to vector<8x4x8xf32>
    %300 = arith.truncf %299 : vector<8x4x8xf32> to vector<8x4x8xbf16>
    %301 = vector.extract_strided_slice %36 {offsets = [0, 0, 16], sizes = [8, 4, 8], strides = [1, 1, 1]} : vector<8x4x32xf32> to vector<8x4x8xf32>
    %302 = arith.truncf %301 : vector<8x4x8xf32> to vector<8x4x8xbf16>
    "tpu.trace_start"() <{level = 10 : i32, message = "gqd,gkd->gqk"}> : () -> ()
    %cst_89 = arith.constant dense<0.000000e+00> : vector<8x4x4xf32>
    %303 = tpu.matmul %298, %300, %cst_89 {dimension_numbers = #tpu.dot_dimension_numbers<[2], [2], [1], [1], [0, 0, 0, 1, 1, 1], [0], [0]>} : vector<8x4x8xbf16>, vector<8x4x8xbf16>, vector<8x4x4xf32> -> vector<8x4x4xf32>
    %cst_90 = arith.constant 0.000000e+00 : f32
    "tpu.trace_stop"() : () -> ()
    %304 = vector.broadcast %cst_90 : f32 to vector<8x4x8xf32>
    %cst_91 = arith.constant -1.000000e+30 : f32
    %305 = vector.shape_cast %55 : vector<1x4xi1> to vector<1x1x4xi1>
    %306 = vector.broadcast %305 : vector<1x1x4xi1> to vector<8x4x4xi1>
    %307 = vector.broadcast %cst_91 : f32 to vector<8x4x4xf32>
    %308 = arith.select %306, %303, %307 : vector<8x4x4xi1>, vector<8x4x4xf32>
    %cst_92 = arith.constant dense<0xFF800000> : vector<8x4xf32>
    %309 = vector.multi_reduction <maximumf>, %308, %cst_92 [2] : vector<8x4x4xf32> to vector<8x4xf32>
    %310 = vector.shape_cast %309 : vector<8x4xf32> to vector<8x4x1xf32>
    %311 = vector.broadcast %310 : vector<8x4x1xf32> to vector<8x4x4xf32>
    %312 = arith.subf %308, %311 : vector<8x4x4xf32>
    %313 = math.exp %312 : vector<8x4x4xf32>
    %cst_93 = arith.constant dense<0.000000e+00> : vector<8x4xf32>
    %314 = vector.multi_reduction <add>, %313, %cst_93 [2] : vector<8x4x4xf32> to vector<8x4xf32>
    %315 = vector.shape_cast %314 : vector<8x4xf32> to vector<8x4x1xf32>
    %316 = tpu.reciprocal %315 {approx = true} : vector<8x4x1xf32> -> vector<8x4x1xf32>
    %317 = vector.broadcast %316 : vector<8x4x1xf32> to vector<8x4x4xf32>
    %318 = arith.mulf %313, %317 : vector<8x4x4xf32>
    %319 = arith.truncf %318 : vector<8x4x4xf32> to vector<8x4x4xbf16>
    "tpu.trace_start"() <{level = 10 : i32, message = "gqk,gkd->gqd"}> : () -> ()
    %cst_94 = arith.constant dense<0.000000e+00> : vector<8x4x8xf32>
    %320 = tpu.matmul %319, %302, %cst_94 {dimension_numbers = #tpu.dot_dimension_numbers<[2], [1], [1], [2], [0, 0, 0, 1, 1, 2], [0], [0]>} : vector<8x4x4xbf16>, vector<8x4x8xbf16>, vector<8x4x8xf32> -> vector<8x4x8xf32>
    %cst_95 = arith.constant 0.000000e+00 : f32
    "tpu.trace_stop"() : () -> ()
    %321 = vector.shape_cast %74 : vector<4x1xi1> to vector<1x4x1xi1>
    %322 = vector.broadcast %321 : vector<1x4x1xi1> to vector<8x4x8xi1>
    %323 = vector.broadcast %cst_95 : f32 to vector<8x4x8xf32>
    %324 = arith.select %322, %320, %323 : vector<8x4x8xi1>, vector<8x4x8xf32>
    %325 = arith.addf %304, %324 : vector<8x4x8xf32>
    %cst_96 = arith.constant -1.000000e+30 : f32
    %326 = vector.shape_cast %93 : vector<1x4xi1> to vector<1x1x4xi1>
    %327 = vector.broadcast %326 : vector<1x1x4xi1> to vector<8x4x4xi1>
    %328 = vector.broadcast %cst_96 : f32 to vector<8x4x4xf32>
    %329 = arith.select %327, %303, %328 : vector<8x4x4xi1>, vector<8x4x4xf32>
    %cst_97 = arith.constant dense<0xFF800000> : vector<8x4xf32>
    %330 = vector.multi_reduction <maximumf>, %329, %cst_97 [2] : vector<8x4x4xf32> to vector<8x4xf32>
    %331 = vector.shape_cast %330 : vector<8x4xf32> to vector<8x4x1xf32>
    %332 = vector.broadcast %331 : vector<8x4x1xf32> to vector<8x4x4xf32>
    %333 = arith.subf %329, %332 : vector<8x4x4xf32>
    %334 = math.exp %333 : vector<8x4x4xf32>
    %cst_98 = arith.constant dense<0.000000e+00> : vector<8x4xf32>
    %335 = vector.multi_reduction <add>, %334, %cst_98 [2] : vector<8x4x4xf32> to vector<8x4xf32>
    %336 = vector.shape_cast %335 : vector<8x4xf32> to vector<8x4x1xf32>
    %337 = tpu.reciprocal %336 {approx = true} : vector<8x4x1xf32> -> vector<8x4x1xf32>
    %338 = vector.broadcast %337 : vector<8x4x1xf32> to vector<8x4x4xf32>
    %339 = arith.mulf %334, %338 : vector<8x4x4xf32>
    %340 = arith.truncf %339 : vector<8x4x4xf32> to vector<8x4x4xbf16>
    "tpu.trace_start"() <{level = 10 : i32, message = "gqk,gkd->gqd"}> : () -> ()
    %cst_99 = arith.constant dense<0.000000e+00> : vector<8x4x8xf32>
    %341 = tpu.matmul %340, %302, %cst_99 {dimension_numbers = #tpu.dot_dimension_numbers<[2], [1], [1], [2], [0, 0, 0, 1, 1, 2], [0], [0]>} : vector<8x4x4xbf16>, vector<8x4x8xbf16>, vector<8x4x8xf32> -> vector<8x4x8xf32>
    %cst_100 = arith.constant 0.000000e+00 : f32
    "tpu.trace_stop"() : () -> ()
    %342 = vector.shape_cast %112 : vector<4x1xi1> to vector<1x4x1xi1>
    %343 = vector.broadcast %342 : vector<1x4x1xi1> to vector<8x4x8xi1>
    %344 = vector.broadcast %cst_100 : f32 to vector<8x4x8xf32>
    %345 = arith.select %343, %341, %344 : vector<8x4x8xi1>, vector<8x4x8xf32>
    %346 = arith.addf %325, %345 : vector<8x4x8xf32>
    %cst_101 = arith.constant -1.000000e+30 : f32
    %347 = vector.shape_cast %131 : vector<1x4xi1> to vector<1x1x4xi1>
    %348 = vector.broadcast %347 : vector<1x1x4xi1> to vector<8x4x4xi1>
    %349 = vector.broadcast %cst_101 : f32 to vector<8x4x4xf32>
    %350 = arith.select %348, %303, %349 : vector<8x4x4xi1>, vector<8x4x4xf32>
    %cst_102 = arith.constant dense<0xFF800000> : vector<8x4xf32>
    %351 = vector.multi_reduction <maximumf>, %350, %cst_102 [2] : vector<8x4x4xf32> to vector<8x4xf32>
    %352 = vector.shape_cast %351 : vector<8x4xf32> to vector<8x4x1xf32>
    %353 = vector.broadcast %352 : vector<8x4x1xf32> to vector<8x4x4xf32>
    %354 = arith.subf %350, %353 : vector<8x4x4xf32>
    %355 = math.exp %354 : vector<8x4x4xf32>
    %cst_103 = arith.constant dense<0.000000e+00> : vector<8x4xf32>
    %356 = vector.multi_reduction <add>, %355, %cst_103 [2] : vector<8x4x4xf32> to vector<8x4xf32>
    %357 = vector.shape_cast %356 : vector<8x4xf32> to vector<8x4x1xf32>
    %358 = tpu.reciprocal %357 {approx = true} : vector<8x4x1xf32> -> vector<8x4x1xf32>
    %359 = vector.broadcast %358 : vector<8x4x1xf32> to vector<8x4x4xf32>
    %360 = arith.mulf %355, %359 : vector<8x4x4xf32>
    %361 = arith.truncf %360 : vector<8x4x4xf32> to vector<8x4x4xbf16>
    "tpu.trace_start"() <{level = 10 : i32, message = "gqk,gkd->gqd"}> : () -> ()
    %cst_104 = arith.constant dense<0.000000e+00> : vector<8x4x8xf32>
    %362 = tpu.matmul %361, %302, %cst_104 {dimension_numbers = #tpu.dot_dimension_numbers<[2], [1], [1], [2], [0, 0, 0, 1, 1, 2], [0], [0]>} : vector<8x4x4xbf16>, vector<8x4x8xbf16>, vector<8x4x8xf32> -> vector<8x4x8xf32>
    %cst_105 = arith.constant 0.000000e+00 : f32
    "tpu.trace_stop"() : () -> ()
    %363 = vector.shape_cast %150 : vector<4x1xi1> to vector<1x4x1xi1>
    %364 = vector.broadcast %363 : vector<1x4x1xi1> to vector<8x4x8xi1>
    %365 = vector.broadcast %cst_105 : f32 to vector<8x4x8xf32>
    %366 = arith.select %364, %362, %365 : vector<8x4x8xi1>, vector<8x4x8xf32>
    %367 = arith.addf %346, %366 : vector<8x4x8xf32>
    %368 = vector.shape_cast %367 : vector<8x4x8xf32> to vector<32x8xf32>
    %c0_106 = arith.constant 0 : index
    %c16 = arith.constant 16 : index
    %369 = vector.load %arg6[%c0_106, %c16] : memref<32x32xf32, #tpu.memory_space<vmem>>, vector<32x8xf32>
    tpu.vector_store %arg6[%c0_106, %c16], %368 {strides = array<i32>} : memref<32x32xf32, #tpu.memory_space<vmem>>, vector<32x8xf32>,
    %370 = vector.extract_strided_slice %32 {offsets = [0, 0, 24], sizes = [8, 4, 8], strides = [1, 1, 1]} : vector<8x4x32xf32> to vector<8x4x8xf32>
    %371 = arith.truncf %370 : vector<8x4x8xf32> to vector<8x4x8xbf16>
    %372 = vector.extract_strided_slice %34 {offsets = [0, 0, 24], sizes = [8, 4, 8], strides = [1, 1, 1]} : vector<8x4x32xf32> to vector<8x4x8xf32>
    %373 = arith.truncf %372 : vector<8x4x8xf32> to vector<8x4x8xbf16>
    %374 = vector.extract_strided_slice %36 {offsets = [0, 0, 24], sizes = [8, 4, 8], strides = [1, 1, 1]} : vector<8x4x32xf32> to vector<8x4x8xf32>
    %375 = arith.truncf %374 : vector<8x4x8xf32> to vector<8x4x8xbf16>
    "tpu.trace_start"() <{level = 10 : i32, message = "gqd,gkd->gqk"}> : () -> ()
    %cst_107 = arith.constant dense<0.000000e+00> : vector<8x4x4xf32>
    %376 = tpu.matmul %371, %373, %cst_107 {dimension_numbers = #tpu.dot_dimension_numbers<[2], [2], [1], [1], [0, 0, 0, 1, 1, 1], [0], [0]>} : vector<8x4x8xbf16>, vector<8x4x8xbf16>, vector<8x4x4xf32> -> vector<8x4x4xf32>
    %cst_108 = arith.constant 0.000000e+00 : f32
    "tpu.trace_stop"() : () -> ()
    %377 = vector.broadcast %cst_108 : f32 to vector<8x4x8xf32>
    %cst_109 = arith.constant -1.000000e+30 : f32
    %378 = vector.shape_cast %55 : vector<1x4xi1> to vector<1x1x4xi1>
    %379 = vector.broadcast %378 : vector<1x1x4xi1> to vector<8x4x4xi1>
    %380 = vector.broadcast %cst_109 : f32 to vector<8x4x4xf32>
    %381 = arith.select %379, %376, %380 : vector<8x4x4xi1>, vector<8x4x4xf32>
    %cst_110 = arith.constant dense<0xFF800000> : vector<8x4xf32>
    %382 = vector.multi_reduction <maximumf>, %381, %cst_110 [2] : vector<8x4x4xf32> to vector<8x4xf32>
    %383 = vector.shape_cast %382 : vector<8x4xf32> to vector<8x4x1xf32>
    %384 = vector.broadcast %383 : vector<8x4x1xf32> to vector<8x4x4xf32>
    %385 = arith.subf %381, %384 : vector<8x4x4xf32>
    %386 = math.exp %385 : vector<8x4x4xf32>
    %cst_111 = arith.constant dense<0.000000e+00> : vector<8x4xf32>
    %387 = vector.multi_reduction <add>, %386, %cst_111 [2] : vector<8x4x4xf32> to vector<8x4xf32>
    %388 = vector.shape_cast %387 : vector<8x4xf32> to vector<8x4x1xf32>
    %389 = tpu.reciprocal %388 {approx = true} : vector<8x4x1xf32> -> vector<8x4x1xf32>
    %390 = vector.broadcast %389 : vector<8x4x1xf32> to vector<8x4x4xf32>
    %391 = arith.mulf %386, %390 : vector<8x4x4xf32>
    %392 = arith.truncf %391 : vector<8x4x4xf32> to vector<8x4x4xbf16>
    "tpu.trace_start"() <{level = 10 : i32, message = "gqk,gkd->gqd"}> : () -> ()
    %cst_112 = arith.constant dense<0.000000e+00> : vector<8x4x8xf32>
    %393 = tpu.matmul %392, %375, %cst_112 {dimension_numbers = #tpu.dot_dimension_numbers<[2], [1], [1], [2], [0, 0, 0, 1, 1, 2], [0], [0]>} : vector<8x4x4xbf16>, vector<8x4x8xbf16>, vector<8x4x8xf32> -> vector<8x4x8xf32>
    %cst_113 = arith.constant 0.000000e+00 : f32
    "tpu.trace_stop"() : () -> ()
    %394 = vector.shape_cast %74 : vector<4x1xi1> to vector<1x4x1xi1>
    %395 = vector.broadcast %394 : vector<1x4x1xi1> to vector<8x4x8xi1>
    %396 = vector.broadcast %cst_113 : f32 to vector<8x4x8xf32>
    %397 = arith.select %395, %393, %396 : vector<8x4x8xi1>, vector<8x4x8xf32>
    %398 = arith.addf %377, %397 : vector<8x4x8xf32>
    %cst_114 = arith.constant -1.000000e+30 : f32
    %399 = vector.shape_cast %93 : vector<1x4xi1> to vector<1x1x4xi1>
    %400 = vector.broadcast %399 : vector<1x1x4xi1> to vector<8x4x4xi1>
    %401 = vector.broadcast %cst_114 : f32 to vector<8x4x4xf32>
    %402 = arith.select %400, %376, %401 : vector<8x4x4xi1>, vector<8x4x4xf32>
    %cst_115 = arith.constant dense<0xFF800000> : vector<8x4xf32>
    %403 = vector.multi_reduction <maximumf>, %402, %cst_115 [2] : vector<8x4x4xf32> to vector<8x4xf32>
    %404 = vector.shape_cast %403 : vector<8x4xf32> to vector<8x4x1xf32>
    %405 = vector.broadcast %404 : vector<8x4x1xf32> to vector<8x4x4xf32>
    %406 = arith.subf %402, %405 : vector<8x4x4xf32>
    %407 = math.exp %406 : vector<8x4x4xf32>
    %cst_116 = arith.constant dense<0.000000e+00> : vector<8x4xf32>
    %408 = vector.multi_reduction <add>, %407, %cst_116 [2] : vector<8x4x4xf32> to vector<8x4xf32>
    %409 = vector.shape_cast %408 : vector<8x4xf32> to vector<8x4x1xf32>
    %410 = tpu.reciprocal %409 {approx = true} : vector<8x4x1xf32> -> vector<8x4x1xf32>
    %411 = vector.broadcast %410 : vector<8x4x1xf32> to vector<8x4x4xf32>
    %412 = arith.mulf %407, %411 : vector<8x4x4xf32>
    %413 = arith.truncf %412 : vector<8x4x4xf32> to vector<8x4x4xbf16>
    "tpu.trace_start"() <{level = 10 : i32, message = "gqk,gkd->gqd"}> : () -> ()
    %cst_117 = arith.constant dense<0.000000e+00> : vector<8x4x8xf32>
    %414 = tpu.matmul %413, %375, %cst_117 {dimension_numbers = #tpu.dot_dimension_numbers<[2], [1], [1], [2], [0, 0, 0, 1, 1, 2], [0], [0]>} : vector<8x4x4xbf16>, vector<8x4x8xbf16>, vector<8x4x8xf32> -> vector<8x4x8xf32>
    %cst_118 = arith.constant 0.000000e+00 : f32
    "tpu.trace_stop"() : () -> ()
    %415 = vector.shape_cast %112 : vector<4x1xi1> to vector<1x4x1xi1>
    %416 = vector.broadcast %415 : vector<1x4x1xi1> to vector<8x4x8xi1>
    %417 = vector.broadcast %cst_118 : f32 to vector<8x4x8xf32>
    %418 = arith.select %416, %414, %417 : vector<8x4x8xi1>, vector<8x4x8xf32>
    %419 = arith.addf %398, %418 : vector<8x4x8xf32>
    %cst_119 = arith.constant -1.000000e+30 : f32
    %420 = vector.shape_cast %131 : vector<1x4xi1> to vector<1x1x4xi1>
    %421 = vector.broadcast %420 : vector<1x1x4xi1> to vector<8x4x4xi1>
    %422 = vector.broadcast %cst_119 : f32 to vector<8x4x4xf32>
    %423 = arith.select %421, %376, %422 : vector<8x4x4xi1>, vector<8x4x4xf32>
    %cst_120 = arith.constant dense<0xFF800000> : vector<8x4xf32>
    %424 = vector.multi_reduction <maximumf>, %423, %cst_120 [2] : vector<8x4x4xf32> to vector<8x4xf32>
    %425 = vector.shape_cast %424 : vector<8x4xf32> to vector<8x4x1xf32>
    %426 = vector.broadcast %425 : vector<8x4x1xf32> to vector<8x4x4xf32>
    %427 = arith.subf %423, %426 : vector<8x4x4xf32>
    %428 = math.exp %427 : vector<8x4x4xf32>
    %cst_121 = arith.constant dense<0.000000e+00> : vector<8x4xf32>
    %429 = vector.multi_reduction <add>, %428, %cst_121 [2] : vector<8x4x4xf32> to vector<8x4xf32>
    %430 = vector.shape_cast %429 : vector<8x4xf32> to vector<8x4x1xf32>
    %431 = tpu.reciprocal %430 {approx = true} : vector<8x4x1xf32> -> vector<8x4x1xf32>
    %432 = vector.broadcast %431 : vector<8x4x1xf32> to vector<8x4x4xf32>
    %433 = arith.mulf %428, %432 : vector<8x4x4xf32>
    %434 = arith.truncf %433 : vector<8x4x4xf32> to vector<8x4x4xbf16>
    "tpu.trace_start"() <{level = 10 : i32, message = "gqk,gkd->gqd"}> : () -> ()
    %cst_122 = arith.constant dense<0.000000e+00> : vector<8x4x8xf32>
    %435 = tpu.matmul %434, %375, %cst_122 {dimension_numbers = #tpu.dot_dimension_numbers<[2], [1], [1], [2], [0, 0, 0, 1, 1, 2], [0], [0]>} : vector<8x4x4xbf16>, vector<8x4x8xbf16>, vector<8x4x8xf32> -> vector<8x4x8xf32>
    %cst_123 = arith.constant 0.000000e+00 : f32
    "tpu.trace_stop"() : () -> ()
    %436 = vector.shape_cast %150 : vector<4x1xi1> to vector<1x4x1xi1>
    %437 = vector.broadcast %436 : vector<1x4x1xi1> to vector<8x4x8xi1>
    %438 = vector.broadcast %cst_123 : f32 to vector<8x4x8xf32>
    %439 = arith.select %437, %435, %438 : vector<8x4x8xi1>, vector<8x4x8xf32>
    %440 = arith.addf %419, %439 : vector<8x4x8xf32>
    %441 = vector.shape_cast %440 : vector<8x4x8xf32> to vector<32x8xf32>
    %c0_124 = arith.constant 0 : index
    %c24 = arith.constant 24 : index
    %442 = vector.load %arg6[%c0_124, %c24] : memref<32x32xf32, #tpu.memory_space<vmem>>, vector<32x8xf32>
    tpu.vector_store %arg6[%c0_124, %c24], %441 {strides = array<i32>} : memref<32x32xf32, #tpu.memory_space<vmem>>, vector<32x8xf32>,
    return
  }
  func.func @transform_0(%arg0: i32) -> (i32, i32) {
    %c0_i32 = arith.constant 0 : i32
    %c0_i32_0 = arith.constant 0 : i32
    return %arg0, %c0_i32 : i32, i32
  }
  func.func @transform_1(%arg0: i32) -> (i32, i32) {
    %c0_i32 = arith.constant 0 : i32
    %c0_i32_0 = arith.constant 0 : i32
    %c0_i32_1 = arith.constant 0 : i32
    return %c0_i32, %c0_i32_0 : i32, i32
  }
  func.func @transform_2(%arg0: i32) -> (i32, i32) {
    %c0_i32 = arith.constant 0 : i32
    %c0_i32_0 = arith.constant 0 : i32
    %c0_i32_1 = arith.constant 0 : i32
    return %c0_i32, %c0_i32_0 : i32, i32
  }
  func.func @transform_3(%arg0: i32) -> (i32, i32) {
    %c0_i32 = arith.constant 0 : i32
    %c0_i32_0 = arith.constant 0 : i32
    %c0_i32_1 = arith.constant 0 : i32
    return %c0_i32, %c0_i32_0 : i32, i32
  }
  func.func @transform_4(%arg0: i32) -> (i32, i32) {
    %c0_i32 = arith.constant 0 : i32
    %c0_i32_0 = arith.constant 0 : i32
    %c0_i32_1 = arith.constant 0 : i32
    return %c0_i32, %c0_i32_0 : i32, i32
  }
  func.func @transform_5(%arg0: i32) -> (i32, i32) {
    %c0_i32 = arith.constant 0 : i32
    %c0_i32_0 = arith.constant 0 : i32
    return %arg0, %c0_i32 : i32, i32
  }
}

</mosaic_0001>

<bundles_post_ra>
// kernel: parallel_transformer_block_forward.1
= control target key start
LH: loop header
LB: loop body
LE: loop exit
PB: predicated region body
PF: predicated region fallthrough
CT: control target
= control target key end

     0   :  { %10 = vsyncpa [#allocation3], 0  ;;  %s7091_s0 = inlined_call_operand.hbm [shape: f32[32,32], index: 0, kind: input, shape index: {}]   ;;  %s7092_s1 = inlined_call_operand.vmem [shape: f32[1,32], index: 1, kind: input, shape index: {}]   ;;  %s7093_s2 = inlined_call_operand.vmem [shape: f32[1,32], index: 2, kind: input, shape index: {}]   ;;  %s7094_s3 = inlined_call_operand.hbm [shape: bf16[32,96], index: 3, kind: input, shape index: {}]   ;;  %s7095_s4 = inlined_call_operand.hbm [shape: f32[1,96], index: 4, kind: input, shape index: {}]   ;;  %s7096_s5 = inlined_call_operand.hbm [shape: f32[32,32], index: 5, kind: output, shape index: {}]  }
   0x1   :  { %11 = vsyncpa [#allocation6], 0  ;;  %s34_s20 = sshll.u32 %s7094_s3, 4  ;;  %s35_s20 = int_to_ptr.hbm [resolvable:$true] %s34_s20 }
   0x2   :  { %12 = vsyncpa [#allocation4], 0  ;;  %s4917_s21 = smov [#allocation5]   ;;  %s17_s25 = sshll.u32 %s7091_s0, 4  ;;  %s18_s25 = int_to_ptr.hbm [resolvable:$true] %s17_s25 }
   0x3   :  { %s36_s22 = sshll.u32 %s4917_s21, 4  ;;  %s4918_s26 = smov 64   ;;  %s37_s22 = int_to_ptr.vmem [resolvable:$true] %s36_s22 }
   0x4   :  { %s4919_s27 = smov 4   ;;  %s4920_s28 = smov [#allocation2]  }
   0x5   :  { %42 = dma.hbm_to_vmem [thread:$0]  %s35_s20, 256, %s37_s22, [#allocation6], %s4918_s26, %s4918_s26, %s4919_s27  }
   0x6   :  { %s19_s29 = sshll.u32 %s4920_s28, 4  ;;  %s4921_s30 = smov 128   ;;  %s20_s29 = int_to_ptr.vmem [resolvable:$true] %s19_s29 }
   0x7   :  { %s4922_s3 = smov 8   ;;  %s48_s8 = sshll.u32 %s7095_s4, 4  ;;  %s49_s8 = int_to_ptr.hbm [resolvable:$true] %s48_s8 }
   0x8   :  { %25 = dma.hbm_to_vmem [thread:$0]  %s18_s25, 512, %s20_s29, [#allocation3], %s4921_s30, %s4921_s30, %s4922_s3  }
   0x9   :  { %s4923_s0 = smov [#allocation7]  }
   0xa   :  { %s50_s9 = sshll.u32 %s4923_s0, 4  ;;  %s51_s9 = int_to_ptr.vmem [resolvable:$true] %s50_s9 }
   0xb   :  { %53 = dma.hbm_to_vmem [thread:$0]  %s49_s8, 16, %s51_s9, [#allocation6]  }
   0xc   :  { %4911 = dma.done.wait [#allocation3], 512  }
   0xd   :  { %4912 = vsyncadd [#allocation3], 4294966784 }
   0xe   :  { %4913 = dma.done.wait [#allocation6], 272  }
   0xf   :  { %4914 = vsyncadd [#allocation6], 4294967024  ;;  %vm71_vm0 = vcmask 261120   ;;  %v69_v0 = vld [vmem:[#allocation2 + $0x10] sm:$0xff]  ;;  %v67_v1 = vld [vmem:[#allocation2] sm:$0xff]  ;;  %v4924_v8 = vmov 32.0  }
  0x10   :  { %v78_v2 = vsel %vm71_vm0, %v69_v0, 0.0  ;;  %v72_v3 = vsel %vm71_vm0, %v67_v1, 0.0  ;;  %v70_v4 = vld [vmem:[#allocation2 + $0x18] sm:$0xff]  ;;  %v68_v5 = vld [vmem:[#allocation2 + $0x8] sm:$0xff]  ;;  %4421 = vrcp.f32 %v4924_v8  ;;  %v4395_v39 = vld [vmem:[#allocation5] sm:$0xff]  ;;  %vm311_vm14 = vcmask 64512  }
  0x11   :  { %79 = vadd.xlane.f32.xlu1 %v78_v2  ;;  %73 = vadd.xlane.f32.xlu0 %v72_v3  ;;  %v81_v6 = vsel %vm71_vm0, %v70_v4, 0.0  ;;  %v75_v7 = vsel %vm71_vm0, %v68_v5, 0.0  ;;  %v4396_v35 = vld [vmem:[#allocation5 + $0x8] sm:$0xff]  ;;  %vm708_vm15 = vcmask 1041408   ;;  %s4927_s13 = smov 120   ;;  %s4928_s14 = smov 56  }
  0x12   :  { %217 = vmatpush.bf16.msra.mxu0 %v4396_v35  ;;  %s4929_s15 = smov 80   ;;  %s4930_s16 = smov 112  }
  0x13   :  { %s4931_s17 = smov 48   ;;  %s4932_s18 = smov 72  }
  0x14   :  { %s4933_s19 = smov 104   ;;  %s4934_s20 = smov 40  }
  0x15   :  { %s4935_s21 = smov 16   ;;  %s4936_s22 = smov 24  }
  0x16   :  { %v4422_v9 = vpop.eup %4421  ;;  %218 = vmatpush.bf16.msra.mxu0 %v4395_v39  ;;  %s4937_s23 = smov [#allocation8]   ;;  %s4243_s27 = sshll.u32 %s7096_s5, 4  ;;  %s4244_s27 = int_to_ptr.hbm [resolvable:$true] %s4243_s27 }
  0x17   :  { %v85_v10 = vmul.f32 32.0, %v4422_v9  ;;  %vm89_vm1 = vweird.f32 %v4422_v9  ;;  %s4241_s24 = sshll.u32 %s4937_s23, 4  ;;  %s4242_s24 = int_to_ptr.vmem [resolvable:$true] %s4241_s24 }
  0x19   :  { %82 = vadd.xlane.f32.xlu1 %v81_v6  ;;  %76 = vadd.xlane.f32.xlu0 %v75_v7  ;;  %v86_v11 = vsub.f32 1.0, %v85_v10 }
  0x1b   :  { %v87_v12 = vmul.f32 %v4422_v9, %v86_v11 }
  0x1d   :  { %v88_v13 = vadd.f32 %v4422_v9, %v87_v12  ;;  %v4419_v12 = vld [vmem:[%s7093_s2] ss:$0 sm:$0xff]  ;;  %s4926_s2 = smov 88  }
  0x1f   :  { %v90_v14 = vsel %vm89_vm1, %v4422_v9, %v88_v13 }
  0x84   :  { %v80_v15 = vpop.xlane.xlu1 %79  ;;  %v74_v16 = vpop.xlane.xlu0 %73 }
  0x85   :  { %v93_v17 = vmul.f32 %v90_v14, %v80_v15  ;;  %v91_v18 = vmul.f32 %v90_v14, %v74_v16 }
  0x87   :  { %v4986_v19 = vsub.f32 %v69_v0, %v93_v17  ;;  %v95_v20 = vsub.f32 %v67_v1, %v91_v18 }
  0x89   :  { %v101_v21 = vmul.f32 %v4986_v19, %v4986_v19  ;;  %v99_v22 = vmul.f32 %v95_v20, %v95_v20 }
  0x8b   :  { %v109_v23 = vsel %vm71_vm0, %v101_v21, 0.0  ;;  %v103_v24 = vsel %vm71_vm0, %v99_v22, 0.0 }
  0x8c   :  { %v83_v25 = vpop.xlane.xlu1 %82  ;;  %110 = vadd.xlane.f32.xlu0 %v109_v23  ;;  %104 = vadd.xlane.f32.xlu2 %v103_v24  ;;  %v77_v26 = vpop.xlane.xlu0 %76 }
  0x8d   :  { %v94_v27 = vmul.f32 %v90_v14, %v83_v25  ;;  %v92_v28 = vmul.f32 %v90_v14, %v77_v26 }
  0x8f   :  { %v4992_v29 = vsub.f32 %v70_v4, %v94_v27  ;;  %v96_v30 = vsub.f32 %v68_v5, %v92_v28  ;;  %v4418_v5 = vld [vmem:[%s7092_s1] ss:$0 sm:$0xff]  ;;  %s4925_s1 = smov 96  }
  0x91   :  { %v102_v31 = vmul.f32 %v4992_v29, %v4992_v29  ;;  %v100_v32 = vmul.f32 %v96_v30, %v96_v30 }
  0x93   :  { %v112_v33 = vsel %vm71_vm0, %v102_v31, 0.0  ;;  %v106_v34 = vsel %vm71_vm0, %v100_v32, 0.0  ;;  %v4420_v31 = vld [vmem:[#allocation7] ss:$0 sm:$0xff] }
  0x94   :  { %113 = vadd.xlane.f32.xlu1 %v112_v33  ;;  %107 = vadd.xlane.f32.xlu2 %v106_v34 }
  0xff   :  { %v105_v36 = vpop.xlane.xlu2 %104  ;;  %v111_v38 = vpop.xlane.xlu0 %110 }
 0x100   :  { %v115_v37 = vmul.f32 %v105_v36, %v90_v14  ;;  %v117_v41 = vmul.f32 %v111_v38, %v90_v14 }
 0x102   :  { %v119_v40 = vadd.f32 1e-05, %v115_v37  ;;  %v121_v42 = vadd.f32 1e-05, %v117_v41 }
 0x104   :  { %4423 = vrsqrt.f32 %v119_v40  ;;  %vm129_vm3 = vweird.f32 %v119_v40  ;;  %vm149_vm10 = vweird.f32 %v121_v42 }
 0x105   :  { %4425 = vrsqrt.f32 %v121_v42 }
 0x107   :  { %v114_v43 = vpop.xlane.xlu1 %113  ;;  %v108_v44 = vpop.xlane.xlu2 %107 }
 0x108   :  { %v118_v45 = vmul.f32 %v114_v43, %v90_v14  ;;  %v116_v46 = vmul.f32 %v108_v44, %v90_v14 }
 0x10a   :  { %v4424_v47 = vpop.eup %4423  ;;  %v122_v48 = vadd.f32 1e-05, %v118_v45  ;;  %v120_v49 = vadd.f32 1e-05, %v116_v46 }
 0x10b   :  { %v124_v50 = vmul.f32 %v4424_v47, %v119_v40  ;;  %v4426_v53 = vpop.eup %4425  ;;  %vm130_vm2 = vweird.f32 %v4424_v47 }
 0x10c   :  { %4427 = vrsqrt.f32 %v122_v48  ;;  %v144_v59 = vmul.f32 %v4426_v53, %v121_v42  ;;  %vm131_vm4 = vmor %vm129_vm3, %vm130_vm2  ;;  %vm139_vm6 = vweird.f32 %v120_v49  ;;  %vm159_vm8 = vweird.f32 %v122_v48 }
 0x10d   :  { %v125_v51 = vmul.f32 %v4424_v47, %v124_v50  ;;  %4429 = vrsqrt.f32 %v120_v49  ;;  %vm150_vm11 = vweird.f32 %v4426_v53  ;;  %vm704_vm3 = vcmask 31744  }
 0x10e   :  { %v145_v0 = vmul.f32 %v4426_v53, %v144_v59  ;;  %vm151_vm13 = vmor %vm149_vm10, %vm150_vm11 }
 0x10f   :  { %v126_v52 = vmul.f32 0.5, %v125_v51 }
 0x110   :  { %v146_v6 = vmul.f32 0.5, %v145_v0 }
 0x111   :  { %v127_v54 = vsub.f32 1.5, %v126_v52 }
 0x112   :  { %v4428_v55 = vpop.eup %4427  ;;  %v147_v13 = vsub.f32 1.5, %v146_v6 }
 0x113   :  { %v4430_v56 = vpop.eup %4429  ;;  %v154_v57 = vmul.f32 %v4428_v55, %v122_v48  ;;  %v128_v58 = vmul.f32 %v4424_v47, %v127_v54  ;;  %vm160_vm9 = vweird.f32 %v4428_v55 }
 0x114   :  { %v134_v60 = vmul.f32 %v4430_v56, %v120_v49  ;;  %vm140_vm5 = vweird.f32 %v4430_v56  ;;  %vm161_vm12 = vmor %vm159_vm8, %vm160_vm9  ;;  %v148_v18 = vmul.f32 %v4426_v53, %v147_v13  ;;  %vm4232_vm8 = vcmask 261312  }
 0x115   :  { %v155_v61 = vmul.f32 %v4428_v55, %v154_v57  ;;  %v132_v63 = vsel %vm131_vm4, %v4424_v47, %v128_v58  ;;  %vm141_vm7 = vmor %vm139_vm6, %vm140_vm5  ;;  %vm2272_vm6 = vcmask 130112  }
 0x116   :  { %v135_v62 = vmul.f32 %v4430_v56, %v134_v60  ;;  %v163_v4 = vmul.f32 %v132_v63, %v95_v20  ;;  %v152_v22 = vsel %vm151_vm13, %v4426_v53, %v148_v18 }
 0x117   :  { %v156_v2 = vmul.f32 0.5, %v155_v61  ;;  %v165_v24 = vmul.f32 %v152_v22, %v4986_v19 }
 0x118   :  { %v136_v1 = vmul.f32 0.5, %v135_v62  ;;  %v171_v11 = vmul.f32 %v4418_v5, %v163_v4 }
 0x119   :  { %v157_v8 = vsub.f32 1.5, %v156_v2  ;;  %v173_v26 = vmul.f32 %v4418_v5, %v165_v24 }
 0x11a   :  { %v137_v3 = vsub.f32 1.5, %v136_v1  ;;  %v179_v16 = vadd.f32 %v4419_v12, %v171_v11 }
 0x11b   :  { %v158_v15 = vmul.f32 %v4428_v55, %v157_v8  ;;  %v181_v28 = vadd.f32 %v4419_v12, %v173_v26 }
 0x11c   :  { %v138_v7 = vmul.f32 %v4430_v56, %v137_v3 }
 0x11d   :  { %v162_v21 = vsel %vm161_vm12, %v4428_v55, %v158_v15 }
 0x11e   :  { %v142_v9 = vsel %vm141_vm7, %v4430_v56, %v138_v7  ;;  %v166_v23 = vmul.f32 %v162_v21, %v4992_v29  ;;  %vm3252_vm7 = vcmask 195712  }
 0x11f   :  { %v164_v10 = vmul.f32 %v142_v9, %v96_v30 }
 0x120   :  { %v174_v25 = vmul.f32 %v4418_v5, %v166_v23 }
 0x121   :  { %v172_v14 = vmul.f32 %v4418_v5, %v164_v10 }
 0x122   :  { %v182_v27 = vadd.f32 %v4419_v12, %v174_v25 }
 0x123   :  { %v180_v17 = vadd.f32 %v4419_v12, %v172_v14 }
 0x124   :  { %v184_v30 = vpack.c.bf16 %v182_v27, %v181_v28 }
 0x125   :  { %v183_v20 = vpack.c.bf16 %v180_v17, %v179_v16 }
 0x127   :  { %4265 = vmatmul.msk.bf16.vlgmr.msra.gmra.mxu0 %vm71_vm0, %v183_v20 }
 0x137   :  { %4266 = vmatmul.msk.bf16.gmra.mxu0 %vm71_vm0, %v184_v30  ;;  %vm499_vm0 = vcmask 27648  }
 0x1a4   :  { %v220_v32 = vpop.f32.mrf.mxu0 }
 0x1a5   :  { %v221_v33 = vadd.f32 %v4420_v31, %v220_v32 }
 0x1a7   :  { %v234_v34 = vrot.slane %v221_v33, 4  ;;  %v5008_v35 = vpack.c.bf16 %v221_v33, %v221_v33 }
 0x1a9   :  { %v299_v36 = vpack.c.bf16 %v234_v34, %v234_v34  ;;  %v307_v37 = vunpack.c.l.b16 %v5008_v35  ;;  %v242_v34 = vlaneseq }
 0x1ab   :  { %v5011_v38 = vpack.c.b16 %v307_v37, %v307_v37  ;;  %v332_v29 = vunpack.c.l.b16 %v299_v36 }
 0x1ac   :  { %v222_v19 = vpop.f32.mrf.mxu0 }
 0x1ad   :  { %v5013_v39 = vpack.c.b16 %v332_v29, %v332_v29  ;;  %v223_v40 = vadd.f32 %v4420_v31, %v222_v19  ;;  %309 = vrot.lane.b32.xlu1 %v5011_v38, %s4925_s1 }
 0x1af   :  { %v300_v41 = vpack.c.bf16 %v223_v40, %v223_v40  ;;  %334 = vrot.lane.b32.xlu2 %v5013_v39, %s4925_s1  ;;  %v235_v46 = vrot.slane %v223_v40, 4 }
 0x1b1   :  { %v356_v42 = vunpack.c.l.b16 %v300_v41  ;;  %v301_v51 = vpack.c.bf16 %v235_v46, %v235_v46 }
 0x1b3   :  { %v5019_v43 = vpack.c.b16 %v356_v42, %v356_v42  ;;  %v380_v57 = vunpack.c.l.b16 %v301_v51 }
 0x1b4   :  { %v225_v44 = vpop.f32.mrf.mxu0 }
 0x1b5   :  { %v226_v45 = vadd.f32 %v4420_v31, %v225_v44  ;;  %358 = vrot.lane.b32.xlu0 %v5019_v43, %s4925_s1  ;;  %v5034_v62 = vpack.c.b16 %v380_v57, %v380_v57 }
 0x1b7   :  { %v236_v47 = vrot.slane %v226_v45, 4  ;;  %v302_v48 = vpack.c.bf16 %v226_v45, %v226_v45 }
 0x1b9   :  { %v5023_v49 = vpack.c.bf16 %v236_v47, %v236_v47  ;;  %v404_v50 = vunpack.c.l.b16 %v302_v48 }
 0x1bb   :  { %v5025_v52 = vpack.c.b16 %v404_v50, %v404_v50  ;;  %v428_v53 = vunpack.c.l.b16 %v5023_v49 }
 0x1bc   :  { %v227_v54 = vpop.f32.mrf.mxu0 }
 0x1bd   :  { %v5028_v55 = vpack.c.b16 %v428_v53, %v428_v53  ;;  %v228_v56 = vadd.f32 %v4420_v31, %v227_v54  ;;  %406 = vrot.lane.b32.xlu2 %v5025_v52, %s4925_s1 }
 0x1bf   :  { %v237_v58 = vrot.slane %v228_v56, 4  ;;  %v304_v59 = vpack.c.bf16 %v228_v56, %v228_v56  ;;  %430 = vrot.lane.b32.xlu0 %v5028_v55, %s4925_s1 }
 0x1c1   :  { %v305_v60 = vpack.c.bf16 %v237_v58, %v237_v58  ;;  %v452_v61 = vunpack.c.l.b16 %v304_v59 }
 0x1c3   :  { %v5036_v63 = vpack.c.b16 %v452_v61, %v452_v61  ;;  %v476_v0 = vunpack.c.l.b16 %v305_v60 }
 0x1c5   :  { %v5038_v1 = vpack.c.b16 %v476_v0, %v476_v0  ;;  %454 = vrot.lane.b32.xlu1 %v5036_v63, %s4925_s1  ;;  %382 = vrot.lane.b32.xlu2 %v5034_v62, %s4925_s1 }
 0x1c7   :  { %478 = vrot.lane.b32.xlu0 %v5038_v1, %s4925_s1 }
 0x1cd   :  { %702 = vrot.lane.b32.xlu1 %v5011_v38, %s4918_s26  ;;  %788 = vrot.lane.b32.xlu2 %v5025_v52, %s4918_s26 }
 0x1cf   :  { %725 = vrot.lane.b32.xlu0 %v5013_v39, %s4918_s26 }
 0x1d5   :  { %767 = vrot.lane.b32.xlu1 %v5034_v62, %s4918_s26 }
 0x1d7   :  { %809 = vrot.lane.b32.xlu0 %v5028_v55, %s4918_s26 }
 0x1df   :  { %746 = vrot.lane.b32.xlu0 %v5019_v43, %s4918_s26 }
 0x1e7   :  { %830 = vrot.lane.b32.xlu0 %v5036_v63, %s4918_s26 }
 0x209   :  { %v335_v2 = vpop.permute.xlu2 %334 }
 0x20a   :  { %v340_v3 = vsel %vm311_vm14, %v335_v2, 0 }
 0x20b   :  { %349 = vmatpush.bf16.xpose.msra.mxu2 %v340_v3 }
 0x212   :  { %4268 = vmatmul.msk.bf16.vlgmr.msra.gmra.mxu2 %vm311_vm14, %v299_v36 }
 0x217   :  { %v407_v4 = vpop.permute.xlu2 %406 }
 0x218   :  { %v412_v5 = vsel %vm311_vm14, %v407_v4, 0 }
 0x219   :  { %421 = vmatpush.bf16.xpose.msrb.mxu2 %v412_v5 }
 0x21f   :  { %v310_v6 = vpop.permute.xlu1 %309  ;;  %v383_v7 = vpop.permute.xlu2 %382 }
 0x220   :  { %v316_v8 = vsel %vm311_vm14, %v310_v6, 0  ;;  %v388_v9 = vsel %vm311_vm14, %v383_v7, 0 }
 0x221   :  { %325 = vmatpush.bf16.xpose.msra.mxu1 %v316_v8 }
 0x222   :  { %4271 = vmatmul.msk.bf16.vlgmr.msrb.gmra.mxu2 %vm311_vm14, %v302_v48 }
 0x227   :  { %v359_v10 = vpop.permute.xlu0 %358  ;;  %v789_v18 = vpop.permute.xlu2 %788 }
 0x228   :  { %4267 = vmatmul.msk.bf16.vlgmr.msra.gmra.mxu1 %vm311_vm14, %v5008_v35  ;;  %v364_v11 = vsel %vm311_vm14, %v359_v10, 0  ;;  %v5081_v22 = vsel %vm708_vm15, %v789_v18, 0  ;;  %v243_v35 = vand.u32 127, %v242_v34 }
 0x229   :  { %397 = vmatpush.bf16.xpose.msrb.mxu1 %v388_v9  ;;  %373 = vmatpush.bf16.xpose.msra.mxu3 %v364_v11 }
 0x22a   :  { %v248_v36 = vand.u32 1, %v243_v35 }
 0x22c   :  { %vm5111_vm1 = vcmp.eq.s32.totalorder %v248_v36, 0 }
 0x230   :  { %4269 = vmatmul.msk.bf16.vlgmr.msra.gmra.mxu3 %vm311_vm14, %v300_v41 }
 0x231   :  { %v431_v12 = vpop.permute.xlu0 %430 }
 0x232   :  { %v436_v13 = vsel %vm311_vm14, %v431_v12, 0 }
 0x233   :  { %445 = vmatpush.bf16.xpose.msrb.mxu3 %v436_v13 }
 0x237   :  { %v455_v14 = vpop.permute.xlu1 %454 }
 0x238   :  { %4270 = vmatmul.msk.bf16.vlgmr.msrb.gmra.mxu1 %vm311_vm14, %v301_v51  ;;  %v460_v15 = vsel %vm311_vm14, %v455_v14, 0  ;;  %v276_v51 = vand.u32 3, %v243_v35 }
 0x239   :  { %469 = vmatpush.bf16.xpose.msrb.mxu0 %v460_v15  ;;  %v479_v16 = vpop.permute.xlu0 %478 }
 0x23a   :  { %v484_v17 = vsel %vm311_vm14, %v479_v16, 0  ;;  %vm5135_vm2 = vcmp.eq.s32.totalorder %v276_v51, 0 }
 0x23b   :  { %493 = vmatpush.bf16.xpose.msra.mxu1 %v484_v17 }
 0x23f   :  { %v703_v20 = vpop.permute.xlu1 %702 }
 0x240   :  { %v5075_v21 = vsel %vm708_vm15, %v703_v20, 0  ;;  %4272 = vmatmul.msk.bf16.vlgmr.msrb.gmra.mxu3 %vm311_vm14, %v5023_v49  ;;  %4273 = vmatmul.msk.bf16.vlgmr.msrb.gmra.mxu0 %vm311_vm14, %v304_v59 }
 0x241   :  { %719 = vmatpush.bf16.msra.mxu2 %v5075_v21  ;;  %v726_v23 = vpop.permute.xlu0 %725 }
 0x242   :  { %v5085_v24 = vsel %vm708_vm15, %v726_v23, 0 }
 0x243   :  { %740 = vmatpush.bf16.msra.mxu3 %v5085_v24 }
 0x245   :  { %803 = vmatpush.bf16.msrb.mxu2 %v5081_v22 }
 0x247   :  { %v768_v25 = vpop.permute.xlu1 %767 }
 0x248   :  { %v5090_v26 = vsel %vm708_vm15, %v768_v25, 0  ;;  %4274 = vmatmul.msk.bf16.vlgmr.msra.gmra.mxu1 %vm311_vm14, %v305_v60 }
 0x249   :  { %782 = vmatpush.bf16.msrb.mxu1 %v5090_v26  ;;  %v810_v27 = vpop.permute.xlu0 %809 }
 0x24a   :  { %v5095_v28 = vsel %vm708_vm15, %v810_v27, 0 }
 0x24b   :  { %824 = vmatpush.bf16.msrb.mxu3 %v5095_v28 }
 0x251   :  { %v747_v30 = vpop.permute.xlu0 %746 }
 0x252   :  { %v5099_v31 = vsel %vm708_vm15, %v747_v30, 0 }
 0x253   :  { %761 = vmatpush.bf16.msra.mxu0 %v5099_v31 }
 0x259   :  { %v831_v32 = vpop.permute.xlu0 %830 }
 0x25a   :  { %v5103_v33 = vsel %vm708_vm15, %v831_v32, 0 }
 0x25b   :  { %845 = vmatpush.bf16.msrb.mxu0 %v5103_v33 }
 0x295   :  { %v5107_v37 = vpop.f32.mrf.mxu2 }
 0x296   :  { %v503_v29 = vsel %vm499_vm0, %v5107_v37, -inf  ;;  %v5118_v40 = vsel %vm5111_vm1, %v5107_v37, -1e+30  ;;  %v5172_v4 = vsel %vm5135_vm2, %v5107_v37, -1e+30 }
 0x297   :  { %504 = vmax.xlane.f32.xlu1 %v503_v29  ;;  %v609_v42 = vsel %vm499_vm0, %v5118_v40, -inf  ;;  %v1023_v9 = vsel %vm499_vm0, %v5172_v4, -inf }
 0x29d   :  { %v353_v41 = vpop.f32.mrf.mxu2 }
 0x29f   :  { %610 = vmax.xlane.f32.xlu1 %v609_v42 }
 0x2a5   :  { %v5122_v44 = vpop.f32.mrf.mxu1  ;;  %v5124_v45 = vpop.f32.mrf.mxu2 }
 0x2a6   :  { %v500_v46 = vsel %vm499_vm0, %v5122_v44, -inf  ;;  %v5131_v47 = vsel %vm5111_vm1, %v5122_v44, -1e+30  ;;  %v5144_v56 = vsel %vm5135_vm2, %v5122_v44, -1e+30  ;;  %v512_v15 = vsel %vm499_vm0, %v5124_v45, -inf }
 0x2a7   :  { %501 = vmax.xlane.f32.xlu2 %v500_v46  ;;  %v606_v50 = vsel %vm499_vm0, %v5131_v47, -inf  ;;  %v1020_v61 = vsel %vm499_vm0, %v5144_v56, -inf  ;;  %v5200_v17 = vsel %vm5111_vm1, %v5124_v45, -1e+30  ;;  %v5221_v35 = vsel %vm5135_vm2, %v5124_v45, -1e+30 }
 0x2a8   :  { %v618_v23 = vsel %vm499_vm0, %v5200_v17, -inf  ;;  %v1032_v29 = vsel %vm499_vm0, %v5221_v35, -inf }
 0x2ad   :  { %v329_v48 = vpop.f32.mrf.mxu1  ;;  %v425_v49 = vpop.f32.mrf.mxu2 }
 0x2af   :  { %607 = vmax.xlane.f32.xlu2 %v606_v50 }
 0x2b3   :  { %v5139_v54 = vpop.f32.mrf.mxu3 }
 0x2b4   :  { %v506_v57 = vsel %vm499_vm0, %v5139_v54, -inf  ;;  %v5151_v58 = vsel %vm5111_vm1, %v5139_v54, -1e+30  ;;  %v5162_v0 = vsel %vm5135_vm2, %v5139_v54, -1e+30 }
 0x2b5   :  { %v5153_v59 = vpop.f32.mrf.mxu1  ;;  %507 = vmax.xlane.f32.xlu0 %v506_v57  ;;  %v612_v60 = vsel %vm499_vm0, %v5151_v58, -inf  ;;  %v1026_v5 = vsel %vm499_vm0, %v5162_v0, -inf }
 0x2b6   :  { %613 = vmax.xlane.f32.xlu1 %v612_v60  ;;  %v5167_v2 = vsel %vm5135_vm2, %v5153_v59, -1e+30  ;;  %v5185_v10 = vsel %vm5111_vm1, %v5153_v59, -1e+30  ;;  %v509_v16 = vsel %vm499_vm0, %v5153_v59, -inf }
 0x2b7   :  { %1021 = vmax.xlane.f32.xlu2 %v1020_v61  ;;  %v1029_v8 = vsel %vm499_vm0, %v5167_v2, -inf  ;;  %v615_v12 = vsel %vm499_vm0, %v5185_v10, -inf }
 0x2bb   :  { %v377_v3 = vpop.f32.mrf.mxu3 }
 0x2bd   :  { %v401_v6 = vpop.f32.mrf.mxu1  ;;  %v5176_v7 = vpop.f32.mrf.mxu0  ;;  %1027 = vmax.xlane.f32.xlu0 %v1026_v5 }
 0x2be   :  { %1030 = vmax.xlane.f32.xlu1 %v1029_v8  ;;  %v518_v27 = vsel %vm499_vm0, %v5176_v7, -inf  ;;  %v5216_v32 = vsel %vm5111_vm1, %v5176_v7, -1e+30 }
 0x2bf   :  { %1024 = vmax.xlane.f32.xlu2 %v1023_v9  ;;  %v624_v36 = vsel %vm499_vm0, %v5216_v32, -inf }
 0x2c3   :  { %v5187_v11 = vpop.f32.mrf.mxu3 }
 0x2c4   :  { %v5205_v20 = vsel %vm5111_vm1, %v5187_v11, -1e+30  ;;  %v5232_v42 = vsel %vm5135_vm2, %v5187_v11, -1e+30  ;;  %v515_v48 = vsel %vm499_vm0, %v5187_v11, -inf }
 0x2c5   :  { %v473_v13 = vpop.f32.mrf.mxu0  ;;  %616 = vmax.xlane.f32.xlu0 %v615_v12  ;;  %v5191_v14 = vpop.f32.mrf.mxu1  ;;  %v621_v30 = vsel %vm499_vm0, %v5205_v20, -inf  ;;  %v1035_v49 = vsel %vm499_vm0, %v5232_v42, -inf }
 0x2c6   :  { %513 = vmax.xlane.f32.xlu1 %v512_v15  ;;  %v521_v41 = vsel %vm499_vm0, %v5191_v14, -inf  ;;  %v5237_v46 = vsel %vm5111_vm1, %v5191_v14, -1e+30 }
 0x2c7   :  { %510 = vmax.xlane.f32.xlu2 %v509_v16  ;;  %v627_v50 = vsel %vm499_vm0, %v5237_v46, -inf }
 0x2cb   :  { %v449_v18 = vpop.f32.mrf.mxu3 }
 0x2cc   :  { %v5260_v18 = vsel %vm5135_vm2, %v5176_v7, -1e+30 }
 0x2cd   :  { %619 = vmax.xlane.f32.xlu0 %v618_v23  ;;  %v497_v25 = vpop.f32.mrf.mxu1 }
 0x2ce   :  { %519 = vmax.xlane.f32.xlu1 %v518_v27 }
 0x2cf   :  { %622 = vmax.xlane.f32.xlu2 %v621_v30 }
 0x2d5   :  { %625 = vmax.xlane.f32.xlu0 %v624_v36 }
 0x2d6   :  { %1033 = vmax.xlane.f32.xlu1 %v1032_v29 }
 0x2d7   :  { %522 = vmax.xlane.f32.xlu2 %v521_v41 }
 0x2dd   :  { %516 = vmax.xlane.f32.xlu0 %v515_v48 }
 0x2de   :  { %1036 = vmax.xlane.f32.xlu1 %v1035_v49 }
 0x2df   :  { %628 = vmax.xlane.f32.xlu2 %v627_v50 }
 0x30a   :  { %v505_v51 = vpop.xlane.xlu1 %504 }
 0x30b   :  { %v525_v57 = vsub.f32 %v5107_v37, %v505_v51 }
 0x30d   :  { %v534_v60 = vmul.f32 1.442695, %v525_v57 }
 0x30f   :  { %4431 = vpow2.f32 %v534_v60 }
 0x312   :  { %v611_v61 = vpop.xlane.xlu1 %610 }
 0x313   :  { %v631_v3 = vsub.f32 %v5118_v40, %v611_v61 }
 0x315   :  { %v5247_v5 = vpop.eup %4431  ;;  %v640_v6 = vmul.f32 1.442695, %v631_v3 }
 0x316   :  { %v551_v8 = vsel %vm499_vm0, %v5247_v5, 0.0 }
 0x317   :  { %4433 = vpow2.f32 %v640_v6  ;;  %552 = vadd.xlane.f32.xlu1 %v551_v8 }
 0x31a   :  { %v502_v9 = vpop.xlane.xlu2 %501 }
 0x31b   :  { %v524_v12 = vsub.f32 %v5122_v44, %v502_v9  ;;  %v1038_v44 = vsel %vm499_vm0, %v5260_v18, -inf }
 0x31d   :  { %v5252_v13 = vpop.eup %4433  ;;  %v532_v15 = vmul.f32 1.442695, %v524_v12 }
 0x31e   :  { %v657_v37 = vsel %vm499_vm0, %v5252_v13, 0.0 }
 0x31f   :  { %4435 = vpow2.f32 %v532_v15  ;;  %658 = vadd.xlane.f32.xlu1 %v657_v37 }
 0x322   :  { %v608_v40 = vpop.xlane.xlu2 %607 }
 0x323   :  { %v630_v16 = vsub.f32 %v5131_v47, %v608_v40 }
 0x325   :  { %v5262_v23 = vpop.eup %4435  ;;  %v638_v25 = vmul.f32 1.442695, %v630_v16 }
 0x326   :  { %v548_v27 = vsel %vm499_vm0, %v5262_v23, 0.0 }
 0x327   :  { %4437 = vpow2.f32 %v638_v25  ;;  %1039 = vmax.xlane.f32.xlu1 %v1038_v44  ;;  %549 = vadd.xlane.f32.xlu2 %v548_v27 }
 0x328   :  { %v508_v30 = vpop.xlane.xlu0 %507 }
 0x329   :  { %v526_v47 = vsub.f32 %v5139_v54, %v508_v30  ;;  %v614_v36 = vpop.xlane.xlu1 %613 }
 0x32a   :  { %v632_v29 = vsub.f32 %v5151_v58, %v614_v36  ;;  %v1022_v41 = vpop.xlane.xlu2 %1021 }
 0x32b   :  { %v536_v48 = vmul.f32 1.442695, %v526_v47  ;;  %v1044_v49 = vsub.f32 %v5144_v56, %v1022_v41 }
 0x32c   :  { %v642_v50 = vmul.f32 1.442695, %v632_v29 }
 0x32d   :  { %v5271_v51 = vpop.eup %4437  ;;  %4439 = vpow2.f32 %v536_v48  ;;  %v1052_v60 = vmul.f32 1.442695, %v1044_v49 }
 0x32e   :  { %4441 = vpow2.f32 %v642_v50  ;;  %v654_v57 = vsel %vm499_vm0, %v5271_v51, 0.0 }
 0x32f   :  { %655 = vadd.xlane.f32.xlu2 %v654_v57  ;;  %4443 = vpow2.f32 %v1052_v60 }
 0x330   :  { %v5275_v61 = vpop.xlane.xlu0 %1027 }
 0x331   :  { %v5277_v54 = vpop.xlane.xlu1 %1030 }
 0x332   :  { %v1025_v3 = vpop.xlane.xlu2 %1024 }
 0x333   :  { %v5279_v58 = vpop.eup %4439  ;;  %v1045_v56 = vsub.f32 %v5172_v4, %v1025_v3 }
 0x334   :  { %v5282_v6 = vpop.eup %4441  ;;  %v554_v8 = vsel %vm499_vm0, %v5279_v58, 0.0 }
 0x335   :  { %555 = vadd.xlane.f32.xlu1 %v554_v8  ;;  %v660_v9 = vsel %vm499_vm0, %v5282_v6, 0.0  ;;  %v1054_v12 = vmul.f32 1.442695, %v1045_v56  ;;  %v5288_v37 = vpop.eup %4443 }
 0x336   :  { %v1068_v30 = vsel %vm499_vm0, %v5288_v37, 0.0 }
 0x337   :  { %661 = vadd.xlane.f32.xlu2 %v660_v9  ;;  %4445 = vpow2.f32 %v1054_v12 }
 0x338   :  { %v617_v15 = vpop.xlane.xlu0 %616 }
 0x339   :  { %v633_v40 = vsub.f32 %v5185_v10, %v617_v15  ;;  %v514_v16 = vpop.xlane.xlu1 %513 }
 0x33a   :  { %v528_v25 = vsub.f32 %v5124_v45, %v514_v16  ;;  %v5292_v4 = vpop.xlane.xlu2 %510 }
 0x33b   :  { %v644_v44 = vmul.f32 1.442695, %v633_v40 }
 0x33c   :  { %v540_v27 = vmul.f32 1.442695, %v528_v25 }
 0x33d   :  { %4447 = vpow2.f32 %v644_v44  ;;  %1069 = vadd.xlane.f32.xlu1 %v1068_v30  ;;  %v5296_v36 = vpop.eup %4445 }
 0x33e   :  { %4449 = vpow2.f32 %v540_v27  ;;  %v1071_v3 = vsel %vm499_vm0, %v5296_v36, 0.0 }
 0x340   :  { %v620_v47 = vpop.xlane.xlu0 %619 }
 0x341   :  { %v634_v29 = vsub.f32 %v5200_v17, %v620_v47  ;;  %v520_v10 = vpop.xlane.xlu1 %519 }
 0x342   :  { %v530_v41 = vsub.f32 %v5176_v7, %v520_v10  ;;  %v623_v45 = vpop.xlane.xlu2 %622 }
 0x343   :  { %v5300_v48 = vpop.eup %4447  ;;  %v646_v49 = vmul.f32 1.442695, %v634_v29  ;;  %v635_v50 = vsub.f32 %v5205_v20, %v623_v45 }
 0x344   :  { %v5303_v57 = vpop.eup %4449  ;;  %v544_v60 = vmul.f32 1.442695, %v530_v41  ;;  %v663_v56 = vsel %vm499_vm0, %v5300_v48, 0.0 }
 0x345   :  { %4451 = vpow2.f32 %v646_v49  ;;  %v648_v17 = vmul.f32 1.442695, %v635_v50  ;;  %1072 = vadd.xlane.f32.xlu1 %v1071_v3  ;;  %664 = vadd.xlane.f32.xlu2 %v663_v56  ;;  %v560_v7 = vsel %vm499_vm0, %v5303_v57, 0.0 }
 0x346   :  { %4453 = vpow2.f32 %v544_v60  ;;  %561 = vadd.xlane.f32.xlu0 %v560_v7 }
 0x347   :  { %4455 = vpow2.f32 %v648_v17  ;;  %v5334_v17 = vsel %vm5135_vm2, %v5191_v14, -1e+30 }
 0x348   :  { %v626_v20 = vpop.xlane.xlu0 %625 }
 0x349   :  { %v636_v8 = vsub.f32 %v5216_v32, %v626_v20  ;;  %v1034_v9 = vpop.xlane.xlu1 %1033 }
 0x34a   :  { %v523_v12 = vpop.xlane.xlu2 %522  ;;  %v1048_v44 = vsub.f32 %v5221_v35, %v1034_v9 }
 0x34b   :  { %v5312_v15 = vpop.eup %4451  ;;  %v650_v40 = vmul.f32 1.442695, %v636_v8  ;;  %v531_v16 = vsub.f32 %v5191_v14, %v523_v12 }
 0x34c   :  { %v5315_v25 = vpop.eup %4453  ;;  %v666_v27 = vsel %vm499_vm0, %v5312_v15, 0.0  ;;  %v1060_v10 = vmul.f32 1.442695, %v1048_v44 }
 0x34d   :  { %v5320_v30 = vpop.eup %4455  ;;  %4457 = vpow2.f32 %v650_v40  ;;  %v546_v47 = vmul.f32 1.442695, %v531_v16  ;;  %667 = vadd.xlane.f32.xlu2 %v666_v27  ;;  %v566_v32 = vsel %vm499_vm0, %v5315_v25, 0.0 }
 0x34e   :  { %567 = vadd.xlane.f32.xlu1 %v566_v32  ;;  %v669_v29 = vsel %vm499_vm0, %v5320_v30, 0.0 }
 0x34f   :  { %4459 = vpow2.f32 %v546_v47  ;;  %670 = vadd.xlane.f32.xlu0 %v669_v29 }
 0x350   :  { %v517_v41 = vpop.xlane.xlu0 %516  ;;  %4461 = vpow2.f32 %v1060_v10 }
 0x351   :  { %v529_v35 = vsub.f32 %v5187_v11, %v517_v41  ;;  %v1037_v45 = vpop.xlane.xlu1 %1036 }
 0x352   :  { %v1049_v49 = vsub.f32 %v5232_v42, %v1037_v45  ;;  %v629_v50 = vpop.xlane.xlu2 %628  ;;  %v1047_v42 = vsub.f32 %v5167_v2, %v5277_v54 }
 0x353   :  { %v5328_v60 = vpop.eup %4457  ;;  %v542_v3 = vmul.f32 1.442695, %v529_v35  ;;  %v637_v56 = vsub.f32 %v5237_v46, %v629_v50  ;;  %v1041_v46 = vsel %vm499_vm0, %v5334_v17, -inf  ;;  %v527_v35 = vsub.f32 %v5153_v59, %v5292_v4 }
 0x354   :  { %v1062_v7 = vmul.f32 1.442695, %v1049_v49  ;;  %v672_v20 = vsel %vm499_vm0, %v5328_v60, 0.0  ;;  %v1058_v9 = vmul.f32 1.442695, %v1047_v42 }
 0x355   :  { %v5338_v11 = vpop.eup %4459  ;;  %4463 = vpow2.f32 %v542_v3  ;;  %673 = vadd.xlane.f32.xlu2 %v672_v20  ;;  %v652_v8 = vmul.f32 1.442695, %v637_v56  ;;  %v538_v45 = vmul.f32 1.442695, %v527_v35  ;;  %v1046_v20 = vsub.f32 %v5162_v0, %v5275_v61 }
 0x356   :  { %4465 = vpow2.f32 %v1062_v7  ;;  %v569_v14 = vsel %vm499_vm0, %v5338_v11, 0.0  ;;  %v5346_v12 = vpop.eup %4461 }
 0x357   :  { %1042 = vmax.xlane.f32.xlu0 %v1041_v46  ;;  %570 = vadd.xlane.f32.xlu1 %v569_v14  ;;  %4467 = vpow2.f32 %v652_v8  ;;  %v1080_v44 = vsel %vm499_vm0, %v5346_v12, 0.0  ;;  %v1056_v59 = vmul.f32 1.442695, %v1046_v20 }
 0x358   :  { %4469 = vpow2.f32 %v1058_v9 }
 0x35b   :  { %v5348_v40 = vpop.eup %4463 }
 0x35c   :  { %v5350_v16 = vpop.eup %4465  ;;  %v563_v2 = vsel %vm499_vm0, %v5348_v40, 0.0 }
 0x35d   :  { %564 = vadd.xlane.f32.xlu2 %v563_v2  ;;  %v1083_v54 = vsel %vm499_vm0, %v5350_v16, 0.0  ;;  %v5358_v27 = vpop.eup %4467 }
 0x35e   :  { %v5360_v47 = vpop.eup %4469  ;;  %v675_v32 = vsel %vm499_vm0, %v5358_v27, 0.0 }
 0x35f   :  { %1081 = vadd.xlane.f32.xlu0 %v1080_v44  ;;  %1084 = vadd.xlane.f32.xlu1 %v1083_v54  ;;  %v1077_v29 = vsel %vm499_vm0, %v5360_v47, 0.0 }
 0x365   :  { %676 = vadd.xlane.f32.xlu2 %v675_v32 }
 0x367   :  { %1078 = vadd.xlane.f32.xlu0 %v1077_v29 }
 0x378   :  { %1299 = vrot.lane.b32.xlu1 %v5011_v38, %s4926_s2 }
 0x37d   :  { %851 = vrot.lane.b32.xlu2 %v5038_v1, %s4918_s26 }
 0x380   :  { %1320 = vrot.lane.b32.xlu1 %v5013_v39, %s4927_s13 }
 0x388   :  { %1414 = vrot.lane.b32.xlu1 %v5028_v55, %s4926_s2 }
 0x38a   :  { %v5374_v10 = vpop.xlane.xlu1 %552 }
 0x390   :  { %1368 = vrot.lane.b32.xlu1 %v5034_v62, %s4926_s2 }
 0x392   :  { %v659_v41 = vpop.xlane.xlu1 %658 }
 0x393   :  { %4471 = vrcp.f32 %v659_v41 }
 0x394   :  { %4473 = vpow2.f32 %v538_v45 }
 0x398   :  { %1343 = vrot.lane.b32.xlu1 %v5019_v43, %s4927_s13 }
 0x399   :  { %v4472_v49 = vpop.eup %4471 }
 0x39a   :  { %v687_v50 = vmul.f32 %v4472_v49, %v5252_v13  ;;  %v1040_v3 = vpop.xlane.xlu1 %1039  ;;  %v5383_v56 = vpop.xlane.xlu2 %549 }
 0x39b   :  { %v1050_v7 = vsub.f32 %v5260_v18, %v1040_v3  ;;  %v5392_v13 = vpop.eup %4473 }
 0x39c   :  { %v695_v42 = vpack.c.bf16 %v687_v50, %v687_v50  ;;  %v557_v0 = vsel %vm499_vm0, %v5392_v13, 0.0 }
 0x39d   :  { %v1064_v46 = vmul.f32 1.442695, %v1050_v7 }
 0x39e   :  { %4276 = vmatmul.msk.bf16.vlgmr.msra.gmra.mxu3 %vm704_vm3, %v695_v42 }
 0x39f   :  { %4475 = vpow2.f32 %v1064_v46  ;;  %908 = vmatpush.bf16.msra.mxu3 %v5085_v24 }
 0x3a0   :  { %1460 = vrot.lane.b32.xlu1 %v5038_v1, %s4926_s2 }
 0x3a2   :  { %v656_v4 = vpop.xlane.xlu2 %655 }
 0x3a3   :  { %4477 = vrcp.f32 %v656_v4 }
 0x3a4   :  { %4479 = vpow2.f32 %v1056_v59 }
 0x3a5   :  { %v5394_v18 = vpop.eup %4475 }
 0x3a6   :  { %558 = vadd.xlane.f32.xlu2 %v557_v0  ;;  %v1086_v61 = vsel %vm499_vm0, %v5394_v18, 0.0 }
 0x3a7   :  { %1087 = vadd.xlane.f32.xlu0 %v1086_v61 }
 0x3a8   :  { %1765 = vrot.lane.b32.xlu1 %v5025_v52, %s4928_s14  ;;  %v556_v45 = vpop.xlane.xlu1 %555 }
 0x3a9   :  { %v4478_v14 = vpop.eup %4477 }
 0x3aa   :  { %v5402_v8 = vpop.eup %4479  ;;  %v686_v9 = vmul.f32 %v4478_v14, %v5271_v51  ;;  %v662_v2 = vpop.xlane.xlu2 %661 }
 0x3ab   :  { %4481 = vrcp.f32 %v662_v2  ;;  %v1074_v44 = vsel %vm499_vm0, %v5402_v8, 0.0 }
 0x3ac   :  { %v694_v54 = vpack.c.bf16 %v686_v9, %v686_v9 }
 0x3ae   :  { %4275 = vmatmul.msk.bf16.vlgmr.msra.gmra.mxu2 %vm704_vm3, %v694_v54  ;;  %1075 = vadd.xlane.f32.xlu2 %v1074_v44 }
 0x3af   :  { %892 = vmatpush.bf16.msra.mxu2 %v5075_v21 }
 0x3b0   :  { %1744 = vrot.lane.b32.xlu1 %v5034_v62, %s4928_s14  ;;  %v5423_v4 = vpop.xlane.xlu1 %1069 }
 0x3b1   :  { %v4482_v32 = vpop.eup %4481 }
 0x3b2   :  { %v688_v29 = vmul.f32 %v4482_v32, %v5282_v6 }
 0x3b4   :  { %v696_v41 = vpack.c.bf16 %v688_v29, %v688_v29 }
 0x3b6   :  { %4277 = vmatmul.msk.bf16.vlgmr.msra.gmra.mxu0 %vm704_vm3, %v696_v41 }
 0x3b7   :  { %924 = vmatpush.bf16.msra.mxu0 %v5099_v31 }
 0x3b8   :  { %v665_v51 = vpop.xlane.xlu2 %664  ;;  %v1073_v54 = vpop.xlane.xlu1 %1072 }
 0x3b9   :  { %v562_v35 = vpop.xlane.xlu0 %561  ;;  %4483 = vrcp.f32 %v665_v51 }
 0x3bb   :  { %1297 = vrot.lane.b32.xlu0 %v5011_v38, %s4927_s13 }
 0x3bf   :  { %v4484_v49 = vpop.eup %4483 }
 0x3c0   :  { %v668_v50 = vpop.xlane.xlu2 %667  ;;  %v689_v3 = vmul.f32 %v4484_v49, %v5300_v48 }
 0x3c1   :  { %4485 = vrcp.f32 %v668_v50 }
 0x3c2   :  { %v671_v7 = vpop.xlane.xlu0 %670  ;;  %v697_v20 = vpack.c.bf16 %v689_v3, %v689_v3 }
 0x3c3   :  { %4487 = vrcp.f32 %v671_v7  ;;  %1412 = vrot.lane.b32.xlu0 %v5028_v55, %s4927_s13 }
 0x3c4   :  { %4278 = vmatmul.msk.bf16.vlgmr.msrb.gmra.mxu1 %vm704_vm3, %v697_v20 }
 0x3c6   :  { %1322 = vrot.lane.b32.xlu2 %v5013_v39, %s4926_s2 }
 0x3c7   :  { %v4486_v6 = vpop.eup %4485 }
 0x3c8   :  { %v690_v42 = vmul.f32 %v4486_v6, %v5312_v15  ;;  %v674_v46 = vpop.xlane.xlu2 %673 }
 0x3c9   :  { %v4488_v59 = vpop.eup %4487  ;;  %4489 = vrcp.f32 %v674_v46 }
 0x3ca   :  { %v698_v48 = vpack.c.bf16 %v690_v42, %v690_v42  ;;  %v691_v0 = vmul.f32 %v4488_v59, %v5320_v30  ;;  %4491 = vrcp.f32 %v5383_v56  ;;  %v1043_v32 = vpop.xlane.xlu0 %1042 }
 0x3cb   :  { %4493 = vrcp.f32 %v5374_v10  ;;  %v1051_v51 = vsub.f32 %v5334_v17, %v1043_v32 }
 0x3cc   :  { %v699_v61 = vpack.c.bf16 %v691_v0, %v691_v0  ;;  %4279 = vmatmul.msk.bf16.vlgmr.msrb.gmra.mxu2 %vm704_vm3, %v698_v48  ;;  %4495 = vrcp.f32 %v556_v45  ;;  %v568_v45 = vpop.xlane.xlu1 %567 }
 0x3cd   :  { %956 = vmatpush.bf16.msrb.mxu2 %v5081_v22  ;;  %v1066_v50 = vmul.f32 1.442695, %v1051_v51 }
 0x3ce   :  { %1391 = vrot.lane.b32.xlu2 %v5025_v52, %s4926_s2  ;;  %4280 = vmatmul.msk.bf16.vlgmr.msrb.gmra.mxu3 %vm704_vm3, %v699_v61 }
 0x3cf   :  { %v4490_v15 = vpop.eup %4489  ;;  %972 = vmatpush.bf16.msrb.mxu3 %v5095_v28 }
 0x3d0   :  { %v692_v14 = vmul.f32 %v4490_v15, %v5328_v60  ;;  %v565_v30 = vpop.xlane.xlu2 %564  ;;  %v4492_v2 = vpop.eup %4491 }
 0x3d1   :  { %v4494_v56 = vpop.eup %4493  ;;  %v580_v44 = vmul.f32 %v4492_v2, %v5262_v23 }
 0x3d2   :  { %v700_v9 = vpack.c.bf16 %v692_v14, %v692_v14  ;;  %v581_v10 = vmul.f32 %v4494_v56, %v5247_v5  ;;  %v4496_v41 = vpop.eup %4495 }
 0x3d3   :  { %v588_v60 = vpack.c.bf16 %v580_v44, %v580_v44  ;;  %v582_v23 = vmul.f32 %v4496_v41, %v5279_v58 }
 0x3d4   :  { %4281 = vmatmul.msk.bf16.vlgmr.msrb.gmra.mxu0 %vm704_vm3, %v700_v9  ;;  %v589_v49 = vpack.c.bf16 %v581_v10, %v581_v10 }
 0x3d5   :  { %988 = vmatpush.bf16.msrb.mxu0 %v5103_v33  ;;  %v590_v7 = vpack.c.bf16 %v582_v23, %v582_v23 }
 0x3d6   :  { %1345 = vrot.lane.b32.xlu2 %v5019_v43, %s4926_s2 }
 0x3d8   :  { %v677_v29 = vpop.xlane.xlu2 %676 }
 0x3d9   :  { %4497 = vrcp.f32 %v677_v29 }
 0x3da   :  { %4499 = vrcp.f32 %v562_v35 }
 0x3db   :  { %4501 = vrcp.f32 %v565_v30  ;;  %v1082_v30 = vpop.xlane.xlu0 %1081 }
 0x3dc   :  { %4283 = vmatmul.msk.bf16.vlgmr.msra.gmra.mxu2 %vm704_vm3, %v588_v60  ;;  %4503 = vpow2.f32 %v1066_v50 }
 0x3dd   :  { %1126 = vmatpush.bf16.msra.mxu2 %v5075_v21  ;;  %4505 = vrcp.f32 %v568_v45 }
 0x3de   :  { %1389 = vrot.lane.b32.xlu2 %v5025_v52, %s4927_s13  ;;  %4284 = vmatmul.msk.bf16.vlgmr.msra.gmra.mxu3 %vm704_vm3, %v589_v49  ;;  %4507 = vrcp.f32 %v5423_v4 }
 0x3df   :  { %v4498_v5 = vpop.eup %4497  ;;  %1142 = vmatpush.bf16.msra.mxu3 %v5085_v24  ;;  %4509 = vrcp.f32 %v1073_v54 }
 0x3e0   :  { %v693_v17 = vmul.f32 %v4498_v5, %v5358_v27  ;;  %v852_v3 = vpop.permute.xlu2 %851  ;;  %v4500_v58 = vpop.eup %4499  ;;  %4511 = vrcp.f32 %v1082_v30 }
 0x3e1   :  { %v5451_v35 = vsel %vm708_vm15, %v852_v3, 0  ;;  %v4502_v20 = vpop.eup %4501  ;;  %v584_v24 = vmul.f32 %v4500_v58, %v5303_v57  ;;  %v571_v27 = vpop.xlane.xlu1 %570 }
 0x3e2   :  { %v701_v21 = vpack.c.bf16 %v693_v17, %v693_v17  ;;  %866 = vmatpush.bf16.msra.mxu1 %v5451_v35  ;;  %v585_v6 = vmul.f32 %v4502_v20, %v5348_v40  ;;  %v5463_v42 = vpop.eup %4503 }
 0x3e3   :  { %v592_v46 = vpack.c.bf16 %v584_v24, %v584_v24  ;;  %v4506_v59 = vpop.eup %4505 }
 0x3e4   :  { %4285 = vmatmul.msk.bf16.vlgmr.msra.gmra.mxu0 %vm704_vm3, %v590_v7  ;;  %v593_v48 = vpack.c.bf16 %v585_v6, %v585_v6  ;;  %v586_v57 = vmul.f32 %v4506_v59, %v5315_v25  ;;  %v4508_v61 = vpop.eup %4507 }
 0x3e5   :  { %1158 = vmatpush.bf16.msra.mxu0 %v5099_v31  ;;  %4282 = vmatmul.msk.bf16.vlgmr.msra.gmra.mxu1 %vm704_vm3, %v701_v21  ;;  %v1089_v31 = vsel %vm499_vm0, %v5463_v42, 0.0  ;;  %v4510_v15 = vpop.eup %4509 }
 0x3e6   :  { %940 = vmatpush.bf16.msrb.mxu1 %v5090_v26  ;;  %1366 = vrot.lane.b32.xlu2 %v5034_v62, %s4927_s13  ;;  %v594_v0 = vpack.c.bf16 %v586_v57, %v586_v57  ;;  %v1101_v25 = vmul.f32 %v4510_v15, %v5296_v36 }
 0x3e8   :  { %v1109_v9 = vpack.c.bf16 %v1101_v25, %v1101_v25 }
 0x3e9   :  { %v1085_v40 = vpop.xlane.xlu1 %1084 }
 0x3ea   :  { %1004 = vmatpush.bf16.msra.mxu1 %v5451_v35  ;;  %4513 = vrcp.f32 %v1085_v40 }
 0x3ec   :  { %4287 = vmatmul.msk.bf16.vlgmr.msrb.gmra.mxu2 %vm704_vm3, %v592_v46 }
 0x3ed   :  { %1190 = vmatpush.bf16.msrb.mxu2 %v5081_v22  ;;  %1090 = vadd.xlane.f32.xlu0 %v1089_v31  ;;  %v1100_v22 = vmul.f32 %v4508_v61, %v5288_v37 }
 0x3ee   :  { %1435 = vrot.lane.b32.xlu2 %v5036_v63, %s4927_s13  ;;  %4288 = vmatmul.msk.bf16.vlgmr.msrb.gmra.mxu3 %vm704_vm3, %v593_v48 }
 0x3ef   :  { %1206 = vmatpush.bf16.msrb.mxu3 %v5095_v28  ;;  %v1108_v14 = vpack.c.bf16 %v1100_v22, %v1100_v22 }
 0x3f1   :  { %v1300_v4 = vpop.permute.xlu1 %1299 }
 0x3f2   :  { %v1305_v28 = vsel %vm311_vm14, %v1300_v4, 0 }
 0x3f4   :  { %4289 = vmatmul.msk.bf16.vlgmr.msrb.gmra.mxu0 %vm704_vm3, %v594_v0 }
 0x3f5   :  { %1222 = vmatpush.bf16.msrb.mxu0 %v5103_v33  ;;  %v4512_v33 = vpop.eup %4511 }
 0x3f6   :  { %1681 = vrot.lane.b32.xlu2 %v5011_v38, %s4928_s14  ;;  %v4514_v37 = vpop.eup %4513  ;;  %v1104_v36 = vmul.f32 %v4512_v33, %v5346_v12  ;;  %v1079_v12 = vpop.xlane.xlu0 %1078 }
 0x3f7   :  { %v1105_v2 = vmul.f32 %v4514_v37, %v5350_v16 }
 0x3f8   :  { %v1112_v54 = vpack.c.bf16 %v1104_v36, %v1104_v36 }
 0x3f9   :  { %v1113_v56 = vpack.c.bf16 %v1105_v2, %v1105_v2  ;;  %v1321_v10 = vpop.permute.xlu1 %1320  ;;  %v258_v2 = vshrl.u32 %v242_v34, 7 }
 0x3fc   :  { %4291 = vmatmul.msk.bf16.vlgmr.msra.gmra.mxu2 %vm704_vm3, %v1108_v14 }
 0x3fd   :  { %1314 = vmatpush.bf16.xpose.msra.mxu2 %v1305_v28 }
 0x3fe   :  { %1723 = vrot.lane.b32.xlu2 %v5019_v43, %s4928_s14  ;;  %4292 = vmatmul.msk.bf16.vlgmr.msra.gmra.mxu3 %vm704_vm3, %v1109_v9 }
 0x401   :  { %1437 = vrot.lane.b32.xlu0 %v5036_v63, %s4926_s2  ;;  %v1415_v45 = vpop.permute.xlu1 %1414 }
 0x409   :  { %1458 = vrot.lane.b32.xlu0 %v5038_v1, %s4927_s13  ;;  %v1369_v48 = vpop.permute.xlu1 %1368 }
 0x40a   :  { %v1374_v4 = vsel %vm311_vm14, %v1369_v48, 0 }
 0x40c   :  { %4295 = vmatmul.msk.bf16.vlgmr.msrb.gmra.mxu2 %vm704_vm3, %v1112_v54 }
 0x40e   :  { %4296 = vmatmul.msk.bf16.vlgmr.msrb.gmra.mxu3 %vm704_vm3, %v1113_v56 }
 0x411   :  { %1702 = vrot.lane.b32.xlu0 %v5013_v39, %s4928_s14 }
 0x419   :  { %v559_v44 = vpop.xlane.xlu2 %558  ;;  %1786 = vrot.lane.b32.xlu0 %v5028_v55, %s4928_s14 }
 0x41a   :  { %4515 = vrcp.f32 %v559_v44  ;;  %v1088_v51 = vpop.xlane.xlu0 %1087 }
 0x420   :  { %v4516_v16 = vpop.eup %4515 }
 0x421   :  { %v583_v32 = vmul.f32 %v4516_v16, %v5392_v13  ;;  %v5499_v29 = vpop.f32.mrf.mxu3  ;;  %v1076_v60 = vpop.xlane.xlu2 %1075  ;;  %v1420_v13 = vsel %vm311_vm14, %v1415_v45, 0 }
 0x422   :  { %4517 = vrcp.f32 %v1076_v60 }
 0x423   :  { %v591_v41 = vpack.c.bf16 %v583_v32, %v583_v32  ;;  %4519 = vrcp.f32 %v571_v27  ;;  %v263_v32 = vand.u32 1, %v258_v2 }
 0x424   :  { %4521 = vrcp.f32 %v1088_v51 }
 0x425   :  { %4286 = vmatmul.msk.bf16.vlgmr.msrb.gmra.mxu1 %vm704_vm3, %v591_v41  ;;  %4523 = vrcp.f32 %v1079_v12  ;;  %vm5539_vm4 = vcmp.eq.s32.totalorder %v263_v32, 0 }
 0x426   :  { %1174 = vmatpush.bf16.msrb.mxu1 %v5090_v26 }
 0x428   :  { %v4518_v49 = vpop.eup %4517 }
 0x429   :  { %v1102_v23 = vmul.f32 %v4518_v49, %v5402_v8  ;;  %v744_v5 = vpop.f32.mrf.mxu3  ;;  %v1323_v50 = vpop.permute.xlu2 %1322 }
 0x42a   :  { %v1328_v17 = vsel %vm311_vm14, %v1323_v50, 0  ;;  %v4520_v7 = vpop.eup %4519 }
 0x42b   :  { %v1110_v3 = vpack.c.bf16 %v1102_v23, %v1102_v23  ;;  %1337 = vmatpush.bf16.xpose.msra.mxu3 %v1328_v17  ;;  %v587_v26 = vmul.f32 %v4520_v7, %v5338_v11  ;;  %v4522_v6 = vpop.eup %4521 }
 0x42c   :  { %v1106_v46 = vmul.f32 %v4522_v6, %v5394_v18  ;;  %v4524_v0 = vpop.eup %4523 }
 0x42d   :  { %4293 = vmatmul.msk.bf16.vlgmr.msra.gmra.mxu0 %vm704_vm3, %v1110_v3  ;;  %v1298_v21 = vpop.permute.xlu0 %1297  ;;  %v595_v24 = vpack.c.bf16 %v587_v26, %v587_v26  ;;  %v1103_v61 = vmul.f32 %v4524_v0, %v5360_v47 }
 0x42e   :  { %4299 = vmatmul.msk.bf16.vlgmr.msra.gmra.mxu2 %vm311_vm14, %v1298_v21  ;;  %v1114_v57 = vpack.c.bf16 %v1106_v46, %v1106_v46 }
 0x42f   :  { %v1111_v18 = vpack.c.bf16 %v1103_v61, %v1103_v61 }
 0x431   :  { %v5509_v58 = vpop.f32.mrf.mxu2  ;;  %v1392_v8 = vpop.permute.xlu2 %1391 }
 0x432   :  { %v1397_v20 = vsel %vm311_vm14, %v1392_v8, 0  ;;  %4300 = vmatmul.msk.bf16.vlgmr.msra.gmra.mxu3 %vm311_vm14, %v1321_v10 }
 0x433   :  { %1429 = vmatpush.bf16.xpose.msrb.mxu3 %v1420_v13  ;;  %v763_v27 = vpop.f32.mrf.mxu0  ;;  %1406 = vmatpush.bf16.xpose.msrb.mxu2 %v1397_v20 }
 0x434   :  { %v876_v51 = vsel %vm5539_vm4, %v763_v27, 0.0 }
 0x435   :  { %4290 = vmatmul.msk.bf16.vlgmr.msra.gmra.mxu1 %vm704_vm3, %v595_v24  ;;  %v1413_v15 = vpop.permute.xlu0 %1412 }
 0x436   :  { %1238 = vmatpush.bf16.msra.mxu1 %v5451_v35  ;;  %v1344_v35 = vpop.permute.xlu1 %1343 }
 0x439   :  { %v723_v59 = vpop.f32.mrf.mxu2  ;;  %v1346_v11 = vpop.permute.xlu2 %1345 }
 0x43a   :  { %v1351_v31 = vsel %vm311_vm14, %v1346_v11, 0 }
 0x43b   :  { %v765_v40 = vpop.f32.mrf.mxu0  ;;  %1360 = vmatpush.bf16.xpose.msra.mxu0 %v1351_v31 }
 0x43d   :  { %4297 = vmatmul.msk.bf16.vlgmr.msrb.gmra.mxu0 %vm704_vm3, %v1114_v57  ;;  %v289_v57 = vand.u32 3, %v258_v2 }
 0x43e   :  { %v1461_v47 = vpop.permute.xlu1 %1460 }
 0x43f   :  { %v1466_v8 = vsel %vm311_vm14, %v1461_v47, 0  ;;  %vm5567_vm5 = vcmp.eq.s32.totalorder %v289_v57, 0 }
 0x441   :  { %v1390_v22 = vpop.permute.xlu2 %1389  ;;  %v5519_v25 = vpop.f32.mrf.mxu1 }
 0x442   :  { %4303 = vmatmul.msk.bf16.vlgmr.msrb.gmra.mxu2 %vm311_vm14, %v1390_v22  ;;  %4304 = vmatmul.msk.bf16.vlgmr.msrb.gmra.mxu3 %vm311_vm14, %v1413_v15 }
 0x445   :  { %4294 = vmatmul.msk.bf16.vlgmr.msrb.gmra.mxu1 %vm704_vm3, %v1111_v18 }
 0x446   :  { %1383 = vmatpush.bf16.xpose.msrb.mxu1 %v1374_v4  ;;  %v1766_v54 = vpop.permute.xlu1 %1765 }
 0x447   :  { %v5535_v16 = vsel %vm708_vm15, %v1766_v54, 0 }
 0x449   :  { %v1367_v14 = vpop.permute.xlu2 %1366  ;;  %v786_v30 = vpop.f32.mrf.mxu1 }
 0x44d   :  { %4301 = vmatmul.msk.bf16.vlgmr.msra.gmra.mxu0 %vm311_vm14, %v1344_v35  ;;  %v874_v35 = vsel %vm5539_vm4, %v5509_v58, 0.0 }
 0x44e   :  { %v1745_v40 = vpop.permute.xlu1 %1744 }
 0x44f   :  { %v5526_v9 = vpop.f32.mrf.mxu2  ;;  %v5562_v22 = vsel %vm708_vm15, %v1745_v40, 0 }
 0x451   :  { %v847_v28 = vpop.f32.mrf.mxu0  ;;  %v1436_v33 = vpop.permute.xlu2 %1435 }
 0x452   :  { %v5528_v37 = vpop.f32.mrf.mxu3  ;;  %v880_v24 = vsel %vm5539_vm4, %v847_v28, 0.0 }
 0x457   :  { %v807_v36 = vpop.f32.mrf.mxu2 }
 0x459   :  { %v849_v56 = vpop.f32.mrf.mxu0  ;;  %v1682_v44 = vpop.permute.xlu2 %1681 }
 0x45a   :  { %v5532_v12 = vsel %vm708_vm15, %v1682_v44, 0  ;;  %v828_v10 = vpop.f32.mrf.mxu3 }
 0x45b   :  { %1696 = vmatpush.bf16.msra.mxu2 %v5532_v12 }
 0x45f   :  { %1780 = vmatpush.bf16.msrb.mxu2 %v5535_v16  ;;  %v894_v60 = vpop.f32.mrf.mxu2 }
 0x460   :  { %v1091_v34 = vpop.xlane.xlu0 %1090  ;;  %v895_v4 = vadd.f32 %v894_v60, %v874_v35 }
 0x461   :  { %4525 = vrcp.f32 %v1091_v34  ;;  %v926_v49 = vpop.f32.mrf.mxu0  ;;  %v1724_v6 = vpop.permute.xlu2 %1723  ;;  %v878_v34 = vsel %vm5539_vm4, %v5526_v9, 0.0 }
 0x462   :  { %v5545_v45 = vadd.f32 %v926_v49, %v876_v51  ;;  %v910_v23 = vpop.f32.mrf.mxu3  ;;  %v5547_v5 = vpop.f32.mrf.mxu1  ;;  %v5558_v48 = vsel %vm708_vm15, %v1724_v6, 0 }
 0x467   :  { %v4526_v50 = vpop.eup %4525  ;;  %v896_v17 = vpop.f32.mrf.mxu2 }
 0x468   :  { %v1107_v13 = vmul.f32 %v4526_v50, %v5463_v42  ;;  %v879_v50 = vsel %vm5539_vm4, %v5528_v37, 0.0 }
 0x469   :  { %v928_v3 = vpop.f32.mrf.mxu0 }
 0x46a   :  { %v1115_v7 = vpack.c.bf16 %v1107_v13, %v1107_v13  ;;  %v912_v21 = vpop.f32.mrf.mxu3  ;;  %v870_v26 = vpop.f32.mrf.mxu1 }
 0x46c   :  { %4298 = vmatmul.msk.bf16.vlgmr.msra.gmra.mxu1 %vm704_vm3, %v1115_v7 }
 0x46d   :  { %1475 = vmatpush.bf16.xpose.msra.mxu1 %v1466_v8 }
 0x46f   :  { %v958_v20 = vpop.f32.mrf.mxu2 }
 0x470   :  { %v959_v51 = vadd.f32 %v958_v20, %v878_v34 }
 0x471   :  { %v990_v27 = vpop.f32.mrf.mxu0 }
 0x472   :  { %v974_v46 = vpop.f32.mrf.mxu3  ;;  %v5554_v59 = vadd.f32 %v990_v27, %v880_v24 }
 0x473   :  { %v1438_v11 = vpop.permute.xlu0 %1437  ;;  %v975_v13 = vadd.f32 %v974_v46, %v879_v50 }
 0x474   :  { %v1443_v42 = vsel %vm311_vm14, %v1438_v11, 0 }
 0x475   :  { %1452 = vmatpush.bf16.xpose.msrb.mxu0 %v1443_v42 }
 0x477   :  { %v960_v31 = vpop.f32.mrf.mxu2 }
 0x479   :  { %v992_v0 = vpop.f32.mrf.mxu0 }
 0x47a   :  { %v976_v61 = vpop.f32.mrf.mxu3 }
 0x47b   :  { %v1459_v15 = vpop.permute.xlu0 %1458 }
 0x47c   :  { %4302 = vmatmul.msk.bf16.vlgmr.msrb.gmra.mxu1 %vm311_vm14, %v1367_v14  ;;  %4305 = vmatmul.msk.bf16.vlgmr.msrb.gmra.mxu0 %vm311_vm14, %v1436_v33  ;;  %v875_v14 = vsel %vm5539_vm4, %v5499_v29, 0.0 }
 0x47d   :  { %1738 = vmatpush.bf16.msra.mxu0 %v5558_v48  ;;  %1759 = vmatpush.bf16.msrb.mxu1 %v5562_v22  ;;  %v911_v33 = vadd.f32 %v910_v23, %v875_v14 }
 0x47f   :  { %v1128_v30 = vpop.f32.mrf.mxu2 }
 0x480   :  { %v1246_v47 = vsel %vm5567_vm5, %v1128_v30, 0.0 }
 0x481   :  { %v1254_v28 = vadd.f32 %v1246_v47, %v895_v4  ;;  %v877_v4 = vsel %vm5539_vm4, %v5519_v25, 0.0 }
 0x482   :  { %v1144_v36 = vpop.f32.mrf.mxu3 }
 0x483   :  { %1270 = vst [vmem:[#allocation1] ss:$2 sm:$0xff] %v1254_v28  ;;  %v1247_v2 = vsel %vm5567_vm5, %v1144_v36, 0.0  ;;  %v1703_v54 = vpop.permute.xlu0 %1702 }
 0x484   :  { %v1255_v56 = vadd.f32 %v1247_v2, %v911_v33  ;;  %v5582_v58 = vsel %vm708_vm15, %v1703_v54, 0 }
 0x485   :  { %1717 = vmatpush.bf16.msra.mxu3 %v5582_v58 }
 0x486   :  { %1272 = vst [vmem:[#allocation1 + $0x1] ss:$2 sm:$0xff] %v1255_v56 }
 0x487   :  { %v1130_v44 = vpop.f32.mrf.mxu2 }
 0x48a   :  { %v1146_v10 = vpop.f32.mrf.mxu3 }
 0x48b   :  { %v1787_v32 = vpop.permute.xlu0 %1786 }
 0x48c   :  { %v5586_v29 = vsel %vm708_vm15, %v1787_v32, 0  ;;  %4306 = vmatmul.msk.bf16.vlgmr.msra.gmra.mxu1 %vm311_vm14, %v1459_v15 }
 0x48d   :  { %1801 = vmatpush.bf16.msrb.mxu3 %v5586_v29  ;;  %v1285_v60 = vld.sshfl [vmem:[#allocation1] sm:$0xff pattern:$0x75316420] }
 0x48e   :  { %1293 = vst.msk [vmem:[#allocation8] sm:$0xff] %vm311_vm14, %v1285_v60 }
 0x48f   :  { %v1192_v49 = vpop.f32.mrf.mxu2 }
 0x490   :  { %v1250_v23 = vsel %vm5567_vm5, %v1192_v49, 0.0 }
 0x491   :  { %v1258_v17 = vadd.f32 %v1250_v23, %v959_v51 }
 0x492   :  { %v1208_v3 = vpop.f32.mrf.mxu3 }
 0x493   :  { %1278 = vst [vmem:[#allocation1 + $0x20] ss:$2 sm:$0xff] %v1258_v17  ;;  %v1251_v7 = vsel %vm5567_vm5, %v1208_v3, 0.0  ;;  %v881_v17 = vsel %vm5539_vm4, %v5547_v5, 0.0 }
 0x494   :  { %v1259_v21 = vadd.f32 %v1251_v7, %v975_v13 }
 0x496   :  { %1280 = vst [vmem:[#allocation1 + $0x21] ss:$2 sm:$0xff] %v1259_v21 }
 0x497   :  { %v1194_v9 = vpop.f32.mrf.mxu2 }
 0x49a   :  { %v1210_v26 = vpop.f32.mrf.mxu3 }
 0x49d   :  { %v1287_v8 = vld.sshfl [vmem:[#allocation1 + $0x20] sm:$0xff pattern:$0x75316420] }
 0x49e   :  { %1295 = vst.msk [vmem:[#allocation8 + $0x10] sm:$0xff] %vm311_vm14, %v1287_v8 }
 0x4a2   :  { %v942_v20 = vpop.f32.mrf.mxu1 }
 0x4a3   :  { %v943_v30 = vadd.f32 %v942_v20, %v877_v4 }
 0x4aa   :  { %v944_v24 = vpop.f32.mrf.mxu1  ;;  %v1160_v27 = vpop.f32.mrf.mxu0 }
 0x4ab   :  { %v1248_v37 = vsel %vm5567_vm5, %v1160_v27, 0.0 }
 0x4ac   :  { %v1256_v6 = vadd.f32 %v1248_v37, %v5545_v45 }
 0x4ae   :  { %1274 = vst [vmem:[#allocation1 + $0x10] ss:$2 sm:$0xff] %v1256_v6 }
 0x4b1   :  { %v5605_v46 = vpop.f32.mrf.mxu2 }
 0x4b2   :  { %v1006_v11 = vpop.f32.mrf.mxu1  ;;  %v1162_v42 = vpop.f32.mrf.mxu0  ;;  %v1481_v31 = vsel %vm499_vm0, %v5605_v46, -inf  ;;  %v5638_v34 = vsel %vm5111_vm1, %v5605_v46, -1e+30  ;;  %v5645_v23 = vsel %vm5135_vm2, %v5605_v46, -1e+30 }
 0x4b3   :  { %1482 = vmax.xlane.f32.xlu1 %v1481_v31  ;;  %v1585_v49 = vsel %vm499_vm0, %v5638_v34, -inf  ;;  %v1993_v50 = vsel %vm499_vm0, %v5645_v23, -inf  ;;  %v1007_v13 = vadd.f32 %v1006_v11, %v881_v17 }
 0x4b5   :  { %v5609_v57 = vpop.f32.mrf.mxu3 }
 0x4b6   :  { %v1484_v42 = vsel %vm499_vm0, %v5609_v57, -inf }
 0x4b9   :  { %v1318_v40 = vpop.f32.mrf.mxu2 }
 0x4ba   :  { %v1008_v0 = vpop.f32.mrf.mxu1  ;;  %v1224_v61 = vpop.f32.mrf.mxu0  ;;  %v5682_v40 = vsel %vm5111_vm1, %v5609_v57, -1e+30 }
 0x4bb   :  { %v1252_v15 = vsel %vm5567_vm5, %v1224_v61, 0.0  ;;  %v1588_v61 = vsel %vm499_vm0, %v5682_v40, -inf }
 0x4bc   :  { %v1260_v35 = vadd.f32 %v1252_v15, %v5554_v59 }
 0x4bd   :  { %v1341_v45 = vpop.f32.mrf.mxu3 }
 0x4be   :  { %1282 = vst [vmem:[#allocation1 + $0x30] ss:$2 sm:$0xff] %v1260_v35 }
 0x4c2   :  { %v1176_v47 = vpop.f32.mrf.mxu1  ;;  %v1226_v14 = vpop.f32.mrf.mxu0 }
 0x4c3   :  { %v1249_v28 = vsel %vm5567_vm5, %v1176_v47, 0.0 }
 0x4c4   :  { %v1257_v33 = vadd.f32 %v1249_v28, %v943_v30 }
 0x4c5   :  { %v5619_v36 = vpop.f32.mrf.mxu2  ;;  %v5621_v2 = vpop.f32.mrf.mxu3 }
 0x4c6   :  { %1276 = vst [vmem:[#allocation1 + $0x11] ss:$2 sm:$0xff] %v1257_v33  ;;  %v5698_v45 = vsel %vm5111_vm1, %v5619_v36, -1e+30  ;;  %v1493_v28 = vsel %vm499_vm0, %v5619_v36, -inf }
 0x4c7   :  { %v1597_v47 = vsel %vm499_vm0, %v5698_v45, -inf }
 0x4ca   :  { %v1178_v54 = vpop.f32.mrf.mxu1  ;;  %v5623_v59 = vpop.f32.mrf.mxu0 }
 0x4cb   :  { %v1487_v56 = vsel %vm499_vm0, %v5623_v59, -inf  ;;  %v5630_v25 = vsel %vm5111_vm1, %v5623_v59, -1e+30  ;;  %v5693_v35 = vsel %vm5135_vm2, %v5623_v59, -1e+30 }
 0x4cc   :  { %1488 = vmax.xlane.f32.xlu1 %v1487_v56  ;;  %v1591_v44 = vsel %vm499_vm0, %v5630_v25, -inf  ;;  %v1999_v30 = vsel %vm499_vm0, %v5693_v35, -inf  ;;  %v5716_v54 = vsel %vm5135_vm2, %v5609_v57, -1e+30 }
 0x4cd   :  { %1592 = vmax.xlane.f32.xlu2 %v1591_v44  ;;  %v1410_v10 = vpop.f32.mrf.mxu2  ;;  %v1433_v32 = vpop.f32.mrf.mxu3  ;;  %v1286_v60 = vld.sshfl [vmem:[#allocation1 + $0x10] sm:$0xff pattern:$0x75316420]  ;;  %v1996_v56 = vsel %vm499_vm0, %v5716_v54, -inf  ;;  %v5723_v44 = vsel %vm5135_vm2, %v5619_v36, -1e+30 }
 0x4ce   :  { %1294 = vst.msk [vmem:[#allocation8 + $0x8] sm:$0xff] %vm311_vm14, %v1286_v60  ;;  %v2005_v10 = vsel %vm499_vm0, %v5723_v44, -inf }
 0x4d2   :  { %v1364_v51 = vpop.f32.mrf.mxu0 }
 0x4d4   :  { %1586 = vmax.xlane.f32.xlu1 %v1585_v49 }
 0x4dc   :  { %1994 = vmax.xlane.f32.xlu1 %v1993_v50  ;;  %v1496_v50 = vsel %vm499_vm0, %v5621_v2, -inf }
 0x4e9   :  { %v1240_v3 = vpop.f32.mrf.mxu1 }
 0x4ea   :  { %v1253_v7 = vsel %vm5567_vm5, %v1240_v3, 0.0 }
 0x4eb   :  { %v1261_v21 = vadd.f32 %v1253_v7, %v1007_v13  ;;  %v5746_v7 = vsel %vm5111_vm1, %v5621_v2, -1e+30 }
 0x4ed   :  { %1284 = vst [vmem:[#allocation1 + $0x31] ss:$2 sm:$0xff] %v1261_v21  ;;  %v1600_v21 = vsel %vm499_vm0, %v5746_v7, -inf }
 0x4f1   :  { %v1242_v9 = vpop.f32.mrf.mxu1 }
 0x4f4   :  { %v1288_v26 = vld.sshfl [vmem:[#allocation1 + $0x30] sm:$0xff pattern:$0x75316420] }
 0x4f5   :  { %1807 = vrot.lane.b32.xlu1 %v5036_v63, %s4928_s14  ;;  %1296 = vst.msk [vmem:[#allocation8 + $0x18] sm:$0xff] %vm311_vm14, %v1288_v26 }
 0x4f9   :  { %v5657_v8 = vpop.f32.mrf.mxu1  ;;  %v5659_v20 = vpop.f32.mrf.mxu0 }
 0x4fa   :  { %v1490_v5 = vsel %vm499_vm0, %v5657_v8, -inf  ;;  %v5666_v24 = vsel %vm5111_vm1, %v5657_v8, -1e+30  ;;  %v5673_v37 = vsel %vm5135_vm2, %v5657_v8, -1e+30  ;;  %v1499_v15 = vsel %vm499_vm0, %v5659_v20, -inf }
 0x4fb   :  { %1491 = vmax.xlane.f32.xlu2 %v1490_v5  ;;  %v1594_v27 = vsel %vm499_vm0, %v5666_v24, -inf  ;;  %v2002_v31 = vsel %vm499_vm0, %v5673_v37, -inf  ;;  %v5707_v14 = vsel %vm5111_vm1, %v5659_v20, -1e+30  ;;  %v5753_v9 = vsel %vm5135_vm2, %v5659_v20, -1e+30 }
 0x4fc   :  { %1595 = vmax.xlane.f32.xlu0 %v1594_v27  ;;  %v1603_v33 = vsel %vm499_vm0, %v5707_v14, -inf  ;;  %v2011_v26 = vsel %vm499_vm0, %v5753_v9, -inf  ;;  %v5760_v5 = vsel %vm5135_vm2, %v5621_v2, -1e+30 }
 0x4fd   :  { %v2008_v27 = vsel %vm499_vm0, %v5760_v5, -inf }
 0x501   :  { %v1387_v6 = vpop.f32.mrf.mxu1  ;;  %v1456_v11 = vpop.f32.mrf.mxu0 }
 0x503   :  { %1485 = vmax.xlane.f32.xlu2 %v1484_v42 }
 0x504   :  { %2003 = vmax.xlane.f32.xlu0 %v2002_v31 }
 0x509   :  { %v5684_v0 = vpop.f32.mrf.mxu1 }
 0x50a   :  { %v1502_v60 = vsel %vm499_vm0, %v5684_v0, -inf  ;;  %v5735_v17 = vsel %vm5111_vm1, %v5684_v0, -1e+30  ;;  %v5767_v11 = vsel %vm5135_vm2, %v5684_v0, -1e+30 }
 0x50b   :  { %1589 = vmax.xlane.f32.xlu2 %v1588_v61  ;;  %v1606_v13 = vsel %vm499_vm0, %v5735_v17, -inf  ;;  %v2014_v61 = vsel %vm499_vm0, %v5767_v11, -inf }
 0x50c   :  { %1500 = vmax.xlane.f32.xlu0 %v1499_v15 }
 0x511   :  { %v1479_v4 = vpop.f32.mrf.mxu1 }
 0x513   :  { %2000 = vmax.xlane.f32.xlu2 %v1999_v30 }
 0x514   :  { %1598 = vmax.xlane.f32.xlu0 %v1597_v47 }
 0x51b   :  { %1494 = vmax.xlane.f32.xlu2 %v1493_v28 }
 0x51c   :  { %1604 = vmax.xlane.f32.xlu0 %v1603_v33 }
 0x51f   :  { %1997 = vmax.xlane.f32.xlu1 %v1996_v56 }
 0x524   :  { %2006 = vmax.xlane.f32.xlu0 %v2005_v10 }
 0x526   :  { %v1483_v32 = vpop.xlane.xlu1 %1482 }
 0x527   :  { %v1505_v51 = vsub.f32 %v5605_v46, %v1483_v32  ;;  %1503 = vmax.xlane.f32.xlu1 %v1502_v60 }
 0x529   :  { %v1513_v49 = vmul.f32 1.442695, %v1505_v51 }
 0x52b   :  { %4527 = vpow2.f32 %v1513_v49 }
 0x52c   :  { %1497 = vmax.xlane.f32.xlu0 %v1496_v50 }
 0x52f   :  { %1607 = vmax.xlane.f32.xlu1 %v1606_v13 }
 0x531   :  { %v5739_v3 = vpop.eup %4527 }
 0x532   :  { %v1529_v46 = vsel %vm499_vm0, %v5739_v3, 0.0 }
 0x533   :  { %1530 = vadd.xlane.f32.xlu2 %v1529_v46 }
 0x537   :  { %1601 = vmax.xlane.f32.xlu1 %v1600_v21 }
 0x53b   :  { %2012 = vmax.xlane.f32.xlu2 %v2011_v26 }
 0x53f   :  { %v1489_v6 = vpop.xlane.xlu1 %1488  ;;  %2009 = vmax.xlane.f32.xlu1 %v2008_v27 }
 0x540   :  { %v1593_v42 = vpop.xlane.xlu2 %1592 }
 0x541   :  { %v1611_v31 = vsub.f32 %v5630_v25, %v1593_v42 }
 0x543   :  { %v1621_v15 = vmul.f32 1.442695, %v1611_v31  ;;  %2015 = vmax.xlane.f32.xlu2 %v2014_v61 }
 0x545   :  { %4529 = vpow2.f32 %v1621_v15 }
 0x547   :  { %v1587_v4 = vpop.xlane.xlu1 %1586 }
 0x548   :  { %v1609_v30 = vsub.f32 %v5638_v34, %v1587_v4 }
 0x54a   :  { %v1617_v47 = vmul.f32 1.442695, %v1609_v30 }
 0x54b   :  { %v5773_v28 = vpop.eup %4529 }
 0x54c   :  { %4531 = vpow2.f32 %v1617_v47  ;;  %v1639_v33 = vsel %vm499_vm0, %v5773_v28, 0.0 }
 0x54d   :  { %1640 = vadd.xlane.f32.xlu1 %v1639_v33 }
 0x54f   :  { %v1995_v10 = vpop.xlane.xlu1 %1994 }
 0x552   :  { %v5777_v56 = vpop.eup %4531 }
 0x553   :  { %v1633_v25 = vsel %vm499_vm0, %v5777_v56, 0.0 }
 0x554   :  { %1634 = vadd.xlane.f32.xlu0 %v1633_v25 }
 0x567   :  { %v1808_v32 = vpop.permute.xlu1 %1807 }
 0x568   :  { %v5782_v60 = vsel %vm708_vm15, %v1808_v32, 0  ;;  %1828 = vrot.lane.b32.xlu0 %v5038_v1, %s4928_s14 }
 0x569   :  { %1822 = vmatpush.bf16.msrb.mxu0 %v5782_v60 }
 0x56e   :  { %v1492_v34 = vpop.xlane.xlu2 %1491 }
 0x56f   :  { %v1596_v51 = vpop.xlane.xlu0 %1595 }
 0x570   :  { %v1612_v49 = vsub.f32 %v5666_v24, %v1596_v51 }
 0x572   :  { %v1623_v50 = vmul.f32 1.442695, %v1612_v49 }
 0x574   :  { %4533 = vpow2.f32 %v1623_v50 }
 0x576   :  { %v1486_v13 = vpop.xlane.xlu2 %1485 }
 0x577   :  { %v1506_v46 = vsub.f32 %v5609_v57, %v1486_v13  ;;  %v5789_v21 = vpop.xlane.xlu0 %2003  ;;  %v1507_v57 = vsub.f32 %v5623_v59, %v1489_v6 }
 0x579   :  { %v1515_v26 = vmul.f32 1.442695, %v1506_v46  ;;  %v1517_v47 = vmul.f32 1.442695, %v1507_v57 }
 0x57a   :  { %v5791_v27 = vpop.eup %4533 }
 0x57b   :  { %4535 = vpow2.f32 %v1515_v26  ;;  %v1642_v42 = vsel %vm499_vm0, %v5791_v27, 0.0 }
 0x57c   :  { %1643 = vadd.xlane.f32.xlu1 %v1642_v42 }
 0x57e   :  { %v1590_v31 = vpop.xlane.xlu2 %1589 }
 0x57f   :  { %v1610_v61 = vsub.f32 %v5682_v40, %v1590_v31  ;;  %v5796_v15 = vpop.xlane.xlu0 %1500  ;;  %v1508_v40 = vsub.f32 %v5657_v8, %v1492_v34 }
 0x581   :  { %v5798_v24 = vpop.eup %4535  ;;  %v1619_v4 = vmul.f32 1.442695, %v1610_v61  ;;  %v1519_v6 = vmul.f32 1.442695, %v1508_v40 }
 0x582   :  { %v1532_v30 = vsel %vm499_vm0, %v5798_v24, 0.0 }
 0x583   :  { %4537 = vpow2.f32 %v1619_v4 }
 0x584   :  { %1533 = vadd.xlane.f32.xlu1 %v1532_v30  ;;  %4539 = vpow2.f32 %v1517_v47 }
 0x586   :  { %v5803_v33 = vpop.xlane.xlu2 %2000 }
 0x587   :  { %v1599_v25 = vpop.xlane.xlu0 %1598 }
 0x588   :  { %v1613_v32 = vsub.f32 %v5698_v45, %v1599_v25  ;;  %v2017_v45 = vsub.f32 %v5645_v23, %v1995_v10 }
 0x589   :  { %v5806_v51 = vpop.eup %4537 }
 0x58a   :  { %v1625_v49 = vmul.f32 1.442695, %v1613_v32  ;;  %v1636_v59 = vsel %vm499_vm0, %v5806_v51, 0.0  ;;  %v5811_v46 = vpop.eup %4539  ;;  %v2025_v57 = vmul.f32 1.442695, %v2017_v45 }
 0x58b   :  { %v1535_v61 = vsel %vm499_vm0, %v5811_v46, 0.0 }
 0x58c   :  { %4541 = vpow2.f32 %v1625_v49  ;;  %1637 = vadd.xlane.f32.xlu1 %v1636_v59 }
 0x58d   :  { %4543 = vpow2.f32 %v1519_v6 }
 0x58e   :  { %v1495_v50 = vpop.xlane.xlu2 %1494 }
 0x58f   :  { %v1605_v13 = vpop.xlane.xlu0 %1604  ;;  %v1509_v8 = vsub.f32 %v5619_v36, %v1495_v50 }
 0x590   :  { %v1615_v26 = vsub.f32 %v5707_v14, %v1605_v13 }
 0x591   :  { %v1521_v14 = vmul.f32 1.442695, %v1509_v8 }
 0x592   :  { %v5815_v42 = vpop.eup %4541  ;;  %v1629_v34 = vmul.f32 1.442695, %v1615_v26  ;;  %v1998_v31 = vpop.xlane.xlu1 %1997 }
 0x593   :  { %v1645_v4 = vsel %vm499_vm0, %v5815_v42, 0.0  ;;  %v5822_v23 = vpop.eup %4543  ;;  %v2018_v10 = vsub.f32 %v5716_v54, %v1998_v31  ;;  %v2020_v54 = vsub.f32 %v5673_v37, %v5789_v21 }
 0x594   :  { %4545 = vpow2.f32 %v1629_v34  ;;  %1536 = vadd.xlane.f32.xlu1 %v1535_v61  ;;  %1646 = vadd.xlane.f32.xlu2 %v1645_v4  ;;  %v1538_v32 = vsel %vm499_vm0, %v5822_v23, 0.0 }
 0x595   :  { %4547 = vpow2.f32 %v2025_v57  ;;  %v2027_v49 = vmul.f32 1.442695, %v2018_v10  ;;  %v2031_v8 = vmul.f32 1.442695, %v2020_v54 }
 0x596   :  { %4549 = vpow2.f32 %v1521_v14 }
 0x597   :  { %v2007_v30 = vpop.xlane.xlu0 %2006  ;;  %4551 = vpow2.f32 %v2027_v49 }
 0x598   :  { %v2021_v47 = vsub.f32 %v5723_v44, %v2007_v30 }
 0x59a   :  { %v5825_v36 = vpop.eup %4545  ;;  %v1504_v25 = vpop.xlane.xlu1 %1503  ;;  %v2033_v59 = vmul.f32 1.442695, %v2021_v47 }
 0x59b   :  { %v1651_v40 = vsel %vm499_vm0, %v5825_v36, 0.0  ;;  %v5832_v6 = vpop.eup %4547 }
 0x59c   :  { %1539 = vadd.xlane.f32.xlu2 %v1538_v32  ;;  %1652 = vadd.xlane.f32.xlu0 %v1651_v40  ;;  %v5834_v50 = vpop.eup %4549  ;;  %4553 = vpow2.f32 %v2033_v59  ;;  %v2041_v26 = vsel %vm499_vm0, %v5832_v6, 0.0 }
 0x59d   :  { %v1541_v45 = vsel %vm499_vm0, %v5834_v50, 0.0  ;;  %v5845_v61 = vpop.eup %4551  ;;  %4555 = vpow2.f32 %v2031_v8 }
 0x59e   :  { %v2044_v21 = vsel %vm499_vm0, %v5845_v61, 0.0 }
 0x59f   :  { %v1498_v47 = vpop.xlane.xlu0 %1497 }
 0x5a2   :  { %v1608_v44 = vpop.xlane.xlu1 %1607  ;;  %v5847_v37 = vpop.eup %4553 }
 0x5a3   :  { %v1616_v13 = vsub.f32 %v5735_v17, %v1608_v44  ;;  %v1511_v17 = vsub.f32 %v5659_v20, %v5796_v15  ;;  %v2053_v4 = vsel %vm499_vm0, %v5847_v37, 0.0  ;;  %v5857_v10 = vpop.eup %4555  ;;  %v1510_v15 = vsub.f32 %v5621_v2, %v1498_v47 }
 0x5a4   :  { %2042 = vadd.xlane.f32.xlu2 %v2041_v26  ;;  %1542 = vadd.xlane.f32.xlu0 %v1541_v45  ;;  %v2050_v59 = vsel %vm499_vm0, %v5857_v10, 0.0  ;;  %v1512_v26 = vsub.f32 %v5684_v0, %v1504_v25 }
 0x5a5   :  { %v1631_v34 = vmul.f32 1.442695, %v1616_v13  ;;  %v1525_v57 = vmul.f32 1.442695, %v1511_v17  ;;  %v1523_v54 = vmul.f32 1.442695, %v1510_v15 }
 0x5a6   :  { %v5843_v31 = vpop.xlane.xlu2 %1530  ;;  %v1527_v8 = vmul.f32 1.442695, %v1512_v26 }
 0x5a7   :  { %4557 = vpow2.f32 %v1631_v34 }
 0x5a8   :  { %4559 = vpow2.f32 %v1525_v57 }
 0x5aa   :  { %v5855_v14 = vpop.xlane.xlu1 %1601 }
 0x5ac   :  { %2045 = vadd.xlane.f32.xlu2 %v2044_v21  ;;  %2054 = vadd.xlane.f32.xlu0 %v2053_v4  ;;  %v2019_v21 = vsub.f32 %v5693_v35, %v5803_v33 }
 0x5ad   :  { %v5860_v40 = vpop.eup %4557 }
 0x5ae   :  { %v2013_v30 = vpop.xlane.xlu2 %2012  ;;  %v1654_v49 = vsel %vm499_vm0, %v5860_v40, 0.0  ;;  %v5867_v44 = vpop.eup %4559  ;;  %v2029_v4 = vmul.f32 1.442695, %v2019_v21 }
 0x5af   :  { %v2023_v32 = vsub.f32 %v5753_v9, %v2013_v30  ;;  %v1547_v45 = vsel %vm499_vm0, %v5867_v44, 0.0 }
 0x5b1   :  { %v2037_v20 = vmul.f32 1.442695, %v2023_v32 }
 0x5b2   :  { %v5869_v13 = vpop.xlane.xlu1 %2009 }
 0x5b3   :  { %4561 = vpow2.f32 %v2037_v20 }
 0x5b4   :  { %1655 = vadd.xlane.f32.xlu2 %v1654_v49  ;;  %2051 = vadd.xlane.f32.xlu0 %v2050_v59  ;;  %4563 = vpow2.f32 %v1523_v54 }
 0x5b6   :  { %v2016_v47 = vpop.xlane.xlu2 %2015 }
 0x5b7   :  { %v2024_v35 = vsub.f32 %v5767_v11, %v2016_v47 }
 0x5b9   :  { %v5871_v9 = vpop.eup %4561  ;;  %v2039_v49 = vmul.f32 1.442695, %v2024_v35 }
 0x5ba   :  { %v2059_v2 = vsel %vm499_vm0, %v5871_v9, 0.0  ;;  %v5878_v34 = vpop.eup %4563 }
 0x5bb   :  { %2060 = vadd.xlane.f32.xlu1 %v2059_v2  ;;  %v1544_v0 = vsel %vm499_vm0, %v5878_v34, 0.0 }
 0x5bc   :  { %1548 = vadd.xlane.f32.xlu2 %v1547_v45 }
 0x5c0   :  { %v1641_v17 = vpop.xlane.xlu1 %1640 }
 0x5c1   :  { %4565 = vrcp.f32 %v1641_v17 }
 0x5c2   :  { %4567 = vpow2.f32 %v1527_v8  ;;  %v1614_v8 = vsub.f32 %v5746_v7, %v5855_v14 }
 0x5c4   :  { %1545 = vadd.xlane.f32.xlu2 %v1544_v0  ;;  %v1627_v21 = vmul.f32 1.442695, %v1614_v8 }
 0x5c7   :  { %v4566_v25 = vpop.eup %4565  ;;  %v1635_v57 = vpop.xlane.xlu0 %1634 }
 0x5c8   :  { %v5884_v30 = vpop.eup %4567  ;;  %v1667_v32 = vmul.f32 %v4566_v25, %v5773_v28  ;;  %4569 = vrcp.f32 %v1635_v57  ;;  %2279 = vrot.lane.b32.xlu0 %v5011_v38, %s4929_s15 }
 0x5c9   :  { %4571 = vpow2.f32 %v2029_v4  ;;  %v1550_v33 = vsel %vm499_vm0, %v5884_v30, 0.0 }
 0x5ca   :  { %v1675_v20 = vpack.c.bf16 %v1667_v32, %v1667_v32  ;;  %4573 = vpow2.f32 %v2039_v49 }
 0x5cc   :  { %4309 = vmatmul.msk.bf16.vlgmr.msra.gmra.mxu0 %vm704_vm3, %v1675_v20  ;;  %1551 = vadd.xlane.f32.xlu2 %v1550_v33 }
 0x5cd   :  { %1899 = vmatpush.bf16.msra.mxu0 %v5558_v48 }
 0x5ce   :  { %v4570_v15 = vpop.eup %4569 }
 0x5cf   :  { %v1665_v28 = vmul.f32 %v4570_v15, %v5777_v56  ;;  %v5897_v59 = vpop.eup %4571 }
 0x5d0   :  { %2300 = vrot.lane.b32.xlu0 %v5013_v39, %s4930_s16  ;;  %v2047_v11 = vsel %vm499_vm0, %v5897_v59, 0.0  ;;  %v5907_v56 = vpop.eup %4573 }
 0x5d1   :  { %v1673_v54 = vpack.c.bf16 %v1665_v28, %v1665_v28  ;;  %v2062_v45 = vsel %vm499_vm0, %v5907_v56, 0.0 }
 0x5d3   :  { %4307 = vmatmul.msk.bf16.vlgmr.msra.gmra.mxu2 %vm704_vm3, %v1673_v54 }
 0x5d4   :  { %1867 = vmatpush.bf16.msra.mxu2 %v5532_v12  ;;  %2302 = vrot.lane.b32.xlu1 %v5013_v39, %s4929_s15 }
 0x5d5   :  { %2048 = vadd.xlane.f32.xlu2 %v2047_v11 }
 0x5d8   :  { %2394 = vrot.lane.b32.xlu0 %v5028_v55, %s4929_s15 }
 0x5da   :  { %v1829_v26 = vpop.permute.xlu0 %1828 }
 0x5db   :  { %v5910_v2 = vsel %vm708_vm15, %v1829_v26, 0 }
 0x5dc   :  { %1843 = vmatpush.bf16.msra.mxu1 %v5910_v2 }
 0x5dd   :  { %2063 = vadd.xlane.f32.xlu2 %v2062_v45 }
 0x5e0   :  { %2369 = vrot.lane.b32.xlu0 %v5025_v52, %s4930_s16 }
 0x5e8   :  { %2346 = vrot.lane.b32.xlu0 %v5034_v62, %s4930_s16 }
 0x5ef   :  { %v1644_v17 = vpop.xlane.xlu1 %1643 }
 0x5f0   :  { %4575 = vrcp.f32 %v1644_v17  ;;  %2415 = vrot.lane.b32.xlu0 %v5036_v63, %s4930_s16 }
 0x5f1   :  { %4577 = vpow2.f32 %v1627_v21 }
 0x5f5   :  { %2277 = vrot.lane.b32.xlu2 %v5011_v38, %s4930_s16 }
 0x5f6   :  { %v4576_v0 = vpop.eup %4575 }
 0x5f7   :  { %v1668_v25 = vmul.f32 %v4576_v0, %v5791_v27  ;;  %v5926_v4 = vpop.xlane.xlu1 %1533  ;;  %v5930_v14 = vpop.eup %4577 }
 0x5f8   :  { %2682 = vrot.lane.b32.xlu0 %v5013_v39, %s4931_s17  ;;  %v1648_v57 = vsel %vm499_vm0, %v5930_v14, 0.0 }
 0x5f9   :  { %v1676_v7 = vpack.c.bf16 %v1668_v25, %v1668_v25 }
 0x5fb   :  { %4310 = vmatmul.msk.bf16.vlgmr.msrb.gmra.mxu1 %vm704_vm3, %v1676_v7 }
 0x5fc   :  { %1915 = vmatpush.bf16.msrb.mxu1 %v5562_v22 }
 0x5fd   :  { %2325 = vrot.lane.b32.xlu2 %v5019_v43, %s4929_s15 }
 0x5fe   :  { %1649 = vadd.xlane.f32.xlu1 %v1648_v57 }
 0x5ff   :  { %v1638_v27 = vpop.xlane.xlu1 %1637 }
 0x600   :  { %4579 = vrcp.f32 %v1638_v27  ;;  %2745 = vrot.lane.b32.xlu0 %v5025_v52, %s4931_s17 }
 0x605   :  { %2392 = vrot.lane.b32.xlu2 %v5028_v55, %s4930_s16 }
 0x606   :  { %v4580_v47 = vpop.eup %4579 }
 0x607   :  { %v1666_v32 = vmul.f32 %v4580_v47, %v5806_v51  ;;  %v1647_v20 = vpop.xlane.xlu2 %1646  ;;  %v1537_v45 = vpop.xlane.xlu1 %1536 }
 0x608   :  { %4581 = vrcp.f32 %v1647_v20 }
 0x609   :  { %v1674_v35 = vpack.c.bf16 %v1666_v32, %v1666_v32 }
 0x60b   :  { %4308 = vmatmul.msk.bf16.vlgmr.msra.gmra.mxu3 %vm704_vm3, %v1674_v35 }
 0x60c   :  { %1883 = vmatpush.bf16.msra.mxu3 %v5582_v58 }
 0x60d   :  { %2417 = vrot.lane.b32.xlu2 %v5036_v63, %s4929_s15 }
 0x60e   :  { %v4582_v33 = vpop.eup %4581 }
 0x60f   :  { %v1540_v15 = vpop.xlane.xlu2 %1539  ;;  %v1653_v49 = vpop.xlane.xlu0 %1652  ;;  %v1669_v28 = vmul.f32 %v4582_v33, %v5815_v42 }
 0x610   :  { %4583 = vrcp.f32 %v1653_v49 }
 0x611   :  { %v1677_v54 = vpack.c.bf16 %v1669_v28, %v1669_v28  ;;  %4585 = vrcp.f32 %v5843_v31 }
 0x612   :  { %4587 = vrcp.f32 %v1537_v45 }
 0x613   :  { %4311 = vmatmul.msk.bf16.vlgmr.msrb.gmra.mxu2 %vm704_vm3, %v1677_v54 }
 0x614   :  { %1931 = vmatpush.bf16.msrb.mxu2 %v5535_v16 }
 0x615   :  { %2438 = vrot.lane.b32.xlu2 %v5038_v1, %s4930_s16 }
 0x616   :  { %v4584_v51 = vpop.eup %4583 }
 0x617   :  { %2371 = vrot.lane.b32.xlu1 %v5025_v52, %s4929_s15  ;;  %v2043_v11 = vpop.xlane.xlu2 %2042  ;;  %v1671_v26 = vmul.f32 %v4584_v51, %v5825_v36  ;;  %v4586_v8 = vpop.eup %4585 }
 0x618   :  { %v1561_v31 = vmul.f32 %v4586_v8, %v5739_v3  ;;  %v1543_v0 = vpop.xlane.xlu0 %1542  ;;  %v4588_v25 = vpop.eup %4587 }
 0x619   :  { %v1679_v42 = vpack.c.bf16 %v1671_v26, %v1671_v26  ;;  %4589 = vrcp.f32 %v1543_v0  ;;  %v1563_v36 = vmul.f32 %v4588_v25, %v5811_v46 }
 0x61a   :  { %v1569_v21 = vpack.c.bf16 %v1561_v31, %v1561_v31 }
 0x61b   :  { %4313 = vmatmul.msk.bf16.vlgmr.msrb.gmra.mxu0 %vm704_vm3, %v1679_v42  ;;  %v1571_v57 = vpack.c.bf16 %v1563_v36, %v1563_v36 }
 0x61c   :  { %1963 = vmatpush.bf16.msrb.mxu0 %v5782_v60 }
 0x61d   :  { %2703 = vrot.lane.b32.xlu2 %v5019_v43, %s4931_s17 }
 0x61f   :  { %v5961_v17 = vpop.xlane.xlu2 %2045  ;;  %v4590_v27 = vpop.eup %4589 }
 0x620   :  { %v1565_v47 = vmul.f32 %v4590_v27, %v5834_v50  ;;  %v2055_v32 = vpop.xlane.xlu0 %2054 }
 0x622   :  { %v1573_v33 = vpack.c.bf16 %v1565_v47, %v1565_v47 }
 0x623   :  { %4315 = vmatmul.msk.bf16.vlgmr.msra.gmra.mxu2 %vm704_vm3, %v1569_v21 }
 0x624   :  { %2099 = vmatpush.bf16.msra.mxu2 %v5532_v12  ;;  %v2022_v12 = vsub.f32 %v5760_v5, %v5869_v13 }
 0x625   :  { %2724 = vrot.lane.b32.xlu2 %v5034_v62, %s4931_s17 }
 0x626   :  { %v2035_v49 = vmul.f32 1.442695, %v2022_v12 }
 0x627   :  { %v1656_v7 = vpop.xlane.xlu2 %1655 }
 0x628   :  { %4591 = vrcp.f32 %v1656_v7 }
 0x62b   :  { %4317 = vmatmul.msk.bf16.vlgmr.msra.gmra.mxu0 %vm704_vm3, %v1571_v57 }
 0x62c   :  { %2131 = vmatpush.bf16.msra.mxu0 %v5558_v48 }
 0x62d   :  { %2766 = vrot.lane.b32.xlu2 %v5028_v55, %s4931_s17 }
 0x62e   :  { %v4592_v3 = vpop.eup %4591 }
 0x62f   :  { %v1672_v46 = vmul.f32 %v4592_v3, %v5860_v40  ;;  %v1549_v20 = vpop.xlane.xlu2 %1548  ;;  %v2052_v40 = vpop.xlane.xlu0 %2051 }
 0x630   :  { %4593 = vrcp.f32 %v1549_v20 }
 0x631   :  { %v1680_v35 = vpack.c.bf16 %v1672_v46, %v1672_v46  ;;  %4595 = vrcp.f32 %v1540_v15 }
 0x632   :  { %4597 = vrcp.f32 %v2043_v11 }
 0x633   :  { %4314 = vmatmul.msk.bf16.vlgmr.msra.gmra.mxu1 %vm704_vm3, %v1680_v35  ;;  %4319 = vmatmul.msk.bf16.vlgmr.msrb.gmra.mxu2 %vm704_vm3, %v1573_v33  ;;  %4599 = vpow2.f32 %v2035_v49 }
 0x634   :  { %1979 = vmatpush.bf16.msra.mxu1 %v5910_v2  ;;  %2163 = vmatpush.bf16.msrb.mxu2 %v5535_v16 }
 0x636   :  { %v4594_v48 = vpop.eup %4593 }
 0x637   :  { %v1567_v5 = vmul.f32 %v4594_v48, %v5867_v44  ;;  %v5981_v50 = vpop.xlane.xlu2 %1545  ;;  %v4596_v28 = vpop.eup %4595 }
 0x638   :  { %v4598_v54 = vpop.eup %4597  ;;  %v1564_v51 = vmul.f32 %v4596_v28, %v5822_v23 }
 0x639   :  { %v1575_v13 = vpack.c.bf16 %v1567_v5, %v1567_v5  ;;  %v5984_v15 = vpop.eup %4599  ;;  %v2073_v16 = vmul.f32 %v4598_v54, %v5832_v6 }
 0x63a   :  { %v2056_v44 = vsel %vm499_vm0, %v5984_v15, 0.0  ;;  %v1572_v26 = vpack.c.bf16 %v1564_v51, %v1564_v51  ;;  %v2280_v45 = vpop.permute.xlu0 %2279 }
 0x63b   :  { %4321 = vmatmul.msk.bf16.vlgmr.msrb.gmra.mxu0 %vm704_vm3, %v1575_v13  ;;  %v2081_v42 = vpack.c.bf16 %v2073_v16, %v2073_v16  ;;  %v2285_v8 = vsel %vm311_vm14, %v2280_v45, 0 }
 0x63c   :  { %2195 = vmatpush.bf16.msrb.mxu0 %v5782_v60 }
 0x63f   :  { %v1552_v11 = vpop.xlane.xlu2 %1551 }
 0x640   :  { %4601 = vrcp.f32 %v1552_v11 }
 0x641   :  { %2057 = vadd.xlane.f32.xlu1 %v2056_v44  ;;  %4603 = vrcp.f32 %v2055_v32 }
 0x643   :  { %4318 = vmatmul.msk.bf16.vlgmr.msrb.gmra.mxu1 %vm704_vm3, %v1572_v26  ;;  %4323 = vmatmul.msk.bf16.vlgmr.msra.gmra.mxu2 %vm704_vm3, %v2081_v42  ;;  %v6028_v26 = vpop.permute.xlu0 %2300 }
 0x644   :  { %2147 = vmatpush.bf16.msrb.mxu1 %v5562_v22  ;;  %2294 = vmatpush.bf16.xpose.msra.mxu2 %v2285_v8  ;;  %v2061_v22 = vpop.xlane.xlu1 %2060 }
 0x646   :  { %v4602_v6 = vpop.eup %4601 }
 0x647   :  { %v4604_v31 = vpop.eup %4603  ;;  %v1568_v21 = vmul.f32 %v4602_v6, %v5884_v30 }
 0x648   :  { %v2049_v60 = vpop.xlane.xlu2 %2048  ;;  %v2077_v0 = vmul.f32 %v4604_v31, %v5847_v37 }
 0x649   :  { %4605 = vrcp.f32 %v2049_v60  ;;  %v5995_v23 = vpop.f32.mrf.mxu0  ;;  %v1576_v57 = vpack.c.bf16 %v1568_v21, %v1568_v21 }
 0x64a   :  { %v2085_v3 = vpack.c.bf16 %v2077_v0, %v2077_v0  ;;  %4607 = vrcp.f32 %v2052_v40 }
 0x64b   :  { %4609 = vrcp.f32 %v2061_v22  ;;  %v2395_v8 = vpop.permute.xlu0 %2394 }
 0x64f   :  { %v4606_v25 = vpop.eup %4605 }
 0x650   :  { %v2075_v36 = vmul.f32 %v4606_v25, %v5897_v59  ;;  %v2064_v7 = vpop.xlane.xlu2 %2063  ;;  %v4608_v59 = vpop.eup %4607 }
 0x651   :  { %v1742_v27 = vpop.f32.mrf.mxu0  ;;  %v4610_v12 = vpop.eup %4609  ;;  %v2076_v32 = vmul.f32 %v4608_v59, %v5857_v10  ;;  %4611 = vrcp.f32 %v2064_v7 }
 0x652   :  { %v2083_v47 = vpack.c.bf16 %v2075_v36, %v2075_v36  ;;  %v2079_v46 = vmul.f32 %v4610_v12, %v5871_v9  ;;  %v2303_v9 = vpop.permute.xlu1 %2302 }
 0x653   :  { %4322 = vmatmul.msk.bf16.vlgmr.msra.gmra.mxu1 %vm704_vm3, %v1576_v57  ;;  %4327 = vmatmul.msk.bf16.vlgmr.msrb.gmra.mxu2 %vm704_vm3, %v2085_v3  ;;  %v2084_v33 = vpack.c.bf16 %v2076_v32, %v2076_v32 }
 0x654   :  { %4325 = vmatmul.msk.bf16.vlgmr.msra.gmra.mxu0 %vm704_vm3, %v2083_v47  ;;  %2211 = vmatpush.bf16.msra.mxu1 %v5910_v2  ;;  %v2087_v48 = vpack.c.bf16 %v2079_v46, %v2079_v46 }
 0x656   :  { %v6004_v37 = vpop.f32.mrf.mxu2 }
 0x657   :  { %v4612_v2 = vpop.eup %4611 }
 0x658   :  { %v2278_v30 = vpop.permute.xlu2 %2277  ;;  %v2080_v5 = vmul.f32 %v4612_v2, %v5907_v56 }
 0x65a   :  { %2348 = vrot.lane.b32.xlu1 %v5034_v62, %s4929_s15  ;;  %v2088_v13 = vpack.c.bf16 %v2080_v5, %v2080_v5 }
 0x65e   :  { %v1700_v20 = vpop.f32.mrf.mxu2 }
 0x660   :  { %v2326_v35 = vpop.permute.xlu2 %2325 }
 0x661   :  { %v2331_v49 = vsel %vm311_vm14, %v2326_v35, 0 }
 0x662   :  { %2340 = vmatpush.bf16.xpose.msra.mxu0 %v2331_v49  ;;  %2323 = vrot.lane.b32.xlu1 %v5019_v43, %s4930_s16 }
 0x663   :  { %4326 = vmatmul.msk.bf16.vlgmr.msrb.gmra.mxu1 %vm704_vm3, %v2084_v33  ;;  %4331 = vmatmul.msk.bf16.vlgmr.msra.gmra.mxu2 %vm311_vm14, %v2278_v30 }
 0x664   :  { %4329 = vmatmul.msk.bf16.vlgmr.msrb.gmra.mxu0 %vm704_vm3, %v2087_v48 }
 0x668   :  { %v6016_v10 = vpop.permute.xlu2 %2392 }
 0x66a   :  { %2440 = vrot.lane.b32.xlu1 %v5038_v1, %s4929_s15 }
 0x670   :  { %v2418_v40 = vpop.permute.xlu2 %2417 }
 0x671   :  { %v2423_v28 = vsel %vm311_vm14, %v2418_v40, 0  ;;  %v1650_v54 = vpop.xlane.xlu1 %1649 }
 0x672   :  { %4613 = vrcp.f32 %v1650_v54  ;;  %2432 = vmatpush.bf16.xpose.msrb.mxu0 %v2423_v28  ;;  %2661 = vrot.lane.b32.xlu1 %v5011_v38, %s4931_s17 }
 0x673   :  { %4330 = vmatmul.msk.bf16.vlgmr.msra.gmra.mxu1 %vm704_vm3, %v2088_v13  ;;  %4615 = vrcp.f32 %v5926_v4  ;;  %v2370_v4 = vpop.permute.xlu0 %2369  ;;  %v1849_v13 = vsel %vm5539_vm4, %v6004_v37, 0.0 }
 0x674   :  { %4617 = vrcp.f32 %v5981_v50 }
 0x675   :  { %4619 = vrcp.f32 %v5961_v17 }
 0x678   :  { %v4614_v51 = vpop.eup %4613  ;;  %v6025_v16 = vpop.f32.mrf.mxu1 }
 0x679   :  { %v1670_v11 = vmul.f32 %v4614_v51, %v5930_v14  ;;  %v4616_v45 = vpop.eup %4615  ;;  %v6055_v49 = vpop.permute.xlu2 %2438 }
 0x67a   :  { %v1562_v42 = vmul.f32 %v4616_v45, %v5798_v24  ;;  %v4618_v21 = vpop.eup %4617 }
 0x67b   :  { %v1678_v44 = vpack.c.bf16 %v1670_v11, %v1670_v11  ;;  %v1566_v24 = vmul.f32 %v4618_v21, %v5878_v34  ;;  %v4620_v57 = vpop.eup %4619  ;;  %v2308_v34 = vsel %vm311_vm14, %v2303_v9, 0  ;;  %v2347_v46 = vpop.permute.xlu0 %2346  ;;  %v2400_v9 = vsel %vm311_vm14, %v2395_v8, 0 }
 0x67c   :  { %v1570_v31 = vpack.c.bf16 %v1562_v42, %v1562_v42  ;;  %v2074_v27 = vmul.f32 %v4620_v57, %v5845_v61 }
 0x67d   :  { %4312 = vmatmul.msk.bf16.vlgmr.msrb.gmra.mxu3 %vm704_vm3, %v1678_v44  ;;  %v1574_v7 = vpack.c.bf16 %v1566_v24, %v1566_v24 }
 0x67e   :  { %1947 = vmatpush.bf16.msrb.mxu3 %v5586_v29  ;;  %v2082_v47 = vpack.c.bf16 %v2074_v27, %v2074_v27 }
 0x680   :  { %v1763_v56 = vpop.f32.mrf.mxu1 }
 0x681   :  { %v2704_v11 = vpop.permute.xlu2 %2703 }
 0x683   :  { %v6059_v40 = vpop.permute.xlu0 %2415 }
 0x689   :  { %v2372_v60 = vpop.permute.xlu1 %2371 }
 0x68a   :  { %v2377_v6 = vsel %vm311_vm14, %v2372_v60, 0  ;;  %v1851_v60 = vsel %vm5539_vm4, %v5995_v23, 0.0 }
 0x68b   :  { %2386 = vmatpush.bf16.xpose.msrb.mxu2 %v2377_v6  ;;  %v2683_v45 = vpop.permute.xlu0 %2682 }
 0x68c   :  { %v6071_v37 = vsel %vm708_vm15, %v2683_v45, 0 }
 0x68d   :  { %4316 = vmatmul.msk.bf16.vlgmr.msra.gmra.mxu3 %vm704_vm3, %v1570_v31 }
 0x68e   :  { %2115 = vmatpush.bf16.msra.mxu3 %v5582_v58  ;;  %v6038_v14 = vpop.f32.mrf.mxu3 }
 0x692   :  { %4335 = vmatmul.msk.bf16.vlgmr.msrb.gmra.mxu2 %vm311_vm14, %v2370_v4 }
 0x696   :  { %v1721_v0 = vpop.f32.mrf.mxu3  ;;  %v6042_v25 = vpop.f32.mrf.mxu2 }
 0x697   :  { %v2725_v0 = vpop.permute.xlu2 %2724  ;;  %v1853_v23 = vsel %vm5539_vm4, %v6042_v25, 0.0  ;;  %v1852_v25 = vsel %vm5539_vm4, %v6025_v16, 0.0 }
 0x698   :  { %v6044_v36 = vpop.f32.mrf.mxu0 }
 0x69d   :  { %4320 = vmatmul.msk.bf16.vlgmr.msrb.gmra.mxu3 %vm704_vm3, %v1574_v7 }
 0x69e   :  { %2179 = vmatpush.bf16.msrb.mxu3 %v5586_v29  ;;  %v1784_v58 = vpop.f32.mrf.mxu2 }
 0x69f   :  { %v6079_v58 = vsel %vm708_vm15, %v2704_v11, 0 }
 0x6a0   :  { %v1826_v50 = vpop.f32.mrf.mxu0 }
 0x6a6   :  { %v1869_v3 = vpop.f32.mrf.mxu2 }
 0x6a7   :  { %v1870_v28 = vadd.f32 %v1869_v3, %v1849_v13 }
 0x6a8   :  { %v1901_v22 = vpop.f32.mrf.mxu0 }
 0x6a9   :  { %v1902_v31 = vadd.f32 %v1901_v22, %v1851_v60 }
 0x6ad   :  { %4324 = vmatmul.msk.bf16.vlgmr.msra.gmra.mxu3 %vm704_vm3, %v2082_v47 }
 0x6ae   :  { %2317 = vmatpush.bf16.xpose.msra.mxu3 %v2308_v34  ;;  %v1871_v30 = vpop.f32.mrf.mxu2  ;;  %v2767_v34 = vpop.permute.xlu2 %2766 }
 0x6b0   :  { %v6052_v59 = vpop.f32.mrf.mxu1  ;;  %v1903_v12 = vpop.f32.mrf.mxu0 }
 0x6b1   :  { %v6091_v12 = vsel %vm708_vm15, %v2725_v0, 0 }
 0x6b4   :  { %v2058_v17 = vpop.xlane.xlu1 %2057 }
 0x6b5   :  { %4621 = vrcp.f32 %v2058_v17 }
 0x6b6   :  { %v1933_v29 = vpop.f32.mrf.mxu2 }
 0x6b8   :  { %v1847_v32 = vpop.f32.mrf.mxu1  ;;  %v1965_v20 = vpop.f32.mrf.mxu0 }
 0x6b9   :  { %v1855_v32 = vsel %vm5539_vm4, %v6044_v36, 0.0 }
 0x6bb   :  { %v4622_v35 = vpop.eup %4621 }
 0x6bc   :  { %v2078_v61 = vmul.f32 %v4622_v35, %v5984_v15 }
 0x6be   :  { %v2086_v33 = vpack.c.bf16 %v2078_v61, %v2078_v61  ;;  %v1935_v48 = vpop.f32.mrf.mxu2  ;;  %v1966_v61 = vadd.f32 %v1965_v20, %v1855_v32 }
 0x6c0   :  { %v1917_v2 = vpop.f32.mrf.mxu1  ;;  %4328 = vmatmul.msk.bf16.vlgmr.msrb.gmra.mxu3 %vm704_vm3, %v2086_v33  ;;  %v1967_v5 = vpop.f32.mrf.mxu0 }
 0x6c1   :  { %2409 = vmatpush.bf16.xpose.msrb.mxu3 %v2400_v9  ;;  %v2746_v5 = vpop.permute.xlu0 %2745 }
 0x6c6   :  { %v2101_v54 = vpop.f32.mrf.mxu2 }
 0x6c7   :  { %v2217_v15 = vsel %vm5567_vm5, %v2101_v54, 0.0 }
 0x6c8   :  { %v1919_v51 = vpop.f32.mrf.mxu1  ;;  %v2225_v44 = vadd.f32 %v2217_v15, %v1870_v28  ;;  %v1856_v15 = vsel %vm5539_vm4, %v6052_v59, 0.0  ;;  %v1850_v59 = vsel %vm5539_vm4, %v6038_v14, 0.0 }
 0x6ca   :  { %2241 = vst [vmem:[#allocation1] ss:$2 sm:$0xff] %v2225_v44 }
 0x6cc   :  { %v2349_v56 = vpop.permute.xlu1 %2348 }
 0x6cd   :  { %v2354_v42 = vsel %vm311_vm14, %v2349_v56, 0 }
 0x6ce   :  { %2363 = vmatpush.bf16.xpose.msrb.mxu1 %v2354_v42  ;;  %v2103_v8 = vpop.f32.mrf.mxu2 }
 0x6d0   :  { %v1981_v6 = vpop.f32.mrf.mxu1  ;;  %4332 = vmatmul.msk.bf16.vlgmr.msra.gmra.mxu3 %vm311_vm14, %v6028_v26  ;;  %v1934_v26 = vadd.f32 %v1933_v29, %v1853_v23  ;;  %v6098_v29 = vsel %vm708_vm15, %v2767_v34, 0 }
 0x6d1   :  { %v2133_v4 = vpop.f32.mrf.mxu0  ;;  %2697 = vmatpush.bf16.msra.mxu3 %v6071_v37 }
 0x6d2   :  { %v2219_v21 = vsel %vm5567_vm5, %v2133_v4, 0.0 }
 0x6d3   :  { %v2227_v24 = vadd.f32 %v2219_v21, %v1902_v31 }
 0x6d4   :  { %v2324_v7 = vpop.permute.xlu1 %2323 }
 0x6d5   :  { %2245 = vst [vmem:[#allocation1 + $0x10] ss:$2 sm:$0xff] %v2227_v24  ;;  %4333 = vmatmul.msk.bf16.vlgmr.msra.gmra.mxu0 %vm311_vm14, %v2324_v7  ;;  %4334 = vmatmul.msk.bf16.vlgmr.msrb.gmra.mxu1 %vm311_vm14, %v2347_v46  ;;  %v1918_v46 = vadd.f32 %v1917_v2, %v1852_v25 }
 0x6d6   :  { %2718 = vmatpush.bf16.msra.mxu0 %v6079_v58  ;;  %v2165_v50 = vpop.f32.mrf.mxu2 }
 0x6d7   :  { %v2221_v57 = vsel %vm5567_vm5, %v2165_v50, 0.0 }
 0x6d8   :  { %v1983_v27 = vpop.f32.mrf.mxu1  ;;  %v2229_v3 = vadd.f32 %v2221_v57, %v1934_v26 }
 0x6d9   :  { %v2135_v22 = vpop.f32.mrf.mxu0 }
 0x6da   :  { %2249 = vst [vmem:[#allocation1 + $0x20] ss:$2 sm:$0xff] %v2229_v3 }
 0x6dc   :  { %v2441_v47 = vpop.permute.xlu1 %2440 }
 0x6dd   :  { %v2446_v30 = vsel %vm311_vm14, %v2441_v47, 0 }
 0x6de   :  { %2455 = vmatpush.bf16.xpose.msra.mxu1 %v2446_v30  ;;  %v2167_v17 = vpop.f32.mrf.mxu2 }
 0x6e0   :  { %v2149_v35 = vpop.f32.mrf.mxu1  ;;  %4336 = vmatmul.msk.bf16.vlgmr.msrb.gmra.mxu3 %vm311_vm14, %v6016_v10  ;;  %v6118_v10 = vsel %vm708_vm15, %v2746_v5, 0 }
 0x6e1   :  { %v2220_v33 = vsel %vm5567_vm5, %v2149_v35, 0.0  ;;  %v2197_v16 = vpop.f32.mrf.mxu0  ;;  %2781 = vmatpush.bf16.msrb.mxu3 %v6098_v29 }
 0x6e2   :  { %v2228_v48 = vadd.f32 %v2220_v33, %v1918_v46  ;;  %v2223_v9 = vsel %vm5567_vm5, %v2197_v16, 0.0 }
 0x6e3   :  { %v2231_v13 = vadd.f32 %v2223_v9, %v1966_v61 }
 0x6e4   :  { %2247 = vst [vmem:[#allocation1 + $0x11] ss:$2 sm:$0xff] %v2228_v48  ;;  %v2662_v36 = vpop.permute.xlu1 %2661 }
 0x6e5   :  { %2253 = vst [vmem:[#allocation1 + $0x30] ss:$2 sm:$0xff] %v2231_v13  ;;  %v6111_v2 = vsel %vm708_vm15, %v2662_v36, 0  ;;  %4337 = vmatmul.msk.bf16.vlgmr.msrb.gmra.mxu0 %vm311_vm14, %v6059_v40  ;;  %4338 = vmatmul.msk.bf16.vlgmr.msra.gmra.mxu1 %vm311_vm14, %v6055_v49  ;;  %v1982_v40 = vadd.f32 %v1981_v6, %v1856_v15 }
 0x6e6   :  { %2739 = vmatpush.bf16.msrb.mxu1 %v6091_v12  ;;  %2676 = vmatpush.bf16.msra.mxu2 %v6111_v2  ;;  %v6121_v20 = vpop.f32.mrf.mxu2 }
 0x6e8   :  { %v2151_v28 = vpop.f32.mrf.mxu1 }
 0x6e9   :  { %v2199_v54 = vpop.f32.mrf.mxu0 }
 0x6ea   :  { %2760 = vmatpush.bf16.msrb.mxu2 %v6118_v10  ;;  %v6186_v54 = vsel %vm5111_vm1, %v6121_v20, -1e+30 }
 0x6ee   :  { %v2298_v51 = vpop.f32.mrf.mxu2 }
 0x6f0   :  { %v2213_v11 = vpop.f32.mrf.mxu1 }
 0x6f1   :  { %v2224_v49 = vsel %vm5567_vm5, %v2213_v11, 0.0 }
 0x6f2   :  { %v2232_v44 = vadd.f32 %v2224_v49, %v1982_v40 }
 0x6f4   :  { %2255 = vst [vmem:[#allocation1 + $0x31] ss:$2 sm:$0xff] %v2232_v44  ;;  %v2565_v44 = vsel %vm499_vm0, %v6186_v54, -inf }
 0x6f8   :  { %v2215_v56 = vpop.f32.mrf.mxu1 }
 0x700   :  { %v1803_v45 = vpop.f32.mrf.mxu3 }
 0x701   :  { %v1854_v50 = vsel %vm5539_vm4, %v1803_v45, 0.0 }
 0x708   :  { %v1805_v42 = vpop.f32.mrf.mxu3 }
 0x710   :  { %v1885_v8 = vpop.f32.mrf.mxu3 }
 0x711   :  { %v1886_v6 = vadd.f32 %v1885_v8, %v1850_v59  ;;  %v6219_v59 = vsel %vm5135_vm2, %v6121_v20, -1e+30 }
 0x715   :  { %v6129_v60 = vpop.f32.mrf.mxu2 }
 0x718   :  { %v1887_v31 = vpop.f32.mrf.mxu3 }
 0x71d   :  { %v2390_v4 = vpop.f32.mrf.mxu2 }
 0x720   :  { %v1949_v21 = vpop.f32.mrf.mxu3 }
 0x721   :  { %v1950_v57 = vadd.f32 %v1949_v21, %v1854_v50  ;;  %v2461_v21 = vsel %vm499_vm0, %v6121_v20, -inf }
 0x728   :  { %v1951_v0 = vpop.f32.mrf.mxu3 }
 0x730   :  { %v2117_v24 = vpop.f32.mrf.mxu3 }
 0x731   :  { %v2218_v7 = vsel %vm5567_vm5, %v2117_v24, 0.0 }
 0x732   :  { %v2226_v23 = vadd.f32 %v2218_v7, %v1886_v6  ;;  %v2973_v7 = vsel %vm499_vm0, %v6219_v59, -inf }
 0x734   :  { %2243 = vst [vmem:[#allocation1 + $0x1] ss:$2 sm:$0xff] %v2226_v23 }
 0x738   :  { %v2119_v26 = vpop.f32.mrf.mxu3 }
 0x739   :  { %v6235_v26 = vsel %vm5111_vm1, %v6129_v60, -1e+30 }
 0x73a   :  { %v2577_v50 = vsel %vm499_vm0, %v6235_v26, -inf }
 0x743   :  { %v2181_v27 = vpop.f32.mrf.mxu3 }
 0x744   :  { %v2222_v3 = vsel %vm5567_vm5, %v2181_v27, 0.0  ;;  %v2473_v27 = vsel %vm499_vm0, %v6129_v60, -inf }
 0x745   :  { %v2230_v22 = vadd.f32 %v2222_v3, %v1950_v57 }
 0x747   :  { %2251 = vst [vmem:[#allocation1 + $0x21] ss:$2 sm:$0xff] %v2230_v22  ;;  %v6251_v22 = vsel %vm5135_vm2, %v6129_v60, -1e+30 }
 0x74b   :  { %v2183_v47 = vpop.f32.mrf.mxu3 }
 0x752   :  { %v6140_v14 = vpop.f32.mrf.mxu0  ;;  %v6142_v34 = vpop.f32.mrf.mxu1 }
 0x753   :  { %v6144_v30 = vpop.f32.mrf.mxu3  ;;  %v2467_v25 = vsel %vm499_vm0, %v6140_v14, -inf  ;;  %v6151_v17 = vsel %vm5135_vm2, %v6140_v14, -1e+30  ;;  %v6156_v32 = vsel %vm5111_vm1, %v6140_v14, -1e+30  ;;  %v2470_v36 = vsel %vm499_vm0, %v6142_v34, -inf }
 0x754   :  { %2468 = vmax.xlane.f32.xlu0 %v2467_v25  ;;  %v2979_v46 = vsel %vm499_vm0, %v6151_v17, -inf  ;;  %v2571_v35 = vsel %vm499_vm0, %v6156_v32, -inf  ;;  %v6165_v61 = vsel %vm5111_vm1, %v6144_v30, -1e+30  ;;  %v6170_v33 = vsel %vm5111_vm1, %v6142_v34, -1e+30 }
 0x755   :  { %2980 = vmax.xlane.f32.xlu1 %v2979_v46  ;;  %2572 = vmax.xlane.f32.xlu2 %v2571_v35  ;;  %v2568_v5 = vsel %vm499_vm0, %v6165_v61, -inf  ;;  %v2574_v13 = vsel %vm499_vm0, %v6170_v33, -inf  ;;  %v6181_v28 = vsel %vm5135_vm2, %v6144_v30, -1e+30  ;;  %v6191_v15 = vsel %vm5135_vm2, %v6142_v34, -1e+30 }
 0x756   :  { %v2976_v49 = vsel %vm499_vm0, %v6181_v28, -inf  ;;  %v2982_v56 = vsel %vm499_vm0, %v6191_v15, -inf  ;;  %v2464_v4 = vsel %vm499_vm0, %v6144_v30, -inf  ;;  %v2985_v46 = vsel %vm499_vm0, %v6251_v22, -inf }
 0x75a   :  { %v2344_v16 = vpop.f32.mrf.mxu0  ;;  %v2367_v48 = vpop.f32.mrf.mxu1 }
 0x75b   :  { %v2321_v9 = vpop.f32.mrf.mxu3 }
 0x75c   :  { %2569 = vmax.xlane.f32.xlu0 %v2568_v5 }
 0x75d   :  { %2575 = vmax.xlane.f32.xlu1 %v2574_v13  ;;  %2471 = vmax.xlane.f32.xlu2 %v2470_v36 }
 0x762   :  { %v6193_v51 = vpop.f32.mrf.mxu0  ;;  %v6195_v40 = vpop.f32.mrf.mxu1 }
 0x763   :  { %v6197_v11 = vpop.f32.mrf.mxu3  ;;  %v2479_v31 = vsel %vm499_vm0, %v6193_v51, -inf  ;;  %v6214_v0 = vsel %vm5111_vm1, %v6195_v40, -1e+30  ;;  %v6224_v6 = vsel %vm5111_vm1, %v6193_v51, -1e+30  ;;  %v2482_v57 = vsel %vm499_vm0, %v6195_v40, -inf }
 0x764   :  { %2977 = vmax.xlane.f32.xlu0 %v2976_v49  ;;  %v2586_v24 = vsel %vm499_vm0, %v6214_v0, -inf  ;;  %v2583_v23 = vsel %vm499_vm0, %v6224_v6, -inf  ;;  %v6246_v3 = vsel %vm5111_vm1, %v6197_v11, -1e+30  ;;  %v2476_v47 = vsel %vm499_vm0, %v6197_v11, -inf }
 0x765   :  { %2566 = vmax.xlane.f32.xlu1 %v2565_v44  ;;  %2983 = vmax.xlane.f32.xlu2 %v2982_v56  ;;  %v2580_v25 = vsel %vm499_vm0, %v6246_v3, -inf  ;;  %v6262_v35 = vsel %vm5135_vm2, %v6197_v11, -1e+30 }
 0x766   :  { %v2988_v16 = vsel %vm499_vm0, %v6262_v35, -inf }
 0x76a   :  { %v2436_v45 = vpop.f32.mrf.mxu0  ;;  %v2459_v42 = vpop.f32.mrf.mxu1 }
 0x76b   :  { %v2413_v8 = vpop.f32.mrf.mxu3 }
 0x76c   :  { %2480 = vmax.xlane.f32.xlu0 %v2479_v31 }
 0x76d   :  { %2465 = vmax.xlane.f32.xlu1 %v2464_v4  ;;  %2462 = vmax.xlane.f32.xlu2 %v2461_v21 }
 0x774   :  { %2587 = vmax.xlane.f32.xlu0 %v2586_v24 }
 0x775   :  { %2974 = vmax.xlane.f32.xlu2 %v2973_v7  ;;  %2584 = vmax.xlane.f32.xlu1 %v2583_v23 }
 0x77c   :  { %2578 = vmax.xlane.f32.xlu0 %v2577_v50 }
 0x77d   :  { %2483 = vmax.xlane.f32.xlu2 %v2482_v57  ;;  %2474 = vmax.xlane.f32.xlu1 %v2473_v27 }
 0x784   :  { %2477 = vmax.xlane.f32.xlu0 %v2476_v47 }
 0x785   :  { %2581 = vmax.xlane.f32.xlu2 %v2580_v25  ;;  %2986 = vmax.xlane.f32.xlu1 %v2985_v46 }
 0x78d   :  { %2989 = vmax.xlane.f32.xlu1 %v2988_v16 }
 0x7c7   :  { %v6266_v48 = vpop.xlane.xlu0 %2468 }
 0x7c8   :  { %v6268_v9 = vpop.xlane.xlu1 %2980  ;;  %v2573_v5 = vpop.xlane.xlu2 %2572 }
 0x7c9   :  { %v2591_v13 = vsub.f32 %v6156_v32, %v2573_v5 }
 0x7cb   :  { %v2601_v36 = vmul.f32 1.442695, %v2591_v13 }
 0x7cd   :  { %4623 = vpow2.f32 %v2601_v36 }
 0x7cf   :  { %v2570_v49 = vpop.xlane.xlu0 %2569 }
 0x7d0   :  { %v2576_v44 = vpop.xlane.xlu1 %2575  ;;  %v6271_v56 = vpop.xlane.xlu2 %2471 }
 0x7d1   :  { %v2592_v45 = vsub.f32 %v6170_v33, %v2576_v44 }
 0x7d3   :  { %v2603_v42 = vmul.f32 1.442695, %v2592_v45  ;;  %v6274_v8 = vpop.eup %4623 }
 0x7d4   :  { %v2619_v31 = vsel %vm499_vm0, %v6274_v8, 0.0 }
 0x7d5   :  { %4625 = vpow2.f32 %v2603_v42  ;;  %2620 = vadd.xlane.f32.xlu2 %v2619_v31 }
 0x7d7   :  { %v6278_v4 = vpop.xlane.xlu0 %2977 }
 0x7d8   :  { %v2567_v21 = vpop.xlane.xlu1 %2566  ;;  %v6280_v32 = vpop.xlane.xlu2 %2983 }
 0x7d9   :  { %v2589_v24 = vsub.f32 %v6186_v54, %v2567_v21 }
 0x7db   :  { %v6283_v7 = vpop.eup %4625  ;;  %v2597_v23 = vmul.f32 1.442695, %v2589_v24 }
 0x7dc   :  { %v2622_v33 = vsel %vm499_vm0, %v6283_v7, 0.0 }
 0x7dd   :  { %4627 = vpow2.f32 %v2597_v23  ;;  %2623 = vadd.xlane.f32.xlu2 %v2622_v33 }
 0x7df   :  { %v6287_v50 = vpop.xlane.xlu0 %2480 }
 0x7e0   :  { %v2466_v57 = vpop.xlane.xlu1 %2465  ;;  %v2463_v27 = vpop.xlane.xlu2 %2462 }
 0x7e1   :  { %v2485_v47 = vsub.f32 %v6121_v20, %v2463_v27  ;;  %v2486_v46 = vsub.f32 %v6144_v30, %v2466_v57  ;;  %v2590_v20 = vsub.f32 %v6165_v61, %v2570_v49 }
 0x7e3   :  { %v6290_v25 = vpop.eup %4627  ;;  %v2493_v16 = vmul.f32 1.442695, %v2485_v47  ;;  %v2495_v5 = vmul.f32 1.442695, %v2486_v46  ;;  %v2599_v21 = vmul.f32 1.442695, %v2590_v20 }
 0x7e4   :  { %v2613_v54 = vsel %vm499_vm0, %v6290_v25, 0.0 }
 0x7e5   :  { %4629 = vpow2.f32 %v2493_v16  ;;  %2614 = vadd.xlane.f32.xlu2 %v2613_v54  ;;  %v6315_v16 = vsel %vm5135_vm2, %v6193_v51, -1e+30 }
 0x7e6   :  { %4631 = vpow2.f32 %v2495_v5 }
 0x7e7   :  { %v2588_v13 = vpop.xlane.xlu0 %2587 }
 0x7e8   :  { %v2596_v36 = vsub.f32 %v6214_v0, %v2588_v13  ;;  %v6296_v44 = vpop.xlane.xlu2 %2974  ;;  %v2585_v30 = vpop.xlane.xlu1 %2584 }
 0x7e9   :  { %v2595_v57 = vsub.f32 %v6224_v6, %v2585_v30 }
 0x7ea   :  { %v2611_v45 = vmul.f32 1.442695, %v2596_v36  ;;  %v2991_v36 = vsel %vm499_vm0, %v6315_v16, -inf }
 0x7eb   :  { %v6298_v42 = vpop.eup %4629  ;;  %v2609_v47 = vmul.f32 1.442695, %v2595_v57 }
 0x7ec   :  { %4633 = vpow2.f32 %v2611_v45  ;;  %v2509_v31 = vsel %vm499_vm0, %v6298_v42, 0.0  ;;  %v6303_v23 = vpop.eup %4631 }
 0x7ed   :  { %2510 = vadd.xlane.f32.xlu1 %v2509_v31  ;;  %4635 = vpow2.f32 %v2599_v21  ;;  %v2512_v49 = vsel %vm499_vm0, %v6303_v23, 0.0 }
 0x7ee   :  { %4637 = vpow2.f32 %v2609_v47 }
 0x7ef   :  { %v2579_v61 = vpop.xlane.xlu0 %2578 }
 0x7f0   :  { %v2484_v24 = vpop.xlane.xlu2 %2483  ;;  %v2475_v27 = vpop.xlane.xlu1 %2474  ;;  %v2593_v45 = vsub.f32 %v6235_v26, %v2579_v61 }
 0x7f1   :  { %v2489_v6 = vsub.f32 %v6129_v60, %v2475_v27  ;;  %v6329_v60 = vsel %vm5135_vm2, %v6195_v40, -1e+30 }
 0x7f2   :  { %v6305_v33 = vpop.eup %4633  ;;  %v2994_v57 = vsel %vm499_vm0, %v6329_v60, -inf }
 0x7f3   :  { %v2634_v0 = vsel %vm499_vm0, %v6305_v33, 0.0  ;;  %v6318_v5 = vpop.eup %4635  ;;  %v2501_v30 = vmul.f32 1.442695, %v2489_v6 }
 0x7f4   :  { %2635 = vadd.xlane.f32.xlu0 %v2634_v0  ;;  %v2616_v20 = vsel %vm499_vm0, %v6318_v5, 0.0  ;;  %v6331_v21 = vpop.eup %4637 }
 0x7f5   :  { %2513 = vadd.xlane.f32.xlu1 %v2512_v49  ;;  %v2631_v49 = vsel %vm499_vm0, %v6331_v21, 0.0 }
 0x7f7   :  { %v2478_v31 = vpop.xlane.xlu0 %2477 }
 0x7f8   :  { %v2582_v46 = vpop.xlane.xlu2 %2581  ;;  %v2490_v0 = vsub.f32 %v6197_v11, %v2478_v31  ;;  %v2491_v11 = vsub.f32 %v6193_v51, %v6287_v50 }
 0x7f9   :  { %v2594_v54 = vsub.f32 %v6246_v3, %v2582_v46  ;;  %v2605_v3 = vmul.f32 1.442695, %v2593_v45  ;;  %v2492_v45 = vsub.f32 %v6195_v40, %v2484_v24  ;;  %v2999_v24 = vsub.f32 %v6151_v17, %v6268_v9 }
 0x7fa   :  { %v2503_v27 = vmul.f32 1.442695, %v2490_v0  ;;  %v2487_v9 = vsub.f32 %v6140_v14, %v6266_v48  ;;  %v3000_v48 = vsub.f32 %v6191_v15, %v6280_v32 }
 0x7fb   :  { %v2607_v13 = vmul.f32 1.442695, %v2594_v54  ;;  %v2507_v51 = vmul.f32 1.442695, %v2492_v45 }
 0x7fc   :  { %2992 = vmax.xlane.f32.xlu0 %v2991_v36 }
 0x7fd   :  { %4639 = vpow2.f32 %v2607_v13  ;;  %2617 = vadd.xlane.f32.xlu1 %v2616_v20  ;;  %v2505_v13 = vmul.f32 1.442695, %v2491_v11  ;;  %v2488_v11 = vsub.f32 %v6142_v34, %v6271_v56 }
 0x7fe   :  { %4641 = vpow2.f32 %v2501_v30  ;;  %v2997_v30 = vsub.f32 %v6219_v59, %v6296_v44  ;;  %v3009_v59 = vmul.f32 1.442695, %v2999_v24 }
 0x7ff   :  { %4643 = vpow2.f32 %v2605_v3  ;;  %v2499_v45 = vmul.f32 1.442695, %v2488_v11 }
 0x800   :  { %4645 = vpow2.f32 %v2503_v27  ;;  %v3005_v3 = vmul.f32 1.442695, %v2997_v30  ;;  %v2998_v27 = vsub.f32 %v6181_v28, %v6278_v4  ;;  %v3011_v4 = vmul.f32 1.442695, %v3000_v48 }
 0x801   :  { %4647 = vpow2.f32 %v2505_v13 }
 0x802   :  { %4649 = vpow2.f32 %v2507_v51 }
 0x803   :  { %v6334_v26 = vpop.eup %4639  ;;  %4651 = vpow2.f32 %v3005_v3 }
 0x804   :  { %2995 = vmax.xlane.f32.xlu0 %v2994_v57  ;;  %v2628_v61 = vsel %vm499_vm0, %v6334_v26, 0.0  ;;  %v6342_v47 = vpop.eup %4641  ;;  %4653 = vpow2.f32 %v3009_v59 }
 0x805   :  { %2629 = vadd.xlane.f32.xlu2 %v2628_v61  ;;  %2632 = vadd.xlane.f32.xlu1 %v2631_v49  ;;  %v6344_v46 = vpop.eup %4643  ;;  %v2521_v54 = vsel %vm499_vm0, %v6342_v47, 0.0  ;;  %v2497_v49 = vmul.f32 1.442695, %v2487_v9 }
 0x806   :  { %v2625_v6 = vsel %vm499_vm0, %v6344_v46, 0.0  ;;  %v6352_v36 = vpop.eup %4645 }
 0x807   :  { %v2524_v20 = vsel %vm499_vm0, %v6352_v36, 0.0  ;;  %v6357_v50 = vpop.eup %4647  ;;  %4655 = vpow2.f32 %v2497_v49 }
 0x808   :  { %v2527_v31 = vsel %vm499_vm0, %v6357_v50, 0.0  ;;  %v6365_v40 = vpop.eup %4649 }
 0x809   :  { %v2530_v0 = vsel %vm499_vm0, %v6365_v40, 0.0  ;;  %v6373_v44 = vpop.eup %4651 }
 0x80a   :  { %v3021_v57 = vsel %vm499_vm0, %v6373_v44, 0.0  ;;  %v6377_v61 = vpop.eup %4653 }
 0x80b   :  { %v3027_v17 = vsel %vm499_vm0, %v6377_v61, 0.0 }
 0x80c   :  { %2522 = vadd.xlane.f32.xlu0 %v2521_v54  ;;  %v3007_v54 = vmul.f32 1.442695, %v2998_v27 }
 0x80d   :  { %2626 = vadd.xlane.f32.xlu1 %v2625_v6  ;;  %v2987_v6 = vpop.xlane.xlu1 %2986  ;;  %v6387_v13 = vpop.eup %4655 }
 0x80e   :  { %4657 = vpow2.f32 %v3007_v54  ;;  %v2515_v14 = vsel %vm499_vm0, %v6387_v13, 0.0 }
 0x80f   :  { %4659 = vpow2.f32 %v2499_v45 }
 0x814   :  { %2525 = vadd.xlane.f32.xlu0 %v2524_v20  ;;  %v3001_v20 = vsub.f32 %v6251_v22, %v2987_v6  ;;  %v6396_v56 = vpop.eup %4657 }
 0x815   :  { %v6398_v22 = vpop.eup %4659  ;;  %v3024_v51 = vsel %vm499_vm0, %v6396_v56, 0.0 }
 0x816   :  { %v3013_v28 = vmul.f32 1.442695, %v3001_v20  ;;  %v2518_v15 = vsel %vm499_vm0, %v6398_v22, 0.0 }
 0x81c   :  { %2528 = vadd.xlane.f32.xlu0 %v2527_v31 }
 0x81d   :  { %2808 = vrot.lane.b32.xlu2 %v5038_v1, %s4931_s17 }
 0x824   :  { %2531 = vadd.xlane.f32.xlu0 %v2530_v0 }
 0x826   :  { %2787 = vrot.lane.b32.xlu1 %v5036_v63, %s4931_s17 }
 0x82c   :  { %3022 = vadd.xlane.f32.xlu0 %v3021_v57 }
 0x834   :  { %3028 = vadd.xlane.f32.xlu0 %v3027_v17 }
 0x846   :  { %2516 = vadd.xlane.f32.xlu2 %v2515_v14 }
 0x848   :  { %3259 = vrot.lane.b32.xlu0 %v5011_v38, %s4932_s18  ;;  %v2621_v34 = vpop.xlane.xlu2 %2620 }
 0x849   :  { %4661 = vrcp.f32 %v2621_v34 }
 0x84a   :  { %4663 = vpow2.f32 %v3013_v28 }
 0x84b   :  { %4665 = vpow2.f32 %v3011_v4 }
 0x84e   :  { %3025 = vadd.xlane.f32.xlu2 %v3024_v51 }
 0x84f   :  { %v4662_v30 = vpop.eup %4661 }
 0x850   :  { %3280 = vrot.lane.b32.xlu0 %v5013_v39, %s4933_s19  ;;  %v2647_v32 = vmul.f32 %v4662_v30, %v6274_v8  ;;  %v2624_v31 = vpop.xlane.xlu2 %2623  ;;  %2519 = vadd.xlane.f32.xlu1 %v2518_v15  ;;  %v6407_v3 = vpop.eup %4663 }
 0x851   :  { %4667 = vrcp.f32 %v2624_v31  ;;  %v6409_v0 = vpop.eup %4665  ;;  %v3033_v59 = vsel %vm499_vm0, %v6407_v3, 0.0  ;;  %v2990_v8 = vpop.xlane.xlu1 %2989 }
 0x852   :  { %v2655_v24 = vpack.c.bf16 %v2647_v32, %v2647_v32  ;;  %v3030_v17 = vsel %vm499_vm0, %v6409_v0, 0.0 }
 0x854   :  { %4341 = vmatmul.msk.bf16.vlgmr.msra.gmra.mxu0 %vm704_vm3, %v2655_v24 }
 0x856   :  { %3034 = vadd.xlane.f32.xlu2 %v3033_v59 }
 0x857   :  { %v4668_v57 = vpop.eup %4667 }
 0x858   :  { %3328 = vrot.lane.b32.xlu0 %v5034_v62, %s4932_s18  ;;  %v2648_v9 = vmul.f32 %v4668_v57, %v6283_v7  ;;  %v2615_v49 = vpop.xlane.xlu2 %2614  ;;  %3031 = vadd.xlane.f32.xlu1 %v3030_v17  ;;  %v3002_v7 = vsub.f32 %v6262_v35, %v2990_v8 }
 0x859   :  { %4669 = vrcp.f32 %v2615_v49 }
 0x85a   :  { %v2656_v27 = vpack.c.bf16 %v2648_v9, %v2648_v9  ;;  %v3015_v51 = vmul.f32 1.442695, %v3002_v7 }
 0x85c   :  { %4342 = vmatmul.msk.bf16.vlgmr.msrb.gmra.mxu1 %vm704_vm3, %v2656_v27 }
 0x85f   :  { %v4670_v11 = vpop.eup %4669 }
 0x860   :  { %v2645_v54 = vmul.f32 %v4670_v11, %v6290_v25  ;;  %v2511_v6 = vpop.xlane.xlu1 %2510 }
 0x862   :  { %v2653_v45 = vpack.c.bf16 %v2645_v54, %v2645_v54 }
 0x864   :  { %4339 = vmatmul.msk.bf16.vlgmr.msra.gmra.mxu2 %vm704_vm3, %v2653_v45 }
 0x865   :  { %2847 = vmatpush.bf16.msra.mxu2 %v6111_v2 }
 0x867   :  { %v2636_v20 = vpop.xlane.xlu0 %2635 }
 0x868   :  { %v2514_v14 = vpop.xlane.xlu1 %2513 }
 0x86f   :  { %v2993_v48 = vpop.xlane.xlu0 %2992 }
 0x870   :  { %v3003_v28 = vsub.f32 %v6315_v16, %v2993_v48  ;;  %v2618_v34 = vpop.xlane.xlu1 %2617 }
 0x871   :  { %4671 = vrcp.f32 %v2618_v34 }
 0x872   :  { %v3017_v4 = vmul.f32 1.442695, %v3003_v28 }
 0x874   :  { %4673 = vpow2.f32 %v3017_v4 }
 0x875   :  { %4675 = vrcp.f32 %v2636_v20 }
 0x876   :  { %4677 = vpow2.f32 %v3015_v51 }
 0x877   :  { %v2996_v25 = vpop.xlane.xlu0 %2995  ;;  %v4672_v30 = vpop.eup %4671 }
 0x878   :  { %v3004_v15 = vsub.f32 %v6329_v60, %v2996_v25  ;;  %v2630_v32 = vpop.xlane.xlu2 %2629  ;;  %v2646_v31 = vmul.f32 %v4672_v30, %v6318_v5  ;;  %v2633_v24 = vpop.xlane.xlu1 %2632 }
 0x87a   :  { %v6427_v59 = vpop.eup %4673  ;;  %v3019_v35 = vmul.f32 1.442695, %v3004_v15  ;;  %v2654_v57 = vpack.c.bf16 %v2646_v31, %v2646_v31 }
 0x87b   :  { %v3039_v16 = vsel %vm499_vm0, %v6427_v59, 0.0  ;;  %v4676_v17 = vpop.eup %4675 }
 0x87c   :  { %4679 = vpow2.f32 %v3019_v35  ;;  %3040 = vadd.xlane.f32.xlu1 %v3039_v16  ;;  %4340 = vmatmul.msk.bf16.vlgmr.msra.gmra.mxu3 %vm704_vm3, %v2654_v57  ;;  %v6432_v8 = vpop.eup %4677  ;;  %v2652_v5 = vmul.f32 %v4676_v17, %v6305_v33 }
 0x87d   :  { %4681 = vrcp.f32 %v2630_v32  ;;  %2863 = vmatpush.bf16.msra.mxu3 %v6071_v37  ;;  %v3036_v11 = vsel %vm499_vm0, %v6432_v8, 0.0 }
 0x87e   :  { %v2660_v45 = vpack.c.bf16 %v2652_v5, %v2652_v5 }
 0x87f   :  { %v2523_v60 = vpop.xlane.xlu0 %2522 }
 0x880   :  { %v2809_v9 = vpop.permute.xlu2 %2808  ;;  %v2627_v27 = vpop.xlane.xlu1 %2626 }
 0x881   :  { %v6437_v49 = vsel %vm708_vm15, %v2809_v9, 0  ;;  %4683 = vrcp.f32 %v2627_v27 }
 0x882   :  { %v6441_v54 = vpop.eup %4679  ;;  %2823 = vmatpush.bf16.msra.mxu1 %v6437_v49  ;;  %3037 = vadd.xlane.f32.xlu0 %v3036_v11  ;;  %4685 = vrcp.f32 %v2511_v6 }
 0x883   :  { %v3042_v33 = vsel %vm499_vm0, %v6441_v54, 0.0  ;;  %v4682_v20 = vpop.eup %4681  ;;  %4687 = vrcp.f32 %v2514_v14 }
 0x884   :  { %3043 = vadd.xlane.f32.xlu2 %v3042_v33  ;;  %v2650_v48 = vmul.f32 %v4682_v20, %v6334_v26  ;;  %4689 = vrcp.f32 %v2633_v24 }
 0x885   :  { %4346 = vmatmul.msk.bf16.vlgmr.msra.gmra.mxu1 %vm704_vm3, %v2660_v45  ;;  %4691 = vrcp.f32 %v2523_v60 }
 0x886   :  { %2895 = vmatpush.bf16.msrb.mxu1 %v6091_v12  ;;  %v2658_v4 = vpack.c.bf16 %v2650_v48, %v2650_v48 }
 0x887   :  { %v4684_v7 = vpop.eup %4683  ;;  %v2526_v34 = vpop.xlane.xlu0 %2525 }
 0x888   :  { %v2649_v28 = vmul.f32 %v4684_v7, %v6344_v46  ;;  %v4686_v25 = vpop.eup %4685  ;;  %4693 = vrcp.f32 %v2526_v34 }
 0x889   :  { %v4688_v30 = vpop.eup %4687  ;;  %v2541_v6 = vmul.f32 %v4686_v25, %v6298_v42 }
 0x88a   :  { %2959 = vmatpush.bf16.msra.mxu1 %v6437_v49  ;;  %v2657_v51 = vpack.c.bf16 %v2649_v28, %v2649_v28  ;;  %v4690_v46 = vpop.eup %4689  ;;  %v2542_v14 = vmul.f32 %v4688_v30, %v6303_v23 }
 0x88b   :  { %v2651_v15 = vmul.f32 %v4690_v46, %v6331_v21  ;;  %v2549_v24 = vpack.c.bf16 %v2541_v6, %v2541_v6  ;;  %v4692_v23 = vpop.eup %4691 }
 0x88c   :  { %4343 = vmatmul.msk.bf16.vlgmr.msrb.gmra.mxu2 %vm704_vm3, %v2657_v51  ;;  %4344 = vmatmul.msk.bf16.vlgmr.msrb.gmra.mxu3 %vm704_vm3, %v2658_v4  ;;  %v2550_v35 = vpack.c.bf16 %v2542_v14, %v2542_v14  ;;  %v2545_v16 = vmul.f32 %v4692_v23, %v6342_v47 }
 0x88d   :  { %2911 = vmatpush.bf16.msrb.mxu2 %v6118_v10  ;;  %2927 = vmatpush.bf16.msrb.mxu3 %v6098_v29  ;;  %v2659_v57 = vpack.c.bf16 %v2651_v15, %v2651_v15 }
 0x88e   :  { %v4694_v21 = vpop.eup %4693  ;;  %v2553_v17 = vpack.c.bf16 %v2545_v16, %v2545_v16 }
 0x88f   :  { %v6455_v26 = vpop.xlane.xlu0 %2528 }
 0x895   :  { %3282 = vrot.lane.b32.xlu1 %v5013_v39, %s4932_s18 }
 0x896   :  { %3303 = vrot.lane.b32.xlu0 %v5019_v43, %s4933_s19 }
 0x897   :  { %v6473_v42 = vpop.xlane.xlu0 %2531 }
 0x898   :  { %v2788_v32 = vpop.permute.xlu1 %2787 }
 0x899   :  { %v6465_v31 = vsel %vm708_vm15, %v2788_v32, 0 }
 0x89a   :  { %2802 = vmatpush.bf16.msrb.mxu0 %v6465_v31 }
 0x89c   :  { %3257 = vrot.lane.b32.xlu2 %v5011_v38, %s4933_s19  ;;  %4347 = vmatmul.msk.bf16.vlgmr.msra.gmra.mxu2 %vm704_vm3, %v2549_v24 }
 0x89d   :  { %4348 = vmatmul.msk.bf16.vlgmr.msra.gmra.mxu3 %vm704_vm3, %v2550_v35  ;;  %3079 = vmatpush.bf16.msra.mxu2 %v6111_v2  ;;  %v2546_v2 = vmul.f32 %v4694_v21, %v6352_v36 }
 0x89e   :  { %2879 = vmatpush.bf16.msra.mxu0 %v6079_v58  ;;  %3095 = vmatpush.bf16.msra.mxu3 %v6071_v37 }
 0x89f   :  { %4345 = vmatmul.msk.bf16.vlgmr.msrb.gmra.mxu0 %vm704_vm3, %v2659_v57  ;;  %3305 = vrot.lane.b32.xlu1 %v5019_v43, %s4932_s18  ;;  %v3023_v37 = vpop.xlane.xlu0 %3022  ;;  %v2554_v5 = vpack.c.bf16 %v2546_v2, %v2546_v2 }
 0x8a0   :  { %3372 = vrot.lane.b32.xlu0 %v5028_v55, %s4933_s19  ;;  %4695 = vrcp.f32 %v3023_v37 }
 0x8a2   :  { %2943 = vmatpush.bf16.msrb.mxu0 %v6465_v31 }
 0x8a4   :  { %3351 = vrot.lane.b32.xlu2 %v5025_v52, %s4932_s18 }
 0x8a6   :  { %v4696_v36 = vpop.eup %4695 }
 0x8a7   :  { %3374 = vrot.lane.b32.xlu1 %v5028_v55, %s4932_s18  ;;  %v3029_v47 = vpop.xlane.xlu0 %3028  ;;  %v3053_v60 = vmul.f32 %v4696_v36, %v6373_v44 }
 0x8a8   :  { %3395 = vrot.lane.b32.xlu0 %v5036_v63, %s4933_s19 }
 0x8a9   :  { %v3061_v9 = vpack.c.bf16 %v3053_v60, %v3053_v60 }
 0x8ac   :  { %3326 = vrot.lane.b32.xlu2 %v5034_v62, %s4933_s19  ;;  %4351 = vmatmul.msk.bf16.vlgmr.msrb.gmra.mxu2 %vm704_vm3, %v2553_v17 }
 0x8ad   :  { %4352 = vmatmul.msk.bf16.vlgmr.msrb.gmra.mxu3 %vm704_vm3, %v2554_v5  ;;  %3143 = vmatpush.bf16.msrb.mxu2 %v6118_v10 }
 0x8ae   :  { %3159 = vmatpush.bf16.msrb.mxu3 %v6098_v29 }
 0x8af   :  { %3349 = vrot.lane.b32.xlu1 %v5025_v52, %s4933_s19 }
 0x8b0   :  { %3683 = vrot.lane.b32.xlu0 %v5019_v43, %s4934_s20 }
 0x8b4   :  { %3397 = vrot.lane.b32.xlu2 %v5036_v63, %s4932_s18 }
 0x8b7   :  { %3420 = vrot.lane.b32.xlu1 %v5038_v1, %s4932_s18 }
 0x8b9   :  { %v2517_v10 = vpop.xlane.xlu2 %2516 }
 0x8ba   :  { %4697 = vrcp.f32 %v2517_v10  ;;  %v3260_v29 = vpop.permute.xlu0 %3259 }
 0x8bb   :  { %v3265_v27 = vsel %vm311_vm14, %v3260_v29, 0 }
 0x8bc   :  { %3418 = vrot.lane.b32.xlu2 %v5038_v1, %s4933_s19  ;;  %4355 = vmatmul.msk.bf16.vlgmr.msra.gmra.mxu2 %vm704_vm3, %v3061_v9 }
 0x8bd   :  { %3274 = vmatpush.bf16.xpose.msra.mxu2 %v3265_v27 }
 0x8bf   :  { %3662 = vrot.lane.b32.xlu1 %v5013_v39, %s4934_s20 }
 0x8c0   :  { %v4698_v43 = vpop.eup %4697 }
 0x8c1   :  { %v2543_v44 = vmul.f32 %v4698_v43, %v6387_v13  ;;  %v3026_v11 = vpop.xlane.xlu2 %3025 }
 0x8c2   :  { %4699 = vrcp.f32 %v3026_v11  ;;  %v3281_v32 = vpop.permute.xlu0 %3280 }
 0x8c3   :  { %v2551_v45 = vpack.c.bf16 %v2543_v44, %v2543_v44  ;;  %v2520_v33 = vpop.xlane.xlu1 %2519 }
 0x8c4   :  { %3641 = vrot.lane.b32.xlu2 %v5011_v38, %s4934_s20  ;;  %4701 = vrcp.f32 %v2520_v33 }
 0x8c5   :  { %4349 = vmatmul.msk.bf16.vlgmr.msra.gmra.mxu0 %vm704_vm3, %v2551_v45  ;;  %4703 = vrcp.f32 %v6455_v26 }
 0x8c6   :  { %3111 = vmatpush.bf16.msra.mxu0 %v6079_v58 }
 0x8c8   :  { %v4700_v20 = vpop.eup %4699 }
 0x8c9   :  { %v3054_v39 = vmul.f32 %v4700_v20, %v6396_v56  ;;  %v3035_v48 = vpop.xlane.xlu2 %3034 }
 0x8ca   :  { %4705 = vrcp.f32 %v3035_v48  ;;  %v4702_v13 = vpop.eup %4701  ;;  %v3329_v35 = vpop.permute.xlu0 %3328 }
 0x8cb   :  { %v3062_v7 = vpack.c.bf16 %v3054_v39, %v3054_v39  ;;  %v4704_v28 = vpop.eup %4703  ;;  %v2544_v34 = vmul.f32 %v4702_v13, %v6398_v22  ;;  %4707 = vrcp.f32 %v6473_v42 }
 0x8cc   :  { %3704 = vrot.lane.b32.xlu2 %v5034_v62, %s4934_s20  ;;  %v2547_v4 = vmul.f32 %v4704_v28, %v6357_v50  ;;  %4709 = vrcp.f32 %v3029_v47 }
 0x8cd   :  { %4356 = vmatmul.msk.bf16.vlgmr.msra.gmra.mxu3 %vm704_vm3, %v3062_v7  ;;  %v2552_v38 = vpack.c.bf16 %v2544_v34, %v2544_v34 }
 0x8ce   :  { %v2555_v22 = vpack.c.bf16 %v2547_v4, %v2547_v4 }
 0x8cf   :  { %4350 = vmatmul.msk.bf16.vlgmr.msrb.gmra.mxu1 %vm704_vm3, %v2552_v38 }
 0x8d0   :  { %v4706_v51 = vpop.eup %4705  ;;  %3127 = vmatpush.bf16.msrb.mxu1 %v6091_v12  ;;  %v3032_v12 = vpop.xlane.xlu1 %3031 }
 0x8d1   :  { %v3057_v58 = vmul.f32 %v4706_v51, %v6407_v3  ;;  %v6528_v56 = vpop.f32.mrf.mxu0  ;;  %v4708_v62 = vpop.eup %4707  ;;  %4711 = vrcp.f32 %v3032_v12 }
 0x8d2   :  { %v2548_v50 = vmul.f32 %v4708_v62, %v6365_v40  ;;  %v4710_v3 = vpop.eup %4709 }
 0x8d3   :  { %v3065_v25 = vpack.c.bf16 %v3057_v58, %v3057_v58  ;;  %v3055_v6 = vmul.f32 %v4710_v3, %v6377_v61  ;;  %v3334_v61 = vsel %vm311_vm14, %v3329_v35, 0 }
 0x8d4   :  { %v2556_v46 = vpack.c.bf16 %v2548_v50, %v2548_v50 }
 0x8d5   :  { %4353 = vmatmul.msk.bf16.vlgmr.msrb.gmra.mxu0 %vm704_vm3, %v2555_v22  ;;  %4359 = vmatmul.msk.bf16.vlgmr.msrb.gmra.mxu2 %vm704_vm3, %v3065_v25  ;;  %v3063_v15 = vpack.c.bf16 %v3055_v6, %v3055_v6 }
 0x8d6   :  { %3175 = vmatpush.bf16.msrb.mxu0 %v6465_v31 }
 0x8d7   :  { %v4712_v31 = vpop.eup %4711 }
 0x8d8   :  { %v3056_v24 = vmul.f32 %v4712_v31, %v6409_v0 }
 0x8d9   :  { %v2722_v30 = vpop.f32.mrf.mxu0  ;;  %v6534_v26 = vpop.f32.mrf.mxu1 }
 0x8da   :  { %v3064_v57 = vpack.c.bf16 %v3056_v24, %v3056_v24 }
 0x8df   :  { %4354 = vmatmul.msk.bf16.vlgmr.msra.gmra.mxu1 %vm704_vm3, %v2556_v46 }
 0x8e0   :  { %3191 = vmatpush.bf16.msra.mxu1 %v6437_v49 }
 0x8e1   :  { %v2743_v14 = vpop.f32.mrf.mxu1 }
 0x8e5   :  { %4357 = vmatmul.msk.bf16.vlgmr.msra.gmra.mxu0 %vm704_vm3, %v3063_v15 }
 0x8e7   :  { %v6540_v40 = vpop.f32.mrf.mxu2 }
 0x8ef   :  { %v3041_v42 = vpop.xlane.xlu1 %3040  ;;  %v2680_v23 = vpop.f32.mrf.mxu2  ;;  %4358 = vmatmul.msk.bf16.vlgmr.msrb.gmra.mxu1 %vm704_vm3, %v3064_v57 }
 0x8f0   :  { %4713 = vrcp.f32 %v3041_v42  ;;  %3343 = vmatpush.bf16.xpose.msrb.mxu1 %v3334_v61 }
 0x8f5   :  { %v3038_v49 = vpop.xlane.xlu0 %3037 }
 0x8f6   :  { %v4714_v21 = vpop.eup %4713  ;;  %4715 = vrcp.f32 %v3038_v49 }
 0x8f7   :  { %v3059_v16 = vmul.f32 %v4714_v21, %v6427_v59  ;;  %v3044_v2 = vpop.xlane.xlu2 %3043 }
 0x8f8   :  { %4717 = vrcp.f32 %v3044_v2 }
 0x8f9   :  { %v3067_v37 = vpack.c.bf16 %v3059_v16, %v3059_v16 }
 0x8fb   :  { %4361 = vmatmul.msk.bf16.vlgmr.msrb.gmra.mxu0 %vm704_vm3, %v3067_v37 }
 0x8fc   :  { %v4716_v0 = vpop.eup %4715 }
 0x8fd   :  { %v3058_v17 = vmul.f32 %v4716_v0, %v6432_v8  ;;  %v2829_v0 = vsel %vm5539_vm4, %v6540_v40, 0.0 }
 0x8fe   :  { %v4718_v5 = vpop.eup %4717 }
 0x8ff   :  { %v3066_v47 = vpack.c.bf16 %v3058_v17, %v3058_v17  ;;  %v3060_v36 = vmul.f32 %v4718_v5, %v6441_v54  ;;  %v3258_v60 = vpop.permute.xlu2 %3257  ;;  %v6549_v10 = vpop.f32.mrf.mxu3 }
 0x900   :  { %4363 = vmatmul.msk.bf16.vlgmr.msra.gmra.mxu2 %vm311_vm14, %v3258_v60 }
 0x901   :  { %v3068_v29 = vpack.c.bf16 %v3060_v36, %v3060_v36  ;;  %4360 = vmatmul.msk.bf16.vlgmr.msrb.gmra.mxu3 %vm704_vm3, %v3066_v47 }
 0x902   :  { %v6553_v59 = vpop.f32.mrf.mxu1 }
 0x903   :  { %4362 = vmatmul.msk.bf16.vlgmr.msra.gmra.mxu1 %vm704_vm3, %v3068_v29  ;;  %v6598_v29 = vld.sshfl [vmem:[#allocation1] sm:$0xff pattern:$0x75316420] }
 0x907   :  { %v3283_v9 = vpop.permute.xlu1 %3282  ;;  %v3352_v27 = vpop.permute.xlu2 %3351 }
 0x908   :  { %v2701_v43 = vpop.f32.mrf.mxu3  ;;  %v3288_v8 = vsel %vm311_vm14, %v3283_v9, 0  ;;  %v3357_v44 = vsel %vm311_vm14, %v3352_v27, 0  ;;  %v3304_v54 = vpop.permute.xlu0 %3303 }
 0x909   :  { %3297 = vmatpush.bf16.xpose.msra.mxu3 %v3288_v8  ;;  %3366 = vmatpush.bf16.xpose.msrb.mxu2 %v3357_v44  ;;  %v2830_v8 = vsel %vm5539_vm4, %v6549_v10, 0.0 }
 0x90a   :  { %v2827_v11 = vpop.f32.mrf.mxu1 }
 0x90f   :  { %v3327_v45 = vpop.permute.xlu2 %3326  ;;  %v6558_v33 = vpop.f32.mrf.mxu2 }
 0x910   :  { %v2783_v20 = vpop.f32.mrf.mxu3 }
 0x911   :  { %v3306_v39 = vpop.permute.xlu1 %3305  ;;  %4364 = vmatmul.msk.bf16.vlgmr.msra.gmra.mxu3 %vm311_vm14, %v3281_v32  ;;  %v2834_v57 = vsel %vm5539_vm4, %v2783_v20, 0.0 }
 0x912   :  { %v3311_v48 = vsel %vm311_vm14, %v3306_v39, 0  ;;  %v3373_v13 = vpop.permute.xlu0 %3372  ;;  %v2833_v39 = vsel %vm5539_vm4, %v6558_v33, 0.0 }
 0x913   :  { %3320 = vmatpush.bf16.xpose.msra.mxu0 %v3311_v48  ;;  %4366 = vmatmul.msk.bf16.vlgmr.msrb.gmra.mxu1 %vm311_vm14, %v3327_v45 }
 0x917   :  { %v3398_v7 = vpop.permute.xlu2 %3397  ;;  %v2764_v28 = vpop.f32.mrf.mxu2 }
 0x918   :  { %v2785_v34 = vpop.f32.mrf.mxu3  ;;  %v3403_v38 = vsel %vm311_vm14, %v3398_v7, 0 }
 0x919   :  { %v3375_v4 = vpop.permute.xlu1 %3374 }
 0x91a   :  { %v3380_v51 = vsel %vm311_vm14, %v3375_v4, 0  ;;  %4365 = vmatmul.msk.bf16.vlgmr.msra.gmra.mxu0 %vm311_vm14, %v3304_v54  ;;  %v3396_v58 = vpop.permute.xlu0 %3395 }
 0x91b   :  { %3412 = vmatpush.bf16.xpose.msrb.mxu0 %v3403_v38  ;;  %3389 = vmatpush.bf16.xpose.msrb.mxu3 %v3380_v51  ;;  %v6610_v38 = vld.sshfl [vmem:[#allocation1 + $0x20] sm:$0xff pattern:$0x75316420] }
 0x91c   :  { %v6566_v22 = vpop.f32.mrf.mxu0 }
 0x91f   :  { %v3419_v25 = vpop.permute.xlu2 %3418  ;;  %v2849_v62 = vpop.f32.mrf.mxu2 }
 0x920   :  { %v2865_v50 = vpop.f32.mrf.mxu3  ;;  %v2850_v17 = vadd.f32 %v2849_v62, %v2829_v0 }
 0x921   :  { %v3350_v30 = vpop.permute.xlu1 %3349  ;;  %v2866_v44 = vadd.f32 %v2865_v50, %v2830_v8 }
 0x922   :  { %4367 = vmatmul.msk.bf16.vlgmr.msrb.gmra.mxu2 %vm311_vm14, %v3350_v30  ;;  %v3684_v3 = vpop.permute.xlu0 %3683  ;;  %4368 = vmatmul.msk.bf16.vlgmr.msrb.gmra.mxu3 %vm311_vm14, %v3373_v13  ;;  %v6617_v30 = vld.sshfl [vmem:[#allocation1 + $0x10] sm:$0xff pattern:$0x75316420] }
 0x923   :  { %v6571_v46 = vsel %vm708_vm15, %v3684_v3, 0 }
 0x924   :  { %v2806_v12 = vpop.f32.mrf.mxu0  ;;  %3698 = vmatpush.bf16.msra.mxu0 %v6571_v46 }
 0x927   :  { %v3642_v6 = vpop.permute.xlu2 %3641  ;;  %v2851_v14 = vpop.f32.mrf.mxu2 }
 0x928   :  { %v2867_v15 = vpop.f32.mrf.mxu3  ;;  %v6575_v32 = vsel %vm708_vm15, %v3642_v6, 0  ;;  %v2832_v6 = vsel %vm5539_vm4, %v6534_v26, 0.0  ;;  %v2836_v26 = vsel %vm5539_vm4, %v6553_v59, 0.0 }
 0x929   :  { %v3421_v31 = vpop.permute.xlu1 %3420  ;;  %3656 = vmatpush.bf16.msra.mxu2 %v6575_v32 }
 0x92a   :  { %v3426_v24 = vsel %vm311_vm14, %v3421_v31, 0  ;;  %4369 = vmatmul.msk.bf16.vlgmr.msrb.gmra.mxu0 %vm311_vm14, %v3396_v58  ;;  %v2831_v58 = vsel %vm5539_vm4, %v6528_v56, 0.0 }
 0x92b   :  { %3435 = vmatpush.bf16.xpose.msra.mxu1 %v3426_v24 }
 0x92f   :  { %v3705_v35 = vpop.permute.xlu2 %3704  ;;  %v2913_v61 = vpop.f32.mrf.mxu2 }
 0x930   :  { %v6583_v42 = vsel %vm708_vm15, %v3705_v35, 0  ;;  %v2929_v23 = vpop.f32.mrf.mxu3  ;;  %v2914_v48 = vadd.f32 %v2913_v61, %v2833_v39  ;;  %v2835_v35 = vsel %vm5539_vm4, %v6566_v22, 0.0 }
 0x931   :  { %v3663_v49 = vpop.permute.xlu1 %3662  ;;  %v6585_v21 = vadd.f32 %v2929_v23, %v2834_v57 }
 0x932   :  { %v6589_v16 = vsel %vm708_vm15, %v3663_v49, 0  ;;  %4370 = vmatmul.msk.bf16.vlgmr.msra.gmra.mxu1 %vm311_vm14, %v3419_v25 }
 0x933   :  { %3719 = vmatpush.bf16.msrb.mxu1 %v6583_v42  ;;  %3677 = vmatpush.bf16.msra.mxu3 %v6589_v16 }
 0x937   :  { %v2915_v2 = vpop.f32.mrf.mxu2 }
 0x938   :  { %v2931_v37 = vpop.f32.mrf.mxu3  ;;  %v6629_v2 = vld.sshfl [vmem:[#allocation1 + $0x30] sm:$0xff pattern:$0x75316420] }
 0x93f   :  { %v3081_v5 = vpop.f32.mrf.mxu2 }
 0x940   :  { %v3197_v47 = vsel %vm5567_vm5, %v3081_v5, 0.0 }
 0x941   :  { %v3205_v36 = vadd.f32 %v3197_v47, %v2850_v17 }
 0x942   :  { %v2881_v60 = vpop.f32.mrf.mxu0 }
 0x943   :  { %3221 = vst [vmem:[#allocation1] ss:$2 sm:$0xff] %v3205_v36  ;;  %v2882_v25 = vadd.f32 %v2881_v60, %v2831_v58 }
 0x947   :  { %v3083_v9 = vpop.f32.mrf.mxu2 }
 0x94a   :  { %v2883_v27 = vpop.f32.mrf.mxu0 }
 0x94c   :  { %v2897_v43 = vpop.f32.mrf.mxu1 }
 0x94d   :  { %v2898_v14 = vadd.f32 %v2897_v43, %v2832_v6 }
 0x950   :  { %v3097_v54 = vpop.f32.mrf.mxu3 }
 0x951   :  { %v3198_v40 = vsel %vm5567_vm5, %v3097_v54, 0.0 }
 0x952   :  { %v3206_v11 = vadd.f32 %v3198_v40, %v2866_v44  ;;  %v2945_v45 = vpop.f32.mrf.mxu0 }
 0x953   :  { %v2946_v57 = vadd.f32 %v2945_v45, %v2835_v35 }
 0x954   :  { %3223 = vst [vmem:[#allocation1 + $0x1] ss:$2 sm:$0xff] %v3206_v11  ;;  %v2899_v20 = vpop.f32.mrf.mxu1 }
 0x958   :  { %v3099_v13 = vpop.f32.mrf.mxu3  ;;  %v3145_v7 = vpop.f32.mrf.mxu2 }
 0x959   :  { %v3201_v28 = vsel %vm5567_vm5, %v3145_v7, 0.0 }
 0x95a   :  { %v3209_v10 = vadd.f32 %v3201_v28, %v2914_v48  ;;  %v2947_v34 = vpop.f32.mrf.mxu0 }
 0x95c   :  { %3229 = vst [vmem:[#allocation1 + $0x20] ss:$2 sm:$0xff] %v3209_v10  ;;  %v2961_v4 = vpop.f32.mrf.mxu1 }
 0x95d   :  { %v2962_v37 = vadd.f32 %v2961_v4, %v2836_v26 }
 0x960   :  { %v3147_v51 = vpop.f32.mrf.mxu2 }
 0x962   :  { %v3113_v62 = vpop.f32.mrf.mxu0 }
 0x963   :  { %v3199_v33 = vsel %vm5567_vm5, %v3113_v62, 0.0 }
 0x964   :  { %v3207_v50 = vadd.f32 %v3199_v33, %v2882_v25  ;;  %v2963_v3 = vpop.f32.mrf.mxu1 }
 0x966   :  { %3225 = vst [vmem:[#allocation1 + $0x10] ss:$2 sm:$0xff] %v3207_v50 }
 0x96a   :  { %v3115_v12 = vpop.f32.mrf.mxu0 }
 0x96c   :  { %v3129_v15 = vpop.f32.mrf.mxu1 }
 0x96d   :  { %v3200_v56 = vsel %vm5567_vm5, %v3129_v15, 0.0 }
 0x96e   :  { %v3208_v31 = vadd.f32 %v3200_v56, %v2898_v14 }
 0x970   :  { %3227 = vst [vmem:[#allocation1 + $0x11] ss:$2 sm:$0xff] %v3208_v31 }
 0x974   :  { %v3131_v24 = vpop.f32.mrf.mxu1 }
 0x978   :  { %v3177_v61 = vpop.f32.mrf.mxu0 }
 0x979   :  { %v3203_v23 = vsel %vm5567_vm5, %v3177_v61, 0.0 }
 0x97a   :  { %v3211_v49 = vadd.f32 %v3203_v23, %v2946_v57 }
 0x97c   :  { %3233 = vst [vmem:[#allocation1 + $0x30] ss:$2 sm:$0xff] %v3211_v49 }
 0x980   :  { %v3179_v0 = vpop.f32.mrf.mxu0  ;;  %v3193_v17 = vpop.f32.mrf.mxu1 }
 0x981   :  { %v3204_v5 = vsel %vm5567_vm5, %v3193_v17, 0.0 }
 0x982   :  { %v3212_v22 = vadd.f32 %v3204_v5, %v2962_v37 }
 0x983   :  { %v6636_v47 = vpop.f32.mrf.mxu2 }
 0x984   :  { %3235 = vst [vmem:[#allocation1 + $0x31] ss:$2 sm:$0xff] %v3212_v22  ;;  %v3161_v36 = vpop.f32.mrf.mxu3  ;;  %v6678_v34 = vsel %vm5111_vm1, %v6636_v47, -1e+30  ;;  %v6693_v33 = vsel %vm5135_vm2, %v6636_v47, -1e+30 }
 0x985   :  { %v3202_v60 = vsel %vm5567_vm5, %v3161_v36, 0.0  ;;  %v3545_v58 = vsel %vm499_vm0, %v6678_v34, -inf  ;;  %v3953_v3 = vsel %vm499_vm0, %v6693_v33, -inf  ;;  %v3441_v6 = vsel %vm499_vm0, %v6636_v47, -inf }
 0x986   :  { %v3210_v9 = vadd.f32 %v3202_v60, %v6585_v21 }
 0x988   :  { %v3195_v27 = vpop.f32.mrf.mxu1  ;;  %3231 = vst [vmem:[#allocation1 + $0x21] ss:$2 sm:$0xff] %v3210_v9 }
 0x98b   :  { %v3278_v43 = vpop.f32.mrf.mxu2 }
 0x98c   :  { %v3163_v59 = vpop.f32.mrf.mxu3 }
 0x990   :  { %v6641_v8 = vpop.f32.mrf.mxu1 }
 0x991   :  { %v6646_v44 = vsel %vm5111_vm1, %v6641_v8, -1e+30  ;;  %v6657_v21 = vsel %vm5135_vm2, %v6641_v8, -1e+30  ;;  %v3450_v51 = vsel %vm499_vm0, %v6641_v8, -inf }
 0x992   :  { %v3554_v54 = vsel %vm499_vm0, %v6646_v44, -inf  ;;  %v3962_v13 = vsel %vm499_vm0, %v6657_v21, -inf }
 0x993   :  { %3555 = vmax.xlane.f32.xlu1 %v3554_v54 }
 0x994   :  { %v6650_v40 = vpop.f32.mrf.mxu3 }
 0x995   :  { %v3444_v61 = vsel %vm499_vm0, %v6650_v40, -inf  ;;  %v6719_v23 = vsel %vm5111_vm1, %v6650_v40, -1e+30  ;;  %v6749_v9 = vsel %vm5135_vm2, %v6650_v40, -1e+30 }
 0x996   :  { %v3548_v37 = vsel %vm499_vm0, %v6719_v23, -inf  ;;  %v3956_v43 = vsel %vm499_vm0, %v6749_v9, -inf }
 0x997   :  { %v6652_v11 = vpop.f32.mrf.mxu0 }
 0x998   :  { %v3447_v45 = vsel %vm499_vm0, %v6652_v11, -inf  ;;  %v3347_v20 = vpop.f32.mrf.mxu1  ;;  %v6664_v39 = vsel %vm5111_vm1, %v6652_v11, -1e+30  ;;  %v6673_v28 = vsel %vm5135_vm2, %v6652_v11, -1e+30 }
 0x999   :  { %3448 = vmax.xlane.f32.xlu0 %v3447_v45  ;;  %v3551_v48 = vsel %vm499_vm0, %v6664_v39, -inf  ;;  %v3959_v4 = vsel %vm499_vm0, %v6673_v28, -inf }
 0x99a   :  { %3552 = vmax.xlane.f32.xlu2 %v3551_v48 }
 0x99b   :  { %3963 = vmax.xlane.f32.xlu1 %v3962_v13 }
 0x99c   :  { %v3301_v7 = vpop.f32.mrf.mxu3 }
 0x99f   :  { %v3324_v10 = vpop.f32.mrf.mxu0 }
 0x9a1   :  { %3960 = vmax.xlane.f32.xlu0 %v3959_v4 }
 0x9a2   :  { %3451 = vmax.xlane.f32.xlu2 %v3450_v51 }
 0x9a3   :  { %3546 = vmax.xlane.f32.xlu1 %v3545_v58 }
 0x9a5   :  { %v6686_v25 = vpop.f32.mrf.mxu2  ;;  %v6688_v62 = vpop.f32.mrf.mxu3 }
 0x9a6   :  { %v6724_v49 = vsel %vm5111_vm1, %v6688_v62, -1e+30  ;;  %v3453_v17 = vsel %vm499_vm0, %v6686_v25, -inf  ;;  %v6740_v22 = vsel %vm5135_vm2, %v6686_v25, -1e+30  ;;  %v3456_v20 = vsel %vm499_vm0, %v6688_v62, -inf }
 0x9a7   :  { %v6695_v50 = vpop.f32.mrf.mxu0  ;;  %v3560_v0 = vsel %vm499_vm0, %v6724_v49, -inf  ;;  %v3965_v60 = vsel %vm499_vm0, %v6740_v22, -inf  ;;  %v6754_v27 = vsel %vm5135_vm2, %v6688_v62, -1e+30  ;;  %v6763_v54 = vsel %vm5111_vm1, %v6686_v25, -1e+30 }
 0x9a8   :  { %v6702_v12 = vsel %vm5111_vm1, %v6695_v50, -1e+30  ;;  %v3459_v35 = vsel %vm499_vm0, %v6695_v50, -inf  ;;  %v3968_v59 = vsel %vm499_vm0, %v6754_v27, -inf  ;;  %v3557_v45 = vsel %vm499_vm0, %v6763_v54, -inf }
 0x9a9   :  { %3954 = vmax.xlane.f32.xlu0 %v3953_v3  ;;  %v3563_v14 = vsel %vm499_vm0, %v6702_v12, -inf }
 0x9aa   :  { %3442 = vmax.xlane.f32.xlu2 %v3441_v6 }
 0x9ab   :  { %3564 = vmax.xlane.f32.xlu1 %v3563_v14 }
 0x9ad   :  { %v3370_v15 = vpop.f32.mrf.mxu2  ;;  %v3393_v56 = vpop.f32.mrf.mxu3 }
 0x9af   :  { %v3416_v31 = vpop.f32.mrf.mxu0  ;;  %v6708_v24 = vpop.f32.mrf.mxu1 }
 0x9b0   :  { %v3462_v57 = vsel %vm499_vm0, %v6708_v24, -inf  ;;  %v6735_v5 = vsel %vm5111_vm1, %v6708_v24, -1e+30 }
 0x9b1   :  { %3460 = vmax.xlane.f32.xlu0 %v3459_v35  ;;  %v3566_v36 = vsel %vm499_vm0, %v6735_v5, -inf }
 0x9b2   :  { %3463 = vmax.xlane.f32.xlu2 %v3462_v57 }
 0x9b3   :  { %3445 = vmax.xlane.f32.xlu1 %v3444_v61 }
 0x9b7   :  { %v3439_v26 = vpop.f32.mrf.mxu1 }
 0x9b9   :  { %3549 = vmax.xlane.f32.xlu0 %v3548_v37 }
 0x9ba   :  { %3561 = vmax.xlane.f32.xlu2 %v3560_v0 }
 0x9bb   :  { %3454 = vmax.xlane.f32.xlu1 %v3453_v17 }
 0x9c1   :  { %3567 = vmax.xlane.f32.xlu0 %v3566_v36 }
 0x9c3   :  { %3966 = vmax.xlane.f32.xlu1 %v3965_v60 }
 0x9c9   :  { %3957 = vmax.xlane.f32.xlu0 %v3956_v43 }
 0x9cb   :  { %3969 = vmax.xlane.f32.xlu1 %v3968_v59 }
 0x9d1   :  { %3558 = vmax.xlane.f32.xlu0 %v3557_v45 }
 0x9d2   :  { %3725 = vrot.lane.b32.xlu2 %v5025_v52, %s4934_s20 }
 0x9d9   :  { %3457 = vmax.xlane.f32.xlu0 %v3456_v20 }
 0x9ed   :  { %3746 = vrot.lane.b32.xlu0 %v5028_v55, %s4934_s20 }
 0xa06   :  { %v3556_v48 = vpop.xlane.xlu1 %3555 }
 0xa07   :  { %v3572_v13 = vsub.f32 %v6646_v44, %v3556_v48 }
 0xa09   :  { %v3583_v19 = vmul.f32 1.442695, %v3572_v13 }
 0xa0b   :  { %4719 = vpow2.f32 %v3583_v19 }
 0xa0c   :  { %v6774_v7 = vpop.xlane.xlu0 %3448 }
 0xa0d   :  { %v3553_v10 = vpop.xlane.xlu2 %3552 }
 0xa0e   :  { %v3571_v4 = vsub.f32 %v6664_v39, %v3553_v10  ;;  %v6777_v51 = vpop.xlane.xlu1 %3963 }
 0xa10   :  { %v3581_v52 = vmul.f32 1.442695, %v3571_v4 }
 0xa11   :  { %v6779_v58 = vpop.eup %4719 }
 0xa12   :  { %4721 = vpow2.f32 %v3581_v52  ;;  %v3602_v55 = vsel %vm499_vm0, %v6779_v58, 0.0 }
 0xa14   :  { %v6781_v3 = vpop.xlane.xlu0 %3960 }
 0xa15   :  { %v3452_v6 = vpop.xlane.xlu2 %3451 }
 0xa16   :  { %v3547_v44 = vpop.xlane.xlu1 %3546 }
 0xa17   :  { %3603 = vadd.xlane.f32.xlu0 %v3602_v55  ;;  %v3569_v14 = vsub.f32 %v6678_v34, %v3547_v44 }
 0xa18   :  { %v6786_v15 = vpop.eup %4721 }
 0xa19   :  { %v3577_v56 = vmul.f32 1.442695, %v3569_v14  ;;  %v3599_v39 = vsel %vm499_vm0, %v6786_v15, 0.0 }
 0xa1a   :  { %3600 = vadd.xlane.f32.xlu1 %v3599_v39  ;;  %v3468_v39 = vsub.f32 %v6641_v8, %v3452_v6 }
 0xa1b   :  { %4723 = vpow2.f32 %v3577_v56 }
 0xa1c   :  { %v6790_v31 = vpop.xlane.xlu0 %3954 }
 0xa1d   :  { %v3443_v35 = vpop.xlane.xlu2 %3442 }
 0xa1e   :  { %v3565_v57 = vpop.xlane.xlu1 %3564  ;;  %v3465_v48 = vsub.f32 %v6636_v47, %v3443_v35 }
 0xa1f   :  { %v3575_v61 = vsub.f32 %v6702_v12, %v3565_v57 }
 0xa20   :  { %v3473_v19 = vmul.f32 1.442695, %v3465_v48 }
 0xa21   :  { %v6793_v26 = vpop.eup %4723  ;;  %v3589_v37 = vmul.f32 1.442695, %v3575_v61 }
 0xa22   :  { %v3593_v34 = vsel %vm499_vm0, %v6793_v26, 0.0 }
 0xa23   :  { %4725 = vpow2.f32 %v3589_v37  ;;  %3594 = vadd.xlane.f32.xlu2 %v3593_v34  ;;  %v3479_v34 = vmul.f32 1.442695, %v3468_v39 }
 0xa24   :  { %v6797_v0 = vpop.xlane.xlu0 %3460 }
 0xa25   :  { %v6799_v17 = vpop.xlane.xlu2 %3463 }
 0xa26   :  { %v3446_v35 = vpop.xlane.xlu1 %3445 }
 0xa27   :  { %v3466_v37 = vsub.f32 %v6650_v40, %v3446_v35  ;;  %v3467_v40 = vsub.f32 %v6652_v11, %v6774_v7 }
 0xa29   :  { %v6801_v36 = vpop.eup %4725  ;;  %v3475_v8 = vmul.f32 1.442695, %v3466_v37 }
 0xa2a   :  { %v3611_v60 = vsel %vm499_vm0, %v6801_v36, 0.0 }
 0xa2b   :  { %3788 = vrot.lane.b32.xlu0 %v5038_v1, %s4934_s20  ;;  %3612 = vadd.xlane.f32.xlu2 %v3611_v60 }
 0xa2c   :  { %v3550_v12 = vpop.xlane.xlu0 %3549 }
 0xa2d   :  { %v3570_v43 = vsub.f32 %v6719_v23, %v3550_v12  ;;  %v3562_v59 = vpop.xlane.xlu2 %3561 }
 0xa2e   :  { %v3574_v45 = vsub.f32 %v6724_v49, %v3562_v59 }
 0xa2f   :  { %v3579_v20 = vmul.f32 1.442695, %v3570_v43  ;;  %v6839_v43 = vsel %vm5135_vm2, %v6708_v24, -1e+30 }
 0xa30   :  { %v3587_v13 = vmul.f32 1.442695, %v3574_v45  ;;  %v3974_v59 = vsel %vm499_vm0, %v6839_v43, -inf }
 0xa31   :  { %4727 = vpow2.f32 %v3579_v20 }
 0xa32   :  { %4729 = vpow2.f32 %v3587_v13  ;;  %v3477_v13 = vmul.f32 1.442695, %v3467_v40 }
 0xa33   :  { %4731 = vpow2.f32 %v3473_v19 }
 0xa34   :  { %v3568_v10 = vpop.xlane.xlu0 %3567 }
 0xa35   :  { %v3576_v4 = vsub.f32 %v6735_v5, %v3568_v10  ;;  %v3726_v52 = vpop.permute.xlu2 %3725  ;;  %v3977_v10 = vsub.f32 %v6693_v33, %v6790_v31 }
 0xa36   :  { %v6812_v1 = vsel %vm708_vm15, %v3726_v52, 0 }
 0xa37   :  { %v6814_v55 = vpop.eup %4727  ;;  %v3591_v23 = vmul.f32 1.442695, %v3576_v4  ;;  %3740 = vmatpush.bf16.msrb.mxu2 %v6812_v1  ;;  %v3455_v4 = vpop.xlane.xlu1 %3454  ;;  %v3985_v7 = vmul.f32 1.442695, %v3977_v10 }
 0xa38   :  { %v6817_v49 = vpop.eup %4729  ;;  %v3596_v47 = vsel %vm499_vm0, %v6814_v55, 0.0 }
 0xa39   :  { %4733 = vpow2.f32 %v3591_v23  ;;  %3597 = vadd.xlane.f32.xlu1 %v3596_v47  ;;  %v3608_v5 = vsel %vm499_vm0, %v6817_v49, 0.0  ;;  %v6825_v14 = vpop.eup %4731 }
 0xa3a   :  { %3609 = vadd.xlane.f32.xlu2 %v3608_v5  ;;  %v3489_v61 = vsel %vm499_vm0, %v6825_v14, 0.0  ;;  %4735 = vpow2.f32 %v3479_v34  ;;  %v3980_v5 = vsub.f32 %v6657_v21, %v6777_v51 }
 0xa3c   :  { %v6823_v44 = vpop.xlane.xlu0 %3957 }
 0xa3f   :  { %v6827_v56 = vpop.eup %4733  ;;  %v3967_v40 = vpop.xlane.xlu1 %3966 }
 0xa40   :  { %v3614_v57 = vsel %vm499_vm0, %v6827_v56, 0.0  ;;  %v6846_v20 = vpop.eup %4735 }
 0xa41   :  { %3615 = vadd.xlane.f32.xlu1 %v3614_v57  ;;  %v3498_v11 = vsel %vm499_vm0, %v6846_v20, 0.0  ;;  %v3991_v57 = vmul.f32 1.442695, %v3980_v5  ;;  %v3979_v5 = vsub.f32 %v6673_v28, %v6781_v3 }
 0xa42   :  { %3490 = vadd.xlane.f32.xlu2 %v3489_v61 }
 0xa44   :  { %v3559_v60 = vpop.xlane.xlu0 %3558 }
 0xa45   :  { %v3573_v12 = vsub.f32 %v6763_v54, %v3559_v60 }
 0xa47   :  { %v3585_v6 = vmul.f32 1.442695, %v3573_v12  ;;  %v3978_v12 = vsub.f32 %v6749_v9, %v6823_v44 }
 0xa49   :  { %4737 = vpow2.f32 %v3585_v6 }
 0xa4a   :  { %3975 = vmax.xlane.f32.xlu2 %v3974_v59  ;;  %4739 = vpow2.f32 %v3475_v8  ;;  %v3987_v59 = vmul.f32 1.442695, %v3978_v12 }
 0xa4c   :  { %v3458_v45 = vpop.xlane.xlu0 %3457 }
 0xa4d   :  { %v3470_v54 = vsub.f32 %v6688_v62, %v3458_v45  ;;  %v3469_v62 = vsub.f32 %v6686_v25, %v3455_v4  ;;  %v3471_v25 = vsub.f32 %v6695_v50, %v6797_v0 }
 0xa4f   :  { %v6848_v48 = vpop.eup %4737  ;;  %v3483_v19 = vmul.f32 1.442695, %v3470_v54  ;;  %v3481_v31 = vmul.f32 1.442695, %v3469_v62  ;;  %v3485_v34 = vmul.f32 1.442695, %v3471_v25 }
 0xa50   :  { %v3605_v52 = vsel %vm499_vm0, %v6848_v48, 0.0  ;;  %v6854_v23 = vpop.eup %4739 }
 0xa51   :  { %4741 = vpow2.f32 %v3483_v19  ;;  %3606 = vadd.xlane.f32.xlu1 %v3605_v52  ;;  %v3492_v47 = vsel %vm499_vm0, %v6854_v23, 0.0  ;;  %v3472_v52 = vsub.f32 %v6708_v24, %v6799_v17 }
 0xa52   :  { %3499 = vadd.xlane.f32.xlu2 %v3498_v11  ;;  %4743 = vpow2.f32 %v3477_v13  ;;  %v3981_v13 = vsub.f32 %v6740_v22, %v3967_v40  ;;  %v3970_v22 = vpop.xlane.xlu1 %3969 }
 0xa53   :  { %4745 = vpow2.f32 %v3985_v7  ;;  %v3487_v7 = vmul.f32 1.442695, %v3472_v52  ;;  %v3982_v28 = vsub.f32 %v6754_v27, %v3970_v22 }
 0xa54   :  { %4747 = vpow2.f32 %v3481_v31  ;;  %v3993_v44 = vmul.f32 1.442695, %v3981_v13 }
 0xa55   :  { %3493 = vadd.xlane.f32.xlu0 %v3492_v47  ;;  %4749 = vpow2.f32 %v3991_v57  ;;  %v6911_v47 = vsel %vm5135_vm2, %v6695_v50, -1e+30 }
 0xa56   :  { %4751 = vpow2.f32 %v3485_v34  ;;  %v3971_v24 = vsel %vm499_vm0, %v6911_v47, -inf }
 0xa57   :  { %v6861_v33 = vpop.eup %4741  ;;  %4753 = vpow2.f32 %v3987_v59 }
 0xa58   :  { %v3504_v39 = vsel %vm499_vm0, %v6861_v33, 0.0  ;;  %v6867_v35 = vpop.eup %4743  ;;  %4755 = vpow2.f32 %v3993_v44 }
 0xa59   :  { %v3495_v61 = vsel %vm499_vm0, %v6867_v35, 0.0  ;;  %v6873_v37 = vpop.eup %4745 }
 0xa5a   :  { %3505 = vadd.xlane.f32.xlu2 %v3504_v39  ;;  %v6878_v60 = vpop.eup %4747  ;;  %v4001_v0 = vsel %vm499_vm0, %v6873_v37, 0.0 }
 0xa5b   :  { %v3501_v8 = vsel %vm499_vm0, %v6878_v60, 0.0  ;;  %v6887_v6 = vpop.eup %4749 }
 0xa5c   :  { %v6889_v45 = vpop.eup %4751  ;;  %v4010_v54 = vsel %vm499_vm0, %v6887_v6, 0.0 }
 0xa5d   :  { %3496 = vadd.xlane.f32.xlu0 %v3495_v61  ;;  %v3507_v9 = vsel %vm499_vm0, %v6889_v45, 0.0  ;;  %v6898_v19 = vpop.eup %4753  ;;  %v3989_v61 = vmul.f32 1.442695, %v3979_v5 }
 0xa5e   :  { %v4004_v10 = vsel %vm499_vm0, %v6898_v19, 0.0  ;;  %v6902_v4 = vpop.eup %4755 }
 0xa5f   :  { %v3747_v21 = vpop.permute.xlu0 %3746 }
 0xa60   :  { %v6876_v51 = vsel %vm708_vm15, %v3747_v21, 0 }
 0xa61   :  { %3761 = vmatpush.bf16.msrb.mxu3 %v6876_v51 }
 0xa62   :  { %4002 = vadd.xlane.f32.xlu2 %v4001_v0 }
 0xa65   :  { %3502 = vadd.xlane.f32.xlu0 %v3501_v8 }
 0xa6a   :  { %3767 = vrot.lane.b32.xlu1 %v5036_v63, %s4934_s20  ;;  %4011 = vadd.xlane.f32.xlu2 %v4010_v54  ;;  %v4013_v63 = vsel %vm499_vm0, %v6902_v4, 0.0 }
 0xa6d   :  { %3508 = vadd.xlane.f32.xlu0 %v3507_v9 }
 0xa75   :  { %4005 = vadd.xlane.f32.xlu0 %v4004_v10 }
 0xa7d   :  { %4014 = vadd.xlane.f32.xlu0 %v4013_v63 }
 0xa8a   :  { %v3604_v11 = vpop.xlane.xlu0 %3603 }
 0xa8b   :  { %4757 = vrcp.f32 %v3604_v11 }
 0xa8d   :  { %v3601_v62 = vpop.xlane.xlu1 %3600 }
 0xa8e   :  { %4759 = vrcp.f32 %v3601_v62 }
 0xa8f   :  { %4761 = vpow2.f32 %v3487_v7 }
 0xa91   :  { %v4758_v31 = vpop.eup %4757 }
 0xa92   :  { %v3628_v39 = vmul.f32 %v4758_v31, %v6779_v58 }
 0xa94   :  { %v4760_v17 = vpop.eup %4759  ;;  %v3636_v25 = vpack.c.bf16 %v3628_v39, %v3628_v39  ;;  %3972 = vmax.xlane.f32.xlu1 %v3971_v24 }
 0xa95   :  { %v3627_v57 = vmul.f32 %v4760_v17, %v6786_v15  ;;  %v6920_v34 = vpop.eup %4761  ;;  %v3995_v15 = vmul.f32 1.442695, %v3982_v28  ;;  %v3236_v28 = vld.sshfl [vmem:[#allocation1] sm:$0xff pattern:$0x75316420] }
 0xa96   :  { %4374 = vmatmul.msk.bf16.vlgmr.msrb.gmra.mxu1 %vm704_vm3, %v3636_v25  ;;  %v3595_v53 = vpop.xlane.xlu2 %3594  ;;  %v3510_v58 = vsel %vm499_vm0, %v6920_v34, 0.0 }
 0xa97   :  { %v3635_v50 = vpack.c.bf16 %v3627_v57, %v3627_v57  ;;  %4763 = vrcp.f32 %v3595_v53 }
 0xa98   :  { %4765 = vpow2.f32 %v3989_v61 }
 0xa99   :  { %4373 = vmatmul.msk.bf16.vlgmr.msra.gmra.mxu0 %vm704_vm3, %v3635_v50  ;;  %4767 = vpow2.f32 %v3995_v15 }
 0xa9c   :  { %3511 = vadd.xlane.f32.xlu1 %v3510_v58 }
 0xa9d   :  { %v4764_v3 = vpop.eup %4763  ;;  %v3789_v21 = vpop.permute.xlu0 %3788 }
 0xa9e   :  { %v3625_v0 = vmul.f32 %v4764_v3, %v6793_v26  ;;  %v6928_v12 = vsel %vm708_vm15, %v3789_v21, 0  ;;  %v6931_v8 = vpop.eup %4765  ;;  %v3613_v26 = vpop.xlane.xlu2 %3612 }
 0xa9f   :  { %3803 = vmatpush.bf16.msra.mxu1 %v6928_v12  ;;  %v4007_v27 = vsel %vm499_vm0, %v6931_v8, 0.0  ;;  %v6938_v40 = vpop.eup %4767 }
 0xaa0   :  { %v3633_v59 = vpack.c.bf16 %v3625_v0, %v3625_v0  ;;  %v4016_v54 = vsel %vm499_vm0, %v6938_v40, 0.0 }
 0xaa2   :  { %4371 = vmatmul.msk.bf16.vlgmr.msra.gmra.mxu2 %vm704_vm3, %v3633_v59 }
 0xaa3   :  { %3875 = vmatpush.bf16.msrb.mxu1 %v6583_v42  ;;  %3827 = vmatpush.bf16.msra.mxu2 %v6575_v32 }
 0xaa4   :  { %4008 = vadd.xlane.f32.xlu1 %v4007_v27 }
 0xaac   :  { %v3598_v13 = vpop.xlane.xlu1 %3597  ;;  %4017 = vadd.xlane.f32.xlu1 %v4016_v54 }
 0xaad   :  { %4769 = vrcp.f32 %v3598_v13  ;;  %v3610_v9 = vpop.xlane.xlu2 %3609 }
 0xab3   :  { %v4770_v44 = vpop.eup %4769 }
 0xab4   :  { %v3626_v10 = vmul.f32 %v4770_v44, %v6814_v55  ;;  %v3616_v63 = vpop.xlane.xlu1 %3615 }
 0xab5   :  { %4771 = vrcp.f32 %v3616_v63  ;;  %v3491_v22 = vpop.xlane.xlu2 %3490 }
 0xab6   :  { %v3634_v52 = vpack.c.bf16 %v3626_v10, %v3626_v10  ;;  %4773 = vrcp.f32 %v3610_v9 }
 0xab8   :  { %4372 = vmatmul.msk.bf16.vlgmr.msra.gmra.mxu3 %vm704_vm3, %v3634_v52 }
 0xab9   :  { %3843 = vmatpush.bf16.msra.mxu3 %v6589_v16 }
 0xabb   :  { %v4772_v11 = vpop.eup %4771 }
 0xabc   :  { %v3632_v62 = vmul.f32 %v4772_v11, %v6827_v56  ;;  %v4774_v39 = vpop.eup %4773 }
 0xabd   :  { %v3976_v7 = vpop.xlane.xlu2 %3975  ;;  %v3630_v55 = vmul.f32 %v4774_v39, %v6817_v49 }
 0xabe   :  { %v3640_v31 = vpack.c.bf16 %v3632_v62, %v3632_v62  ;;  %v3984_v5 = vsub.f32 %v6839_v43, %v3976_v7 }
 0xabf   :  { %v3638_v56 = vpack.c.bf16 %v3630_v55, %v3630_v55 }
 0xac0   :  { %v3999_v24 = vmul.f32 1.442695, %v3984_v5  ;;  %4378 = vmatmul.msk.bf16.vlgmr.msra.gmra.mxu1 %vm704_vm3, %v3640_v31 }
 0xac1   :  { %3939 = vmatpush.bf16.msra.mxu1 %v6928_v12 }
 0xac2   :  { %4775 = vpow2.f32 %v3999_v24 }
 0xac4   :  { %v3607_v17 = vpop.xlane.xlu1 %3606 }
 0xac5   :  { %4777 = vrcp.f32 %v3607_v17  ;;  %v3500_v25 = vpop.xlane.xlu2 %3499  ;;  %2260 = vrot.lane.b32.xlu1 %v6598_v29, %s4922_s3 }
 0xac6   :  { %4779 = vrcp.f32 %v3500_v25 }
 0xac8   :  { %v6952_v57 = vpop.eup %4775  ;;  %4376 = vmatmul.msk.bf16.vlgmr.msrb.gmra.mxu3 %vm704_vm3, %v3638_v56  ;;  %v3494_v43 = vpop.xlane.xlu0 %3493 }
 0xac9   :  { %3907 = vmatpush.bf16.msrb.mxu3 %v6876_v51  ;;  %4781 = vrcp.f32 %v3494_v43  ;;  %v4022_v49 = vsel %vm499_vm0, %v6952_v57, 0.0 }
 0xaca   :  { %4023 = vadd.xlane.f32.xlu0 %v4022_v49  ;;  %4783 = vrcp.f32 %v3491_v22 }
 0xacb   :  { %v4778_v61 = vpop.eup %4777  ;;  %4785 = vrcp.f32 %v3613_v26 }
 0xacc   :  { %v4780_v53 = vpop.eup %4779  ;;  %v3629_v50 = vmul.f32 %v4778_v61, %v6848_v48 }
 0xacd   :  { %v3524_v29 = vmul.f32 %v4780_v53, %v6846_v20  ;;  %3240 = vrot.lane.b32.xlu1 %v3236_v28, %s4935_s21  ;;  %v3239_v20 = vld.sshfl [vmem:[#allocation1 + $0x30] sm:$0xff pattern:$0x75316420]  ;;  %v3506_v59 = vpop.xlane.xlu2 %3505 }
 0xace   :  { %v3637_v58 = vpack.c.bf16 %v3629_v50, %v3629_v50  ;;  %4787 = vrcp.f32 %v3506_v59 }
 0xacf   :  { %v4782_v3 = vpop.eup %4781  ;;  %v3532_v21 = vpack.c.bf16 %v3524_v29, %v3524_v29 }
 0xad0   :  { %4375 = vmatmul.msk.bf16.vlgmr.msrb.gmra.mxu2 %vm704_vm3, %v3637_v58  ;;  %v3497_v15 = vpop.xlane.xlu0 %3496  ;;  %v3522_v48 = vmul.f32 %v4782_v3, %v6854_v23  ;;  %v4784_v27 = vpop.eup %4783 }
 0xad1   :  { %3891 = vmatpush.bf16.msrb.mxu2 %v6812_v1  ;;  %4382 = vmatmul.msk.bf16.vlgmr.msrb.gmra.mxu1 %vm704_vm3, %v3532_v21  ;;  %v4786_v54 = vpop.eup %4785  ;;  %v3521_v9 = vmul.f32 %v4784_v27, %v6825_v14 }
 0xad2   :  { %4107 = vmatpush.bf16.msrb.mxu1 %v6583_v42  ;;  %v3530_v0 = vpack.c.bf16 %v3522_v48, %v3522_v48  ;;  %v3631_v26 = vmul.f32 %v4786_v54, %v6801_v36  ;;  %v3237_v36 = vld.sshfl [vmem:[#allocation1 + $0x10] sm:$0xff pattern:$0x75316420] }
 0xad3   :  { %v3529_v44 = vpack.c.bf16 %v3521_v9, %v3521_v9 }
 0xad4   :  { %v4788_v10 = vpop.eup %4787  ;;  %v3639_v63 = vpack.c.bf16 %v3631_v26, %v3631_v26 }
 0xad5   :  { %3246 = vrot.lane.b32.xlu1 %v3239_v20, %s4935_s21  ;;  %v4003_v7 = vpop.xlane.xlu2 %4002 }
 0xad8   :  { %4380 = vmatmul.msk.bf16.vlgmr.msra.gmra.mxu3 %vm704_vm3, %v3530_v0  ;;  %v3503_v13 = vpop.xlane.xlu0 %3502 }
 0xad9   :  { %4075 = vmatpush.bf16.msra.mxu3 %v6589_v16  ;;  %4789 = vrcp.f32 %v3503_v13  ;;  %v3526_v16 = vmul.f32 %v4788_v10, %v6861_v33 }
 0xada   :  { %4791 = vrcp.f32 %v3497_v15 }
 0xadb   :  { %v3534_v14 = vpack.c.bf16 %v3526_v16, %v3526_v16 }
 0xadc   :  { %v3768_v23 = vpop.permute.xlu1 %3767 }
 0xadd   :  { %v3773_v42 = vsel %vm708_vm15, %v3768_v23, 0  ;;  %v4012_v58 = vpop.xlane.xlu2 %4011 }
 0xade   :  { %2264 = vrot.lane.b32.xlu0 %v6610_v38, %s4922_s3  ;;  %3782 = vmatpush.bf16.msrb.mxu0 %v3773_v42 }
 0xadf   :  { %v4790_v38 = vpop.eup %4789 }
 0xae0   :  { %4379 = vmatmul.msk.bf16.vlgmr.msra.gmra.mxu2 %vm704_vm3, %v3529_v44  ;;  %v3509_v22 = vpop.xlane.xlu0 %3508  ;;  %v4792_v52 = vpop.eup %4791 }
 0xae1   :  { %4059 = vmatpush.bf16.msra.mxu2 %v6575_v32  ;;  %4377 = vmatmul.msk.bf16.vlgmr.msrb.gmra.mxu0 %vm704_vm3, %v3639_v63  ;;  %v3525_v32 = vmul.f32 %v4790_v38, %v6878_v60  ;;  %v3523_v62 = vmul.f32 %v4792_v52, %v6867_v35 }
 0xae2   :  { %3859 = vmatpush.bf16.msra.mxu0 %v6571_v46 }
 0xae3   :  { %v3533_v33 = vpack.c.bf16 %v3525_v32, %v3525_v32  ;;  %v3531_v5 = vpack.c.bf16 %v3523_v62, %v3523_v62 }
 0xae6   :  { %3923 = vmatpush.bf16.msrb.mxu0 %v3773_v42  ;;  %3242 = vrot.lane.b32.xlu0 %v3237_v36, %s4935_s21 }
 0xae8   :  { %4384 = vmatmul.msk.bf16.vlgmr.msrb.gmra.mxu3 %vm704_vm3, %v3534_v14  ;;  %v4006_v11 = vpop.xlane.xlu0 %4005 }
 0xae9   :  { %4139 = vmatpush.bf16.msrb.mxu3 %v6876_v51  ;;  %4793 = vrcp.f32 %v4006_v11 }
 0xaea   :  { %4795 = vrcp.f32 %v4003_v7 }
 0xaeb   :  { %4797 = vrcp.f32 %v3509_v22 }
 0xaef   :  { %v4794_v31 = vpop.eup %4793 }
 0xaf0   :  { %4383 = vmatmul.msk.bf16.vlgmr.msrb.gmra.mxu2 %vm704_vm3, %v3533_v33  ;;  %v4034_v39 = vmul.f32 %v4794_v31, %v6898_v19  ;;  %v4796_v60 = vpop.eup %4795  ;;  %v4015_v25 = vpop.xlane.xlu0 %4014 }
 0xaf1   :  { %4123 = vmatpush.bf16.msrb.mxu2 %v6812_v1  ;;  %4381 = vmatmul.msk.bf16.vlgmr.msra.gmra.mxu0 %vm704_vm3, %v3531_v5  ;;  %v4798_v24 = vpop.eup %4797  ;;  %v4033_v35 = vmul.f32 %v4796_v60, %v6873_v37  ;;  %4799 = vrcp.f32 %v4015_v25 }
 0xaf2   :  { %4091 = vmatpush.bf16.msra.mxu0 %v6571_v46  ;;  %v4042_v51 = vpack.c.bf16 %v4034_v39, %v4034_v39  ;;  %v3527_v55 = vmul.f32 %v4798_v24, %v6889_v45 }
 0xaf3   :  { %v4041_v17 = vpack.c.bf16 %v4033_v35, %v4033_v35 }
 0xaf4   :  { %v3535_v56 = vpack.c.bf16 %v3527_v55, %v3527_v55 }
 0xaf7   :  { %v4800_v1 = vpop.eup %4799 }
 0xaf8   :  { %4388 = vmatmul.msk.bf16.vlgmr.msra.gmra.mxu3 %vm704_vm3, %v4042_v51  ;;  %v4037_v43 = vmul.f32 %v4800_v1, %v6902_v4 }
 0xafa   :  { %v4045_v37 = vpack.c.bf16 %v4037_v43, %v4037_v43 }
 0xb00   :  { %4387 = vmatmul.msk.bf16.vlgmr.msra.gmra.mxu2 %vm704_vm3, %v4041_v17 }
 0xb01   :  { %4385 = vmatmul.msk.bf16.vlgmr.msrb.gmra.mxu0 %vm704_vm3, %v3535_v56 }
 0xb02   :  { %4155 = vmatpush.bf16.msrb.mxu0 %v3773_v42  ;;  %v3238_v42 = vld.sshfl [vmem:[#allocation1 + $0x20] sm:$0xff pattern:$0x75316420] }
 0xb07   :  { %v3973_v46 = vpop.xlane.xlu1 %3972 }
 0xb08   :  { %v3983_v19 = vsub.f32 %v6911_v47, %v3973_v46 }
 0xb0a   :  { %v3997_v49 = vmul.f32 1.442695, %v3983_v19 }
 0xb0c   :  { %4801 = vpow2.f32 %v3997_v49 }
 0xb0f   :  { %v3512_v61 = vpop.xlane.xlu1 %3511 }
 0xb10   :  { %4803 = vrcp.f32 %v3512_v61  ;;  %4391 = vmatmul.msk.bf16.vlgmr.msrb.gmra.mxu2 %vm704_vm3, %v4045_v37 }
 0xb12   :  { %v6997_v45 = vpop.eup %4801 }
 0xb13   :  { %v3721_v53 = vpop.f32.mrf.mxu1  ;;  %v4019_v50 = vsel %vm499_vm0, %v6997_v45, 0.0 }
 0xb14   :  { %4020 = vadd.xlane.f32.xlu2 %v4019_v50  ;;  %v3812_v14 = vsel %vm5539_vm4, %v3721_v53, 0.0 }
 0xb16   :  { %v4804_v28 = vpop.eup %4803  ;;  %v7001_v29 = vpop.f32.mrf.mxu0 }
 0xb17   :  { %v3528_v47 = vmul.f32 %v4804_v28, %v6920_v34  ;;  %v4009_v4 = vpop.xlane.xlu1 %4008 }
 0xb18   :  { %4805 = vrcp.f32 %v4009_v4 }
 0xb19   :  { %v3536_v3 = vpack.c.bf16 %v3528_v47, %v3528_v47  ;;  %4807 = vrcp.f32 %v4012_v58 }
 0xb1b   :  { %v3723_v21 = vpop.f32.mrf.mxu1  ;;  %4386 = vmatmul.msk.bf16.vlgmr.msra.gmra.mxu1 %vm704_vm3, %v3536_v3 }
 0xb1c   :  { %4171 = vmatpush.bf16.msra.mxu1 %v6928_v12 }
 0xb1e   :  { %v4806_v15 = vpop.eup %4805  ;;  %v3702_v48 = vpop.f32.mrf.mxu0 }
 0xb1f   :  { %v4035_v20 = vmul.f32 %v4806_v15, %v6931_v8  ;;  %v4018_v0 = vpop.xlane.xlu1 %4017  ;;  %v4808_v27 = vpop.eup %4807 }
 0xb20   :  { %4809 = vrcp.f32 %v4018_v0  ;;  %v4036_v34 = vmul.f32 %v4808_v27, %v6887_v6 }
 0xb21   :  { %v4043_v59 = vpack.c.bf16 %v4035_v20, %v4035_v20 }
 0xb22   :  { %v4044_v26 = vpack.c.bf16 %v4036_v34, %v4036_v34 }
 0xb23   :  { %4389 = vmatmul.msk.bf16.vlgmr.msra.gmra.mxu0 %vm704_vm3, %v4043_v59 }
 0xb25   :  { %v7009_v54 = vpop.f32.mrf.mxu2 }
 0xb26   :  { %v4810_v13 = vpop.eup %4809  ;;  %v3809_v47 = vsel %vm5539_vm4, %v7009_v54, 0.0 }
 0xb27   :  { %v4038_v9 = vmul.f32 %v4810_v13, %v6938_v40 }
 0xb29   :  { %v4046_v23 = vpack.c.bf16 %v4038_v9, %v4038_v9 }
 0xb2b   :  { %4390 = vmatmul.msk.bf16.vlgmr.msrb.gmra.mxu1 %vm704_vm3, %v4044_v26  ;;  %4392 = vmatmul.msk.bf16.vlgmr.msrb.gmra.mxu3 %vm704_vm3, %v4046_v23 }
 0xb2c   :  { %2262 = vrot.lane.b32.xlu2 %v6617_v30, %s4922_s3 }
 0xb2d   :  { %v3660_v12 = vpop.f32.mrf.mxu2 }
 0xb34   :  { %2266 = vrot.lane.b32.xlu2 %v6629_v2, %s4922_s3 }
 0xb37   :  { %v2261_v6 = vpop.permute.xlu1 %2260 }
 0xb38   :  { %2273 = vst.msk [vmem:[#allocation8] sm:$0xff] %vm2272_vm6, %v2261_v6 }
 0xb3b   :  { %v3679_v8 = vpop.f32.mrf.mxu3 }
 0xb3c   :  { %3244 = vrot.lane.b32.xlu2 %v3238_v42, %s4935_s21  ;;  %v3810_v46 = vsel %vm5539_vm4, %v3679_v8, 0.0 }
 0xb3d   :  { %v7020_v40 = vpop.f32.mrf.mxu1  ;;  %v4024_v44 = vpop.xlane.xlu0 %4023 }
 0xb3e   :  { %4811 = vrcp.f32 %v4024_v44 }
 0xb3f   :  { %v3241_v10 = vpop.permute.xlu1 %3240 }
 0xb40   :  { %3253 = vst.msk [vmem:[#allocation8] sm:$0xff] %vm3252_vm7, %v3241_v10 }
 0xb43   :  { %v3681_v30 = vpop.f32.mrf.mxu3 }
 0xb44   :  { %v4812_v63 = vpop.eup %4811  ;;  %v3811_v30 = vsel %vm5539_vm4, %v7001_v29, 0.0 }
 0xb45   :  { %v4040_v2 = vmul.f32 %v4812_v63, %v6952_v57  ;;  %v3807_v22 = vpop.f32.mrf.mxu1 }
 0xb47   :  { %v4048_v16 = vpack.c.bf16 %v4040_v2, %v4040_v2  ;;  %v3247_v42 = vpop.permute.xlu1 %3246 }
 0xb49   :  { %4394 = vmatmul.msk.bf16.vlgmr.msra.gmra.mxu1 %vm704_vm3, %v4048_v16 }
 0xb4b   :  { %v3763_v36 = vpop.f32.mrf.mxu3 }
 0xb4c   :  { %v3814_v60 = vsel %vm5539_vm4, %v3763_v36, 0.0 }
 0xb4e   :  { %v3877_v38 = vpop.f32.mrf.mxu1 }
 0xb4f   :  { %v7027_v52 = vadd.f32 %v3877_v38, %v3812_v14 }
 0xb50   :  { %v2265_v11 = vpop.permute.xlu0 %2264 }
 0xb51   :  { %2275 = vst.msk [vmem:[#allocation8 + $0x10] sm:$0xff] %vm2272_vm6, %v2265_v11 }
 0xb53   :  { %v3742_v32 = vpop.f32.mrf.mxu2  ;;  %v3765_v62 = vpop.f32.mrf.mxu3 }
 0xb54   :  { %v3813_v26 = vsel %vm5539_vm4, %v3742_v32, 0.0 }
 0xb56   :  { %v3879_v7 = vpop.f32.mrf.mxu1 }
 0xb58   :  { %v3243_v54 = vpop.permute.xlu0 %3242 }
 0xb5b   :  { %v3744_v33 = vpop.f32.mrf.mxu2  ;;  %v3845_v31 = vpop.f32.mrf.mxu3 }
 0xb5c   :  { %v3846_v19 = vadd.f32 %v3845_v31, %v3810_v46 }
 0xb5e   :  { %v3784_v57 = vpop.f32.mrf.mxu0 }
 0xb5f   :  { %v3815_v53 = vsel %vm5539_vm4, %v3784_v57, 0.0 }
 0xb63   :  { %v3829_v5 = vpop.f32.mrf.mxu2  ;;  %v3847_v39 = vpop.f32.mrf.mxu3 }
 0xb64   :  { %v3830_v4 = vadd.f32 %v3829_v5, %v3809_v47 }
 0xb66   :  { %v3786_v51 = vpop.f32.mrf.mxu0 }
 0xb6b   :  { %v3831_v24 = vpop.f32.mrf.mxu2  ;;  %v3909_v35 = vpop.f32.mrf.mxu3 }
 0xb6c   :  { %v7032_v55 = vadd.f32 %v3909_v35, %v3814_v60 }
 0xb6e   :  { %v3861_v17 = vpop.f32.mrf.mxu0 }
 0xb6f   :  { %v3862_v2 = vadd.f32 %v3861_v17, %v3811_v30 }
 0xb73   :  { %v3893_v25 = vpop.f32.mrf.mxu2  ;;  %v3911_v56 = vpop.f32.mrf.mxu3 }
 0xb74   :  { %v3894_v23 = vadd.f32 %v3893_v25, %v3813_v26 }
 0xb76   :  { %v3863_v1 = vpop.f32.mrf.mxu0 }
 0xb7b   :  { %v3895_v43 = vpop.f32.mrf.mxu2  ;;  %v4077_v49 = vpop.f32.mrf.mxu3 }
 0xb7c   :  { %v4178_v37 = vsel %vm5567_vm5, %v4077_v49, 0.0 }
 0xb7d   :  { %v4186_v61 = vadd.f32 %v4178_v37, %v3846_v19 }
 0xb7e   :  { %v3925_v50 = vpop.f32.mrf.mxu0 }
 0xb7f   :  { %4203 = vst [vmem:[#allocation1 + $0x1] ss:$2 sm:$0xff] %v4186_v61  ;;  %v7040_v28 = vadd.f32 %v3925_v50, %v3815_v53 }
 0xb83   :  { %v4061_v58 = vpop.f32.mrf.mxu2  ;;  %v4079_v3 = vpop.f32.mrf.mxu3 }
 0xb84   :  { %v4177_v21 = vsel %vm5567_vm5, %v4061_v58, 0.0 }
 0xb85   :  { %v4185_v15 = vadd.f32 %v4177_v21, %v3830_v4 }
 0xb86   :  { %v3927_v48 = vpop.f32.mrf.mxu0 }
 0xb87   :  { %4201 = vst [vmem:[#allocation1] ss:$2 sm:$0xff] %v4185_v15  ;;  %v4021_v20 = vpop.xlane.xlu2 %4020 }
 0xb88   :  { %4813 = vrcp.f32 %v4021_v20 }
 0xb8b   :  { %v4063_v0 = vpop.f32.mrf.mxu2 }
 0xb8e   :  { %v4814_v59 = vpop.eup %4813  ;;  %v4216_v27 = vld.sshfl [vmem:[#allocation1] sm:$0xff pattern:$0x75316420] }
 0xb8f   :  { %v4039_v34 = vmul.f32 %v4814_v59, %v6997_v45  ;;  %v2263_v13 = vpop.permute.xlu2 %2262  ;;  %4220 = vrot.lane.b32.xlu0 %v4216_v27, %s4936_s22 }
 0xb90   :  { %2274 = vst.msk [vmem:[#allocation8 + $0x8] sm:$0xff] %vm2272_vm6, %v2263_v13 }
 0xb91   :  { %v4047_v9 = vpack.c.bf16 %v4039_v34, %v4039_v34  ;;  %3254 = vst.msk [vmem:[#allocation8 + $0x8] sm:$0xff] %vm3252_vm7, %v3243_v54 }
 0xb93   :  { %v4125_v12 = vpop.f32.mrf.mxu2  ;;  %4393 = vmatmul.msk.bf16.vlgmr.msrb.gmra.mxu0 %vm704_vm3, %v4047_v9 }
 0xb94   :  { %v4181_v45 = vsel %vm5567_vm5, %v4125_v12, 0.0 }
 0xb95   :  { %v4189_v6 = vadd.f32 %v4181_v45, %v3894_v23 }
 0xb97   :  { %4209 = vst [vmem:[#allocation1 + $0x20] ss:$2 sm:$0xff] %v4189_v6  ;;  %v2267_v8 = vpop.permute.xlu2 %2266 }
 0xb98   :  { %2276 = vst.msk [vmem:[#allocation8 + $0x18] sm:$0xff] %vm2272_vm6, %v2267_v8  ;;  %v3941_v44 = vpop.f32.mrf.mxu1 }
 0xb99   :  { %3256 = vst.msk [vmem:[#allocation8 + $0x18] sm:$0xff] %vm3252_vm7, %v3247_v42 }
 0xb9b   :  { %v4127_v10 = vpop.f32.mrf.mxu2 }
 0xb9f   :  { %v3245_v63 = vpop.permute.xlu2 %3244 }
 0xba0   :  { %3255 = vst.msk [vmem:[#allocation8 + $0x10] sm:$0xff] %vm3252_vm7, %v3245_v63  ;;  %v3943_v22 = vpop.f32.mrf.mxu1  ;;  %v4093_v16 = vpop.f32.mrf.mxu0 }
 0xba1   :  { %v4179_v36 = vsel %vm5567_vm5, %v4093_v16, 0.0 }
 0xba2   :  { %v4187_v14 = vadd.f32 %v4179_v36, %v3862_v2 }
 0xba4   :  { %4205 = vst [vmem:[#allocation1 + $0x10] ss:$2 sm:$0xff] %v4187_v14 }
 0xba8   :  { %v4095_v38 = vpop.f32.mrf.mxu0  ;;  %v4109_v11 = vpop.f32.mrf.mxu1 }
 0xba9   :  { %v4180_v32 = vsel %vm5567_vm5, %v4109_v11, 0.0 }
 0xbaa   :  { %v4188_v62 = vadd.f32 %v4180_v32, %v7027_v52  ;;  %v3816_v52 = vsel %vm5539_vm4, %v7020_v40, 0.0 }
 0xbab   :  { %v3942_v51 = vadd.f32 %v3941_v44, %v3816_v52 }
 0xbac   :  { %4207 = vst [vmem:[#allocation1 + $0x11] ss:$2 sm:$0xff] %v4188_v62 }
 0xbae   :  { %v4141_v29 = vpop.f32.mrf.mxu3 }
 0xbaf   :  { %v4182_v7 = vsel %vm5567_vm5, %v4141_v29, 0.0 }
 0xbb0   :  { %v4190_v33 = vadd.f32 %v4182_v7, %v7032_v55  ;;  %v4111_v31 = vpop.f32.mrf.mxu1 }
 0xbb2   :  { %4211 = vst [vmem:[#allocation1 + $0x21] ss:$2 sm:$0xff] %v4190_v33 }
 0xbb3   :  { %v4217_v57 = vld.sshfl [vmem:[#allocation1 + $0x10] sm:$0xff pattern:$0x75316420] }
 0xbb4   :  { %4222 = vrot.lane.b32.xlu2 %v4217_v57, %s4936_s22 }
 0xbb6   :  { %v4143_v5 = vpop.f32.mrf.mxu3 }
 0xbb9   :  { %v4218_v39 = vld.sshfl [vmem:[#allocation1 + $0x20] sm:$0xff pattern:$0x75316420] }
 0xbba   :  { %4224 = vrot.lane.b32.xlu1 %v4218_v39, %s4936_s22 }
 0xbc6   :  { %v4173_v60 = vpop.f32.mrf.mxu1 }
 0xbc7   :  { %v4184_v24 = vsel %vm5567_vm5, %v4173_v60, 0.0 }
 0xbc8   :  { %v4192_v35 = vadd.f32 %v4184_v24, %v3942_v51 }
 0xbca   :  { %4215 = vst [vmem:[#allocation1 + $0x31] ss:$2 sm:$0xff] %v4192_v35 }
 0xbce   :  { %v4175_v55 = vpop.f32.mrf.mxu1 }
 0xc01   :  { %v4221_v17 = vpop.permute.xlu0 %4220 }
 0xc02   :  { %4233 = vst.msk [vmem:[#allocation8] sm:$0xff] %vm4232_vm8, %v4221_v17 }
 0xc0e   :  { %v4223_v25 = vpop.permute.xlu2 %4222 }
 0xc0f   :  { %4234 = vst.msk [vmem:[#allocation8 + $0x8] sm:$0xff] %vm4232_vm8, %v4223_v25 }
 0xc10   :  { %v4157_v56 = vpop.f32.mrf.mxu0 }
 0xc11   :  { %v4183_v41 = vsel %vm5567_vm5, %v4157_v56, 0.0 }
 0xc12   :  { %v4191_v40 = vadd.f32 %v4183_v41, %v7040_v28 }
 0xc14   :  { %4213 = vst [vmem:[#allocation1 + $0x30] ss:$2 sm:$0xff] %v4191_v40 }
 0xc18   :  { %v4159_v1 = vpop.f32.mrf.mxu0 }
 0xc1b   :  { %v4219_v46 = vld.sshfl [vmem:[#allocation1 + $0x30] sm:$0xff pattern:$0x75316420] }
 0xc1c   :  { %4226 = vrot.lane.b32.xlu0 %v4219_v46, %s4936_s22 }
 0xc2c   :  { %v4225_v19 = vpop.permute.xlu1 %4224 }
 0xc2d   :  { %4235 = vst.msk [vmem:[#allocation8 + $0x10] sm:$0xff] %vm4232_vm8, %v4225_v19 }
 0xc8e   :  { %v4227_v18 = vpop.permute.xlu0 %4226 }
 0xc8f   :  { %4236 = vst.msk [vmem:[#allocation8 + $0x18] sm:$0xff] %vm4232_vm8, %v4227_v18 }
 0xc90   :  { %4249 = dma.vmem_to_hbm [thread:$0]  %s4242_s24, 512, %s4244_s27, [#allocation4], %s4921_s30, %s4921_s30, %s4922_s3  }
 0xc91   :  { %4915 = dma.done.wait [#allocation4], 512  }
 0xc92   :  { %4916 = vsyncadd [#allocation4], 4294966784 }
 0xc93   :  { %4254 = vsyncpa [#allocation3], 1 }
 0xc94   :  { %4255 = vsyncpa [#allocation6], 1 }
 0xc95   :  { %4256 = vsyncpa [#allocation4], 1 }

</bundles_post_ra>
